<compile_context>
chip_gen: v6e
topology: v6e:2x2x1
jax: 0.10.0
libtpu: 0.0.40
codegen_flags: <defaults>
</compile_context>

<pallas_src>
import functools

import jax
import jax.numpy as jnp
from jax.experimental import pallas as pl
from jax.experimental.pallas import tpu as pltpu

BN_EPS = 1e-5


def _round_up(x, m):
    return (x + m - 1) // m * m


def _pick_tiling(n):
    """Return (tile_n, padded_n): large point tiles, padded_n % tile_n == 0."""
    n128 = _round_up(n, 128)
    for t in (2048, 1024, 512, 256):
        padded = _round_up(n, t)
        if padded - n128 <= padded // 8:          # tolerate <= ~12.5% extra padding
            return t, padded
    return 128, n128


# ----------------------------------------------------------------------------
# Kernel A: per-point MLPs (mlp1 + mlp2 matmuls) + running max-pool.
# grid = (B, N // TILE_N).  Channels-on-sublanes / points-on-lanes layout
# (works directly on the PyTorch NCL input; no transpose of x in the wrapper).
# BN scales are pre-folded into the weights; layer-4 bias+ReLU is deferred to
# the head (commutes with the max), so layer 4 has no per-tile epilogue.
# ----------------------------------------------------------------------------
def point_feat_kernel(x_ref,                     # (1, Cin, T)  f32
                      w1_ref, b1_ref,            # (64, Cin) f32, (64, 1) f32
                      w2_ref, b2_ref,            # (64, 64)  bf16, (64, 1) f32
                      w3_ref, b3_ref,            # (128, 64) bf16, (128, 1) f32
                      w4_ref,                    # (1024, 128) bf16
                      out_ref,                   # (1, 1, 1024) f32
                      acc_ref,                   # VMEM (1024, 128) f32 running max
                      *, cin):
    t = pl.program_id(1)

    @pl.when(t == 0)
    def _():
        acc_ref[...] = jnp.full_like(acc_ref, -jnp.inf)

    bf16 = jnp.bfloat16
    x = x_ref[0]                                             # (Cin, T) f32

    # Layer 1 (Conv1d k=1, Cin -> 64): Cin rank-1 VPU broadcasts (BN scale
    # already folded into w1).  Right call for tiny Cin; switch to a padded-K
    # MXU matmul if Cin grows beyond ~8.
    h = w1_ref[:, 0:1] * x[0:1, :]
    for k in range(1, cin):
        h = h + w1_ref[:, k:k + 1] * x[k:k + 1, :]
    h = jnp.maximum(h + b1_ref[...], 0.0)                    # (64, T) f32

    # Layers 2-4 (Conv1d k=1) on the MXU: bf16 operands, f32 accumulation.
    h = jnp.dot(w2_ref[...], h.astype(bf16), preferred_element_type=jnp.float32)
    h = jnp.maximum(h + b2_ref[...], 0.0)                    # (64, T)
    h = jnp.dot(w3_ref[...], h.astype(bf16), preferred_element_type=jnp.float32)
    h = jnp.maximum(h + b3_ref[...], 0.0)                    # (128, T)
    z = jnp.dot(w4_ref[...], h.astype(bf16), preferred_element_type=jnp.float32)
    # (1024, T); bias+ReLU deferred past the max-pool (applied in the head).

    # Lane-dense running max: VPU maxes over static 128-lane chunks.
    n_chunks = z.shape[1] // 128
    m = z[:, 0:128]
    for c in range(1, n_chunks):
        m = jnp.maximum(m, z[:, c * 128:(c + 1) * 128])
    acc_ref[...] = jnp.maximum(acc_ref[...], m)

    # Once per batch row: cross-lane reduce + lane-dense (1, 1024) store.
    @pl.when(t == pl.num_programs(1) - 1)
    def _():
        out_ref[0] = jnp.max(acc_ref[...].T, axis=0, keepdims=True)   # (1, 1024)


# ----------------------------------------------------------------------------
# Kernel B: deferred layer-4 bias+ReLU, then classifier head (mlp3 + fc),
# whole (padded) batch at once.  BN scales pre-folded into w5/w6.
# ----------------------------------------------------------------------------
def head_kernel(f_ref, b4_ref,                   # (Bp, 1024) f32, (1, 1024) f32
                w5_ref, b5_ref,                  # (1024, 512) bf16, (1, 512) f32
                w6_ref, b6_ref,                  # (512, 512)  bf16, (1, 512) f32
                wf_ref, bfc_ref,                 # (512, NCp)  bf16, (1, NCp) f32
                out_ref):                        # (Bp, NCp) f32
    bf16 = jnp.bfloat16
    f = jnp.maximum(f_ref[...] + b4_ref[...], 0.0)            # deferred mlp2 epilogue
    h = jnp.dot(f.astype(bf16), w5_ref[...], preferred_element_type=jnp.float32)
    h = jnp.maximum(h + b5_ref[...], 0.0)                     # BN+ReLU (+dropout=id)
    h = jnp.dot(h.astype(bf16), w6_ref[...], preferred_element_type=jnp.float32)
    h = jnp.maximum(h + b6_ref[...], 0.0)
    out_ref[...] = (jnp.dot(h.astype(bf16), wf_ref[...],
                            preferred_element_type=jnp.float32) + bfc_ref[...])


# ----------------------------------------------------------------------------
# Parameter init (deterministic, synthetic).  Canonical (C_in, C_out) / (1, C)
# orientation; prepare_params transposes / folds / casts once.
# ----------------------------------------------------------------------------
def init_params(key, in_channels, num_classes):
    ks = jax.random.split(key, 16)

    def w(k, shape, fan_in):
        return (jax.random.normal(k, shape, jnp.float32) / jnp.sqrt(fan_in)).astype(jnp.float32)

    def bn(kg, kb, c):
        gamma = 1.0 + 0.1 * jax.random.normal(kg, (1, c), jnp.float32)
        beta = 0.1 * jax.random.normal(kb, (1, c), jnp.float32)
        # eval-mode BN with running_mean=0, running_var=1 folded to affine
        scale = gamma / jnp.sqrt(1.0 + BN_EPS)
        bias = beta
        return scale, bias

    p = {}
    p["w1"] = w(ks[0], (in_channels, 64), in_channels)
    p["s1"], p["b1"] = bn(ks[1], ks[2], 64)
    p["w2"] = w(ks[3], (64, 64), 64)
    p["s2"], p["b2"] = bn(ks[4], ks[5], 64)
    p["w3"] = w(ks[6], (64, 128), 64)
    p["s3"], p["b3"] = bn(ks[7], ks[8], 128)
    p["w4"] = w(ks[9], (128, 1024), 128)
    p["s4"], p["b4"] = bn(ks[10], ks[11], 1024)
    p["w5"] = w(ks[12], (1024, 512), 1024)
    p["s5"], p["b5"] = bn(ks[13], ks[14], 512)
    p["w6"] = w(ks[15], (512, 512), 512)
    k2 = jax.random.split(jax.random.fold_in(key, 7), 4)
    p["s6"], p["b6"] = bn(k2[0], k2[1], 512)
    p["wf"] = w(k2[2], (512, num_classes), 512)
    p["bf"] = 0.1 * jax.random.normal(k2[3], (1, num_classes), jnp.float32)
    return p


# ----------------------------------------------------------------------------
# One-time parameter preparation (hoisted out of the per-call path):
# transpose to channels-first, fold BN scales into weights, cast MXU weights
# to bf16, pad the fc weight/bias to 128 lanes.
# ----------------------------------------------------------------------------
def prepare_params(params):
    bf16 = jnp.bfloat16
    nc = params["wf"].shape[1]
    ncp = _round_up(nc, 128)
    prep = {
        "w1t": (params["w1"].T * params["s1"].T).astype(jnp.float32),  # (64, Cin)
        "b1c": params["b1"].T,                                         # (64, 1)
        "w2t": (params["w2"].T * params["s2"].T).astype(bf16),         # (64, 64)
        "b2c": params["b2"].T,                                         # (64, 1)
        "w3t": (params["w3"].T * params["s3"].T).astype(bf16),         # (128, 64)
        "b3c": params["b3"].T,                                         # (128, 1)
        "w4t": (params["w4"].T * params["s4"].T).astype(bf16),         # (1024, 128)
        "b4r": params["b4"],                                           # (1, 1024)
        "w5": (params["w5"] * params["s5"]).astype(bf16),              # (1024, 512)
        "b5r": params["b5"],                                           # (1, 512)
        "w6": (params["w6"] * params["s6"]).astype(bf16),              # (512, 512)
        "b6r": params["b6"],                                           # (1, 512)
        "wf": jnp.pad(params["wf"], ((0, 0), (0, ncp - nc))).astype(bf16),
        "bfc": jnp.pad(params["bf"], ((0, 0), (0, ncp - nc))),
    }
    return prep


# ----------------------------------------------------------------------------
# Forward wrapper.
# ----------------------------------------------------------------------------
@functools.partial(jax.jit, static_argnames="num_classes")
def pointnet_forward(x_ncl, prep, *, num_classes):
    """x_ncl: (B, C_in, N) float32, matching the PyTorch NCL input layout."""
    B, Cin, N = x_ncl.shape
    tile_n, n_pad = _pick_tiling(N)
    n_tiles = n_pad // tile_n
    if n_pad != N:
        # Edge-replicate padded points: duplicates of a real point produce the
        # same per-point feature, so the max-pool is unaffected (no masking).
        x_ncl = jnp.pad(x_ncl, ((0, 0), (0, 0), (0, n_pad - N)), mode="edge")

    def full(arr):
        return pl.BlockSpec(arr.shape, lambda b, t: (0,) * arr.ndim)

    feat = pl.pallas_call(
        functools.partial(point_feat_kernel, cin=Cin),
        out_shape=jax.ShapeDtypeStruct((B, 1, 1024), jnp.float32),
        grid=(B, n_tiles),
        in_specs=[
            pl.BlockSpec((1, Cin, tile_n), lambda b, t: (b, 0, t)),
            full(prep["w1t"]), full(prep["b1c"]),
            full(prep["w2t"]), full(prep["b2c"]),
            full(prep["w3t"]), full(prep["b3c"]),
            full(prep["w4t"]),
        ],
        out_specs=pl.BlockSpec((1, 1, 1024), lambda b, t: (b, 0, 0)),
        scratch_shapes=[pltpu.VMEM((1024, 128), jnp.float32)],
        compiler_params=pltpu.CompilerParams(
            dimension_semantics=("parallel", "arbitrary"),
            vmem_limit_bytes=28 * 1024 * 1024),
    )(x_ncl,
      prep["w1t"], prep["b1c"],
      prep["w2t"], prep["b2c"],
      prep["w3t"], prep["b3c"],
      prep["w4t"])
    feat = feat.reshape(B, 1024)

    # Classifier head: pad batch to 8 sublanes (classes already padded to 128
    # lanes in prepare_params) so the whole-batch kernel uses dense stores.
    bp = _round_up(B, 8)
    ncp = prep["wf"].shape[1]
    feat_p = jnp.pad(feat, ((0, bp - B), (0, 0)))

    vmem_spec = pl.BlockSpec(memory_space=pltpu.MemorySpace.VMEM)
    logits_p = pl.pallas_call(
        head_kernel,
        out_shape=jax.ShapeDtypeStruct((bp, ncp), jnp.float32),
        in_specs=[vmem_spec] * 8,
        out_specs=vmem_spec,
    )(feat_p, prep["b4r"],
      prep["w5"], prep["b5r"],
      prep["w6"], prep["b6r"],
      prep["wf"], prep["bfc"])
    return logits_p[:B, :num_classes]


# ----------------------------------------------------------------------------
# Pure-JAX reference (same BN-fold + bf16 matmul numerics as the kernels).
# ----------------------------------------------------------------------------
def pointnet_reference(x_ncl, params):
    bf16 = jnp.bfloat16
    relu = lambda v: jnp.maximum(v, 0.0)
    x = jnp.transpose(x_ncl, (0, 2, 1))                      # (B, N, Cin)
    h = jnp.einsum("bnk,kc->bnc", x, params["w1"] * params["s1"],
                   precision=jax.lax.Precision.HIGHEST)
    h = relu(h + params["b1"])

    def layer(v, w, s, b):
        y = jnp.dot(v.astype(bf16), (w * s).astype(bf16),
                    preferred_element_type=jnp.float32)
        return relu(y + b)

    h = layer(h, params["w2"], params["s2"], params["b2"])
    h = layer(h, params["w3"], params["s3"], params["b3"])
    h = layer(h, params["w4"], params["s4"], params["b4"])
    f = jnp.max(h, axis=1)                                   # (B, 1024)
    h = layer(f, params["w5"], params["s5"], params["b5"])
    h = layer(h, params["w6"], params["s6"], params["b6"])
    return (jnp.dot(h.astype(bf16), params["wf"].astype(bf16),
                    preferred_element_type=jnp.float32) + params["bf"])


if __name__ == "__main__":
    key = jax.random.PRNGKey(0)
    k_in, k_par = jax.random.split(key)

    # N=1200 is NOT a multiple of 128: exercises the edge-pad path and gives
    # 5 point-tiles of 256 per batch row (multi-tile running-max accumulation).
    B, C_IN, N_PTS, NUM_CLASSES = 2, 3, 1200, 10
    x = jax.random.normal(k_in, (B, C_IN, N_PTS), jnp.float32)   # PyTorch NCL input
    params = init_params(k_par, C_IN, NUM_CLASSES)
    prep = prepare_params(params)                                # one-time prep

    out = jax.block_until_ready(pointnet_forward(x, prep, num_classes=NUM_CLASSES))
    ref = pointnet_reference(x, params)

    assert out.shape == (B, NUM_CLASSES)
    err = float(jnp.max(jnp.abs(out - ref)))
    assert jnp.allclose(out, ref, atol=2e-2, rtol=2e-2), (
        f"mismatch vs reference, max abs err = {err}")
    print("KERNEL_OK")
</pallas_src>

<mosaic_0001>
module attributes {stable_mosaic.version = 11 : i64} {
  func.func @point_feat_kernel(%arg0: i32, %arg1: i32, %arg2: memref<1x3x256xf32, #tpu.memory_space<vmem>>, %arg3: memref<64x3xf32, #tpu.memory_space<vmem>>, %arg4: memref<64x1xf32, #tpu.memory_space<vmem>>, %arg5: memref<64x64xbf16, #tpu.memory_space<vmem>>, %arg6: memref<64x1xf32, #tpu.memory_space<vmem>>, %arg7: memref<128x64xbf16, #tpu.memory_space<vmem>>, %arg8: memref<128x1xf32, #tpu.memory_space<vmem>>, %arg9: memref<1024x128xbf16, #tpu.memory_space<vmem>>, %arg10: memref<1x1x1024xf32, #tpu.memory_space<vmem>>, %arg11: memref<1024x128xf32, #tpu.memory_space<vmem>>) attributes {dimension_semantics = [#tpu.dimension_semantics<parallel>, #tpu.dimension_semantics<arbitrary>], iteration_bounds = array<i64: 2, 5>, scalar_prefetch = 0 : i64, scratch_operands = 1 : i64, tpu.core_type = #tpu.core_type<tc>, window_params = [{transform_indices = @transform_0, window_bounds = array<i64: 1, 3, 256>}, {pipeline_mode = #tpu.pipeline_mode<synchronous>, transform_indices = @transform_1, window_bounds = array<i64: 64, 3>}, {pipeline_mode = #tpu.pipeline_mode<synchronous>, transform_indices = @transform_2, window_bounds = array<i64: 64, 1>}, {pipeline_mode = #tpu.pipeline_mode<synchronous>, transform_indices = @transform_3, window_bounds = array<i64: 64, 64>}, {pipeline_mode = #tpu.pipeline_mode<synchronous>, transform_indices = @transform_4, window_bounds = array<i64: 64, 1>}, {pipeline_mode = #tpu.pipeline_mode<synchronous>, transform_indices = @transform_5, window_bounds = array<i64: 128, 64>}, {pipeline_mode = #tpu.pipeline_mode<synchronous>, transform_indices = @transform_6, window_bounds = array<i64: 128, 1>}, {pipeline_mode = #tpu.pipeline_mode<synchronous>, transform_indices = @transform_7, window_bounds = array<i64: 1024, 128>}, {transform_indices = @transform_8, window_bounds = array<i64: 1, 1, 1024>}]} {
    %c0_i32 = arith.constant 0 : i32
    %0 = arith.cmpi eq, %arg1, %c0_i32 : i32
    %1 = arith.extui %0 : i1 to i32
    %c0_i32_0 = arith.constant 0 : i32
    %2 = arith.cmpi ne, %1, %c0_i32_0 : i32
    scf.if %2 {
      %cst_29 = arith.constant 0xFF800000 : f32
      %55 = vector.broadcast %cst_29 : f32 to vector<1024x128xf32>
      %c0_30 = arith.constant 0 : index
      %c0_31 = arith.constant 0 : index
      %56 = vector.load %arg11[%c0_30, %c0_31] : memref<1024x128xf32, #tpu.memory_space<vmem>>, vector<1024x128xf32>
      tpu.vector_store %arg11[%c0_30, %c0_31], %55 {strides = array<i32>} : memref<1024x128xf32, #tpu.memory_space<vmem>>, vector<1024x128xf32>,
    } else {
    }
    %c0 = arith.constant 0 : index
    %c0_1 = arith.constant 0 : index
    %c0_2 = arith.constant 0 : index
    %3 = vector.load %arg2[%c0, %c0_1, %c0_2] : memref<1x3x256xf32, #tpu.memory_space<vmem>>, vector<1x3x256xf32>
    %4 = vector.shape_cast %3 : vector<1x3x256xf32> to vector<3x256xf32>
    %c0_3 = arith.constant 0 : index
    %c0_4 = arith.constant 0 : index
    %5 = vector.load %arg3[%c0_3, %c0_4] : memref<64x3xf32, #tpu.memory_space<vmem>>, vector<64x1xf32>
    %6 = vector.extract_strided_slice %4 {offsets = [0, 0], sizes = [1, 256], strides = [1, 1]} : vector<3x256xf32> to vector<1x256xf32>
    %7 = vector.broadcast %5 : vector<64x1xf32> to vector<64x256xf32>
    %8 = vector.broadcast %6 : vector<1x256xf32> to vector<64x256xf32>
    %9 = arith.mulf %7, %8 : vector<64x256xf32>
    %c0_5 = arith.constant 0 : index
    %c1 = arith.constant 1 : index
    %10 = vector.load %arg3[%c0_5, %c1] : memref<64x3xf32, #tpu.memory_space<vmem>>, vector<64x1xf32>
    %11 = vector.extract_strided_slice %4 {offsets = [1, 0], sizes = [1, 256], strides = [1, 1]} : vector<3x256xf32> to vector<1x256xf32>
    %12 = vector.broadcast %10 : vector<64x1xf32> to vector<64x256xf32>
    %13 = vector.broadcast %11 : vector<1x256xf32> to vector<64x256xf32>
    %14 = arith.mulf %12, %13 : vector<64x256xf32>
    %15 = arith.addf %9, %14 : vector<64x256xf32>
    %c0_6 = arith.constant 0 : index
    %c2 = arith.constant 2 : index
    %16 = vector.load %arg3[%c0_6, %c2] : memref<64x3xf32, #tpu.memory_space<vmem>>, vector<64x1xf32>
    %17 = vector.extract_strided_slice %4 {offsets = [2, 0], sizes = [1, 256], strides = [1, 1]} : vector<3x256xf32> to vector<1x256xf32>
    %18 = vector.broadcast %16 : vector<64x1xf32> to vector<64x256xf32>
    %19 = vector.broadcast %17 : vector<1x256xf32> to vector<64x256xf32>
    %20 = arith.mulf %18, %19 : vector<64x256xf32>
    %21 = arith.addf %15, %20 : vector<64x256xf32>
    %c0_7 = arith.constant 0 : index
    %c0_8 = arith.constant 0 : index
    %22 = vector.load %arg4[%c0_7, %c0_8] : memref<64x1xf32, #tpu.memory_space<vmem>>, vector<64x1xf32>
    %23 = vector.broadcast %22 : vector<64x1xf32> to vector<64x256xf32>
    %24 = arith.addf %21, %23 : vector<64x256xf32>
    %cst = arith.constant 0.000000e+00 : f32
    %25 = vector.broadcast %cst : f32 to vector<64x256xf32>
    %26 = arith.maximumf %24, %25 : vector<64x256xf32>
    %c0_9 = arith.constant 0 : index
    %c0_10 = arith.constant 0 : index
    %27 = vector.load %arg5[%c0_9, %c0_10] : memref<64x64xbf16, #tpu.memory_space<vmem>>, vector<64x64xbf16>
    %28 = arith.truncf %26 : vector<64x256xf32> to vector<64x256xbf16>
    %cst_11 = arith.constant dense<0.000000e+00> : vector<64x256xf32>
    %29 = tpu.matmul %27, %28, %cst_11 {dimension_numbers = #tpu.dot_dimension_numbers<[1], [0], [0], [1], [0, 0, 1, 1], [], []>} : vector<64x64xbf16>, vector<64x256xbf16>, vector<64x256xf32> -> vector<64x256xf32>
    %c0_12 = arith.constant 0 : index
    %c0_13 = arith.constant 0 : index
    %30 = vector.load %arg6[%c0_12, %c0_13] : memref<64x1xf32, #tpu.memory_space<vmem>>, vector<64x1xf32>
    %31 = vector.broadcast %30 : vector<64x1xf32> to vector<64x256xf32>
    %32 = arith.addf %29, %31 : vector<64x256xf32>
    %cst_14 = arith.constant 0.000000e+00 : f32
    %33 = vector.broadcast %cst_14 : f32 to vector<64x256xf32>
    %34 = arith.maximumf %32, %33 : vector<64x256xf32>
    %c0_15 = arith.constant 0 : index
    %c0_16 = arith.constant 0 : index
    %35 = vector.load %arg7[%c0_15, %c0_16] : memref<128x64xbf16, #tpu.memory_space<vmem>>, vector<128x64xbf16>
    %36 = arith.truncf %34 : vector<64x256xf32> to vector<64x256xbf16>
    %cst_17 = arith.constant dense<0.000000e+00> : vector<128x256xf32>
    %37 = tpu.matmul %35, %36, %cst_17 {dimension_numbers = #tpu.dot_dimension_numbers<[1], [0], [0], [1], [0, 0, 1, 1], [], []>} : vector<128x64xbf16>, vector<64x256xbf16>, vector<128x256xf32> -> vector<128x256xf32>
    %c0_18 = arith.constant 0 : index
    %c0_19 = arith.constant 0 : index
    %38 = vector.load %arg8[%c0_18, %c0_19] : memref<128x1xf32, #tpu.memory_space<vmem>>, vector<128x1xf32>
    %39 = vector.broadcast %38 : vector<128x1xf32> to vector<128x256xf32>
    %40 = arith.addf %37, %39 : vector<128x256xf32>
    %cst_20 = arith.constant 0.000000e+00 : f32
    %41 = vector.broadcast %cst_20 : f32 to vector<128x256xf32>
    %42 = arith.maximumf %40, %41 : vector<128x256xf32>
    %c0_21 = arith.constant 0 : index
    %c0_22 = arith.constant 0 : index
    %43 = vector.load %arg9[%c0_21, %c0_22] : memref<1024x128xbf16, #tpu.memory_space<vmem>>, vector<1024x128xbf16>
    %44 = arith.truncf %42 : vector<128x256xf32> to vector<128x256xbf16>
    %cst_23 = arith.constant dense<0.000000e+00> : vector<1024x256xf32>
    %45 = tpu.matmul %43, %44, %cst_23 {dimension_numbers = #tpu.dot_dimension_numbers<[1], [0], [0], [1], [0, 0, 1, 1], [], []>} : vector<1024x128xbf16>, vector<128x256xbf16>, vector<1024x256xf32> -> vector<1024x256xf32>
    %46 = vector.extract_strided_slice %45 {offsets = [0, 0], sizes = [1024, 128], strides = [1, 1]} : vector<1024x256xf32> to vector<1024x128xf32>
    %47 = vector.extract_strided_slice %45 {offsets = [0, 128], sizes = [1024, 128], strides = [1, 1]} : vector<1024x256xf32> to vector<1024x128xf32>
    %48 = arith.maximumf %46, %47 : vector<1024x128xf32>
    %c0_24 = arith.constant 0 : index
    %c0_25 = arith.constant 0 : index
    %49 = vector.load %arg11[%c0_24, %c0_25] : memref<1024x128xf32, #tpu.memory_space<vmem>>, vector<1024x128xf32>
    %50 = arith.maximumf %49, %48 : vector<1024x128xf32>
    %c0_26 = arith.constant 0 : index
    %c0_27 = arith.constant 0 : index
    %51 = vector.load %arg11[%c0_26, %c0_27] : memref<1024x128xf32, #tpu.memory_space<vmem>>, vector<1024x128xf32>
    tpu.vector_store %arg11[%c0_26, %c0_27], %50 {strides = array<i32>} : memref<1024x128xf32, #tpu.memory_space<vmem>>, vector<1024x128xf32>,
    %c4_i32 = arith.constant 4 : i32
    %52 = arith.cmpi eq, %arg1, %c4_i32 : i32
    %53 = arith.extui %52 : i1 to i32
    %c0_i32_28 = arith.constant 0 : i32
    %54 = arith.cmpi ne, %53, %c0_i32_28 : i32
    scf.if %54 {
      %c0_29 = arith.constant 0 : index
      %c0_30 = arith.constant 0 : index
      %55 = vector.load %arg11[%c0_29, %c0_30] : memref<1024x128xf32, #tpu.memory_space<vmem>>, vector<1024x128xf32>
      %56 = tpu.transpose %55, [1, 0] : vector<1024x128xf32> -> vector<128x1024xf32>
      %cst_31 = arith.constant dense<0xFF800000> : vector<1024xf32>
      %57 = vector.multi_reduction <maximumf>, %56, %cst_31 [0] : vector<128x1024xf32> to vector<1024xf32>
      %58 = vector.shape_cast %57 : vector<1024xf32> to vector<1x1024xf32>
      %c0_32 = arith.constant 0 : index
      %c0_33 = arith.constant 0 : index
      %c0_34 = arith.constant 0 : index
      %59 = vector.load %arg10[%c0_32, %c0_33, %c0_34] : memref<1x1x1024xf32, #tpu.memory_space<vmem>>, vector<1x1x1024xf32>
      %60 = vector.shape_cast %59 : vector<1x1x1024xf32> to vector<1x1024xf32>
      %61 = vector.shape_cast %58 : vector<1x1024xf32> to vector<1x1x1024xf32>
      tpu.vector_store %arg10[%c0_32, %c0_33, %c0_34], %61 {strides = array<i32>} : memref<1x1x1024xf32, #tpu.memory_space<vmem>>, vector<1x1x1024xf32>,
    } else {
    }
    return
  }
  func.func @transform_0(%arg0: i32, %arg1: i32) -> (i32, i32, i32) {
    %c0_i32 = arith.constant 0 : i32
    %c0_i32_0 = arith.constant 0 : i32
    return %arg0, %c0_i32, %arg1 : i32, i32, i32
  }
  func.func @transform_1(%arg0: i32, %arg1: i32) -> (i32, i32) {
    %c0_i32 = arith.constant 0 : i32
    %c0_i32_0 = arith.constant 0 : i32
    %c0_i32_1 = arith.constant 0 : i32
    return %c0_i32, %c0_i32_0 : i32, i32
  }
  func.func @transform_2(%arg0: i32, %arg1: i32) -> (i32, i32) {
    %c0_i32 = arith.constant 0 : i32
    %c0_i32_0 = arith.constant 0 : i32
    %c0_i32_1 = arith.constant 0 : i32
    return %c0_i32, %c0_i32_0 : i32, i32
  }
  func.func @transform_3(%arg0: i32, %arg1: i32) -> (i32, i32) {
    %c0_i32 = arith.constant 0 : i32
    %c0_i32_0 = arith.constant 0 : i32
    %c0_i32_1 = arith.constant 0 : i32
    return %c0_i32, %c0_i32_0 : i32, i32
  }
  func.func @transform_4(%arg0: i32, %arg1: i32) -> (i32, i32) {
    %c0_i32 = arith.constant 0 : i32
    %c0_i32_0 = arith.constant 0 : i32
    %c0_i32_1 = arith.constant 0 : i32
    return %c0_i32, %c0_i32_0 : i32, i32
  }
  func.func @transform_5(%arg0: i32, %arg1: i32) -> (i32, i32) {
    %c0_i32 = arith.constant 0 : i32
    %c0_i32_0 = arith.constant 0 : i32
    %c0_i32_1 = arith.constant 0 : i32
    return %c0_i32, %c0_i32_0 : i32, i32
  }
  func.func @transform_6(%arg0: i32, %arg1: i32) -> (i32, i32) {
    %c0_i32 = arith.constant 0 : i32
    %c0_i32_0 = arith.constant 0 : i32
    %c0_i32_1 = arith.constant 0 : i32
    return %c0_i32, %c0_i32_0 : i32, i32
  }
  func.func @transform_7(%arg0: i32, %arg1: i32) -> (i32, i32) {
    %c0_i32 = arith.constant 0 : i32
    %c0_i32_0 = arith.constant 0 : i32
    %c0_i32_1 = arith.constant 0 : i32
    return %c0_i32, %c0_i32_0 : i32, i32
  }
  func.func @transform_8(%arg0: i32, %arg1: i32) -> (i32, i32, i32) {
    %c0_i32 = arith.constant 0 : i32
    %c0_i32_0 = arith.constant 0 : i32
    %c0_i32_1 = arith.constant 0 : i32
    return %arg0, %c0_i32, %c0_i32_0 : i32, i32, i32
  }
}

module attributes {stable_mosaic.version = 11 : i64} {
  func.func @head_kernel(%arg0: memref<8x1024xf32, #tpu.memory_space<vmem>>, %arg1: memref<1x1024xf32, #tpu.memory_space<vmem>>, %arg2: memref<1024x512xbf16, #tpu.memory_space<vmem>>, %arg3: memref<1x512xf32, #tpu.memory_space<vmem>>, %arg4: memref<512x512xbf16, #tpu.memory_space<vmem>>, %arg5: memref<1x512xf32, #tpu.memory_space<vmem>>, %arg6: memref<512x128xbf16, #tpu.memory_space<vmem>>, %arg7: memref<1x128xf32, #tpu.memory_space<vmem>>, %arg8: memref<8x128xf32, #tpu.memory_space<vmem>>) attributes {dimension_semantics = [], scalar_prefetch = 0 : i64, scratch_operands = 0 : i64, tpu.core_type = #tpu.core_type<tc>} {
    %c0 = arith.constant 0 : index
    %c0_0 = arith.constant 0 : index
    %0 = vector.load %arg0[%c0, %c0_0] : memref<8x1024xf32, #tpu.memory_space<vmem>>, vector<8x1024xf32>
    %c0_1 = arith.constant 0 : index
    %c0_2 = arith.constant 0 : index
    %1 = vector.load %arg1[%c0_1, %c0_2] : memref<1x1024xf32, #tpu.memory_space<vmem>>, vector<1x1024xf32>
    %2 = vector.broadcast %1 : vector<1x1024xf32> to vector<8x1024xf32>
    %3 = arith.addf %0, %2 : vector<8x1024xf32>
    %cst = arith.constant 0.000000e+00 : f32
    %4 = vector.broadcast %cst : f32 to vector<8x1024xf32>
    %5 = arith.maximumf %3, %4 : vector<8x1024xf32>
    %6 = arith.truncf %5 : vector<8x1024xf32> to vector<8x1024xbf16>
    %c0_3 = arith.constant 0 : index
    %c0_4 = arith.constant 0 : index
    %7 = vector.load %arg2[%c0_3, %c0_4] : memref<1024x512xbf16, #tpu.memory_space<vmem>>, vector<1024x512xbf16>
    %cst_5 = arith.constant dense<0.000000e+00> : vector<8x512xf32>
    %8 = tpu.matmul %6, %7, %cst_5 {dimension_numbers = #tpu.dot_dimension_numbers<[1], [0], [0], [1], [0, 0, 1, 1], [], []>} : vector<8x1024xbf16>, vector<1024x512xbf16>, vector<8x512xf32> -> vector<8x512xf32>
    %c0_6 = arith.constant 0 : index
    %c0_7 = arith.constant 0 : index
    %9 = vector.load %arg3[%c0_6, %c0_7] : memref<1x512xf32, #tpu.memory_space<vmem>>, vector<1x512xf32>
    %10 = vector.broadcast %9 : vector<1x512xf32> to vector<8x512xf32>
    %11 = arith.addf %8, %10 : vector<8x512xf32>
    %cst_8 = arith.constant 0.000000e+00 : f32
    %12 = vector.broadcast %cst_8 : f32 to vector<8x512xf32>
    %13 = arith.maximumf %11, %12 : vector<8x512xf32>
    %14 = arith.truncf %13 : vector<8x512xf32> to vector<8x512xbf16>
    %c0_9 = arith.constant 0 : index
    %c0_10 = arith.constant 0 : index
    %15 = vector.load %arg4[%c0_9, %c0_10] : memref<512x512xbf16, #tpu.memory_space<vmem>>, vector<512x512xbf16>
    %cst_11 = arith.constant dense<0.000000e+00> : vector<8x512xf32>
    %16 = tpu.matmul %14, %15, %cst_11 {dimension_numbers = #tpu.dot_dimension_numbers<[1], [0], [0], [1], [0, 0, 1, 1], [], []>} : vector<8x512xbf16>, vector<512x512xbf16>, vector<8x512xf32> -> vector<8x512xf32>
    %c0_12 = arith.constant 0 : index
    %c0_13 = arith.constant 0 : index
    %17 = vector.load %arg5[%c0_12, %c0_13] : memref<1x512xf32, #tpu.memory_space<vmem>>, vector<1x512xf32>
    %18 = vector.broadcast %17 : vector<1x512xf32> to vector<8x512xf32>
    %19 = arith.addf %16, %18 : vector<8x512xf32>
    %cst_14 = arith.constant 0.000000e+00 : f32
    %20 = vector.broadcast %cst_14 : f32 to vector<8x512xf32>
    %21 = arith.maximumf %19, %20 : vector<8x512xf32>
    %22 = arith.truncf %21 : vector<8x512xf32> to vector<8x512xbf16>
    %c0_15 = arith.constant 0 : index
    %c0_16 = arith.constant 0 : index
    %23 = vector.load %arg6[%c0_15, %c0_16] : memref<512x128xbf16, #tpu.memory_space<vmem>>, vector<512x128xbf16>
    %cst_17 = arith.constant dense<0.000000e+00> : vector<8x128xf32>
    %24 = tpu.matmul %22, %23, %cst_17 {dimension_numbers = #tpu.dot_dimension_numbers<[1], [0], [0], [1], [0, 0, 1, 1], [], []>} : vector<8x512xbf16>, vector<512x128xbf16>, vector<8x128xf32> -> vector<8x128xf32>
    %c0_18 = arith.constant 0 : index
    %c0_19 = arith.constant 0 : index
    %25 = vector.load %arg7[%c0_18, %c0_19] : memref<1x128xf32, #tpu.memory_space<vmem>>, vector<1x128xf32>
    %26 = vector.broadcast %25 : vector<1x128xf32> to vector<8x128xf32>
    %27 = arith.addf %24, %26 : vector<8x128xf32>
    %c0_20 = arith.constant 0 : index
    %c0_21 = arith.constant 0 : index
    %28 = vector.load %arg8[%c0_20, %c0_21] : memref<8x128xf32, #tpu.memory_space<vmem>>, vector<8x128xf32>
    tpu.vector_store %arg8[%c0_20, %c0_21], %27 {strides = array<i32>} : memref<8x128xf32, #tpu.memory_space<vmem>>, vector<8x128xf32>,
    return
  }
}

</mosaic_0001>

<bundles_post_ra>
// kernel: pointnet_forward.3
= control target key start
LH: loop header
LB: loop body
LE: loop exit
PB: predicated region body
PF: predicated region fallthrough
CT: control target
= control target key end

     0   :  { %13 = vsyncpa [#allocation3], 0  ;;  %s4417_s27 = smov [#allocation2]   ;;  %s5091_s0 = inlined_call_operand.vmem [shape: f32[8,1024], index: 0, kind: input, shape index: {}]   ;;  %s5092_s1 = inlined_call_operand.vmem [shape: f32[1,1024], index: 1, kind: input, shape index: {}]   ;;  %s5093_s2 = inlined_call_operand.hbm [shape: bf16[1024,512], index: 2, kind: input, shape index: {}]   ;;  %s5094_s3 = inlined_call_operand.vmem [shape: f32[1,512], index: 3, kind: input, shape index: {}]   ;;  %s5095_s4 = inlined_call_operand.vmem [shape: bf16[512,512], index: 4, kind: input, shape index: {}]   ;;  %s5096_s5 = inlined_call_operand.vmem [shape: f32[1,512], index: 5, kind: input, shape index: {}]   ;;  %s5097_s6 = inlined_call_operand.vmem [shape: bf16[512,128], index: 6, kind: input, shape index: {}]   ;;  %s5098_s7 = inlined_call_operand.vmem [shape: f32[1,128], index: 7, kind: input, shape index: {}]   ;;  %s5099_s8 = inlined_call_operand.vmem [shape: f32[8,128], index: 8, kind: output, shape index: {}]  }
   0x1   :  { %s23_s28 = sshll.u32 %s4417_s27, 4  ;;  %s24_s28 = int_to_ptr.vmem [resolvable:$true] %s23_s28 }
   0x2   :  { %s4403_s29 = scalar_lea.vmem %s24_s28, 32768  ;;  %p4408_p1 = scmp.lt.s32.totalorder %s24_s28, %s24_s28 }
   0x3   :  { %p4404_p0 = scmp.ne.s32.totalorder %s24_s28, %s4403_s29  ;;  %p4409_p2 = scmp.lt.s32.totalorder %s4403_s29, %s4403_s29 }
   0x5   :  { %p4410_p3 = por %p4409_p2, %p4408_p1 }
   0x7   :  { %p4411_p4 = pnand %p4410_p3, %p4404_p0 }
   0x9   :  { %4414 = shalt.err (!%p4411_p4)
}
   0xa   :  { %s4418_s30 = smov 256   ;;  %s4419_s9 = smov 16  }
   0xb   :  { %29 = dma.hbm_to_vmem [thread:$0]  %s5093_s2, 32768, %s24_s28, [#allocation3], %s4418_s30, %s4418_s30, %s4419_s9  }
   0xc   :  { %4415 = dma.done.wait [#allocation3], 32768  }
   0xd   :  { %4416 = vsyncadd [#allocation3], 4294934528  ;;  %v3787_v0 = vld [vmem:[#allocation2 + $0xe4] ss:$16 sps:$4 sm:$0xff]   ;;  %v3791_v2 = vld [vmem:[#allocation2 + $0xe0] ss:$16 sps:$4 sm:$0xff]   ;;  %v54_v37 = vlaneseq }
   0xe   :  { %v3789_v1 = vld [vmem:[#allocation2 + $0x2e4] ss:$16 sps:$4 sm:$0xff]   ;;  %1676 = vmatprep.subr.bf16.mxu0 %v3787_v0  ;;  %v3792_v3 = vld [vmem:[#allocation2 + $0x2e0] ss:$16 sps:$4 sm:$0xff]   ;;  %v45_v52 = vld [vmem:[%s5091_s0 + $0x8] sm:$0xff] }
   0xf   :  { %1717 = vmatprep.subr.bf16.mxu1 %v3789_v1  ;;  %v3793_v4 = vld [vmem:[#allocation2 + $0xc4] ss:$16 sps:$4 sm:$0xff]   ;;  %1677 = vmatpush1.bf16.msra.mxu0 %v3791_v2  ;;  %v3797_v6 = vld [vmem:[#allocation2 + $0xc0] ss:$16 sps:$4 sm:$0xff]   ;;  %v4468_v42 = vshrl.u32 %v54_v37, 7  ;;  %v47_v54 = vld [vmem:[%s5091_s0 + $0x18] sm:$0xff] }
  0x10   :  { %1718 = vmatpush1.bf16.msra.mxu1 %v3792_v3  ;;  %v3795_v5 = vld [vmem:[#allocation2 + $0x2c4] ss:$16 sps:$4 sm:$0xff]   ;;  %1678 = vmatprep.subr.bf16.mxu0 %v3793_v4  ;;  %v3798_v7 = vld [vmem:[#allocation2 + $0x2c0] ss:$16 sps:$4 sm:$0xff]  }
  0x11   :  { %1719 = vmatprep.subr.bf16.mxu1 %v3795_v5  ;;  %v3799_v8 = vld [vmem:[#allocation2 + $0xa4] ss:$16 sps:$4 sm:$0xff]   ;;  %v3803_v10 = vld [vmem:[#allocation2 + $0xa0] ss:$16 sps:$4 sm:$0xff]   ;;  %v4471_v47 = vsub.s32 1, %v4468_v42  ;;  %v4474_v48 = vsub.s32 3, %v4468_v42 }
  0x12   :  { %v3801_v9 = vld [vmem:[#allocation2 + $0x2a4] ss:$16 sps:$4 sm:$0xff]   ;;  %v3804_v11 = vld [vmem:[#allocation2 + $0x2a0] ss:$16 sps:$4 sm:$0xff]   ;;  %v72_v51 = vsub.s32 4, %v4468_v42  ;;  %v80_v55 = vsub.s32 6, %v4468_v42 }
  0x13   :  { %1679 = vmatpush1.bf16.msra.mxu0 %v3797_v6  ;;  %v3805_v12 = vld [vmem:[#allocation2 + $0x84] ss:$16 sps:$4 sm:$0xff]   ;;  %v3809_v14 = vld [vmem:[#allocation2 + $0x80] ss:$16 sps:$4 sm:$0xff]   ;;  %v4497_v1 = vsub.s32 0, %v4468_v42  ;;  %v4500_v2 = vsub.s32 2, %v4468_v42 }
  0x14   :  { %1720 = vmatpush1.bf16.msra.mxu1 %v3798_v7  ;;  %1680 = vmatprep.subr.bf16.mxu0 %v3799_v8  ;;  %v3807_v13 = vld [vmem:[#allocation2 + $0x284] ss:$16 sps:$4 sm:$0xff]   ;;  %v3810_v15 = vld [vmem:[#allocation2 + $0x280] ss:$16 sps:$4 sm:$0xff]  }
  0x15   :  { %1721 = vmatprep.subr.bf16.mxu1 %v3801_v9  ;;  %v3811_v16 = vld [vmem:[#allocation2 + $0x64] ss:$16 sps:$4 sm:$0xff]   ;;  %v3815_v18 = vld [vmem:[#allocation2 + $0x60] ss:$16 sps:$4 sm:$0xff]  }
  0x16   :  { %v3813_v17 = vld [vmem:[#allocation2 + $0x264] ss:$16 sps:$4 sm:$0xff]   ;;  %v3816_v19 = vld [vmem:[#allocation2 + $0x260] ss:$16 sps:$4 sm:$0xff]  }
  0x17   :  { %1681 = vmatpush1.bf16.msra.mxu0 %v3803_v10  ;;  %v3817_v20 = vld [vmem:[#allocation2 + $0x44] ss:$16 sps:$4 sm:$0xff]   ;;  %v3821_v22 = vld [vmem:[#allocation2 + $0x40] ss:$16 sps:$4 sm:$0xff]  }
  0x18   :  { %1722 = vmatpush1.bf16.msra.mxu1 %v3804_v11  ;;  %1682 = vmatprep.subr.bf16.mxu0 %v3805_v12  ;;  %v3819_v21 = vld [vmem:[#allocation2 + $0x244] ss:$16 sps:$4 sm:$0xff]   ;;  %v3822_v23 = vld [vmem:[#allocation2 + $0x240] ss:$16 sps:$4 sm:$0xff]  }
  0x19   :  { %1723 = vmatprep.subr.bf16.mxu1 %v3807_v13  ;;  %v3823_v24 = vld [vmem:[#allocation2 + $0x24] ss:$16 sps:$4 sm:$0xff]   ;;  %v3827_v26 = vld [vmem:[#allocation2 + $0x20] ss:$16 sps:$4 sm:$0xff]  }
  0x1a   :  { %v3825_v25 = vld [vmem:[#allocation2 + $0x224] ss:$16 sps:$4 sm:$0xff]   ;;  %v3828_v27 = vld [vmem:[#allocation2 + $0x220] ss:$16 sps:$4 sm:$0xff]  }
  0x1b   :  { %1683 = vmatpush1.bf16.msra.mxu0 %v3809_v14  ;;  %v3829_v28 = vld [vmem:[#allocation2 + $0x4] ss:$16 sps:$4 sm:$0xff]   ;;  %v3833_v30 = vld [vmem:[#allocation2] ss:$16 sps:$4 sm:$0xff]  }
  0x1c   :  { %1724 = vmatpush1.bf16.msra.mxu1 %v3810_v15  ;;  %1684 = vmatprep.subr.bf16.mxu0 %v3811_v16  ;;  %v3831_v29 = vld [vmem:[#allocation2 + $0x204] ss:$16 sps:$4 sm:$0xff]   ;;  %v3834_v31 = vld [vmem:[#allocation2 + $0x200] ss:$16 sps:$4 sm:$0xff]  }
  0x1d   :  { %1725 = vmatprep.subr.bf16.mxu1 %v3813_v17  ;;  %v3835_v32 = vld [vmem:[#allocation2 + $0x1e4] ss:$16 sps:$4 sm:$0xff]   ;;  %v3839_v34 = vld [vmem:[#allocation2 + $0x1e0] ss:$16 sps:$4 sm:$0xff]  }
  0x1e   :  { %v3837_v33 = vld [vmem:[#allocation2 + $0x3e4] ss:$16 sps:$4 sm:$0xff]   ;;  %v3840_v35 = vld [vmem:[#allocation2 + $0x3e0] ss:$16 sps:$4 sm:$0xff]  }
  0x1f   :  { %1685 = vmatpush1.bf16.msra.mxu0 %v3815_v18  ;;  %v3841_v36 = vld [vmem:[#allocation2 + $0x1c4] ss:$16 sps:$4 sm:$0xff]   ;;  %v3845_v39 = vld [vmem:[#allocation2 + $0x1c0] ss:$16 sps:$4 sm:$0xff]  }
  0x20   :  { %1726 = vmatpush1.bf16.msra.mxu1 %v3816_v19  ;;  %1686 = vmatprep.subr.bf16.mxu0 %v3817_v20  ;;  %v3843_v38 = vld [vmem:[#allocation2 + $0x3c4] ss:$16 sps:$4 sm:$0xff]   ;;  %v3846_v40 = vld [vmem:[#allocation2 + $0x3c0] ss:$16 sps:$4 sm:$0xff]  }
  0x21   :  { %1727 = vmatprep.subr.bf16.mxu1 %v3819_v21  ;;  %v3847_v41 = vld [vmem:[#allocation2 + $0x1a4] ss:$16 sps:$4 sm:$0xff]   ;;  %v3851_v44 = vld [vmem:[#allocation2 + $0x1a0] ss:$16 sps:$4 sm:$0xff]  }
  0x22   :  { %v3849_v43 = vld [vmem:[#allocation2 + $0x3a4] ss:$16 sps:$4 sm:$0xff]   ;;  %v3852_v45 = vld [vmem:[#allocation2 + $0x3a0] ss:$16 sps:$4 sm:$0xff]  }
  0x23   :  { %1687 = vmatpush1.bf16.msra.mxu0 %v3821_v22  ;;  %v3853_v46 = vld [vmem:[#allocation2 + $0x184] ss:$16 sps:$4 sm:$0xff]   ;;  %v3857_v50 = vld [vmem:[#allocation2 + $0x180] ss:$16 sps:$4 sm:$0xff]  }
  0x24   :  { %1728 = vmatpush1.bf16.msra.mxu1 %v3822_v23  ;;  %1688 = vmatprep.subr.bf16.mxu0 %v3823_v24  ;;  %v3855_v49 = vld [vmem:[#allocation2 + $0x384] ss:$16 sps:$4 sm:$0xff]   ;;  %v3858_v56 = vld [vmem:[#allocation2 + $0x380] ss:$16 sps:$4 sm:$0xff]  }
  0x25   :  { %1729 = vmatprep.subr.bf16.mxu1 %v3825_v25  ;;  %v4483_v53 = vld [vmem:[%s5092_s1] sm:$0xff]  ;;  %v46_v16 = vld [vmem:[%s5091_s0 + $0x10] sm:$0xff] }
  0x26   :  { %v61_v57 = vrot.slane %v4483_v53, %v4471_v47  ;;  %v69_v58 = vrot.slane %v4483_v53, %v4474_v48  ;;  %v3859_v59 = vld [vmem:[#allocation2 + $0x164] ss:$16 sps:$4 sm:$0xff]   ;;  %v4494_v63 = vrot.slane %v4483_v53, %v72_v51  ;;  %v3863_v0 = vld [vmem:[#allocation2 + $0x160] ss:$16 sps:$4 sm:$0xff]   ;;  %v4503_v3 = vrot.slane %v4483_v53, %v80_v55 }
  0x27   :  { %1689 = vmatpush1.bf16.msra.mxu0 %v3827_v26  ;;  %v3861_v60 = vld [vmem:[#allocation2 + $0x364] ss:$16 sps:$4 sm:$0xff]   ;;  %v3864_v4 = vld [vmem:[#allocation2 + $0x360] ss:$16 sps:$4 sm:$0xff]   ;;  %v57_v13 = vrot.slane %v4483_v53, %v4497_v1  ;;  %v65_v14 = vrot.slane %v4483_v53, %v4500_v2 }
  0x28   :  { %1730 = vmatpush1.bf16.msra.mxu1 %v3828_v27  ;;  %1690 = vmatprep.subr.bf16.mxu0 %v3829_v28  ;;  %v95_v61 = vadd.f32 %v61_v57, %v45_v52  ;;  %v97_v62 = vadd.f32 %v69_v58, %v47_v54  ;;  %v3865_v7 = vld [vmem:[#allocation2 + $0x144] ss:$16 sps:$4 sm:$0xff]   ;;  %v3869_v9 = vld [vmem:[#allocation2 + $0x140] ss:$16 sps:$4 sm:$0xff]   ;;  %v76_v52 = vsub.s32 5, %v4468_v42 }
  0x29   :  { %1731 = vmatprep.subr.bf16.mxu1 %v3831_v29  ;;  %v3867_v8 = vld [vmem:[#allocation2 + $0x344] ss:$16 sps:$4 sm:$0xff]   ;;  %v3870_v12 = vld [vmem:[#allocation2 + $0x340] ss:$16 sps:$4 sm:$0xff]   ;;  %v96_v20 = vadd.f32 %v65_v14, %v46_v16 }
  0x2a   :  { %v103_v5 = vmax.f32 %v95_v61, 0.0  ;;  %v105_v6 = vmax.f32 %v97_v62, 0.0  ;;  %v44_v15 = vld [vmem:[%s5091_s0] sm:$0xff]  ;;  %v77_v61 = vrot.slane %v4483_v53, %v76_v52 }
  0x2b   :  { %1691 = vmatpush1.bf16.msra.mxu0 %v3833_v30  ;;  %v3871_v17 = vld [vmem:[#allocation2 + $0x124] ss:$16 sps:$4 sm:$0xff]   ;;  %v94_v19 = vadd.f32 %v57_v13, %v44_v15  ;;  %v3875_v21 = vld [vmem:[#allocation2 + $0x120] ss:$16 sps:$4 sm:$0xff]   ;;  %v104_v26 = vmax.f32 %v96_v20, 0.0 }
  0x2c   :  { %1732 = vmatpush1.bf16.msra.mxu1 %v3834_v31  ;;  %1692 = vmatprep.subr.bf16.mxu0 %v3835_v32  ;;  %v4505_v10 = vpack.c.bf16 %v103_v5, %v103_v5  ;;  %v4507_v11 = vpack.c.bf16 %v105_v6, %v105_v6  ;;  %v3873_v18 = vld [vmem:[#allocation2 + $0x324] ss:$16 sps:$4 sm:$0xff]   ;;  %v3876_v22 = vld [vmem:[#allocation2 + $0x320] ss:$16 sps:$4 sm:$0xff]   ;;  %v51_v5 = vld [vmem:[%s5091_s0 + $0x38] sm:$0xff] }
  0x2d   :  { %1733 = vmatprep.subr.bf16.mxu1 %v3837_v33  ;;  %v3877_v23 = vld [vmem:[#allocation2 + $0x104] ss:$16 sps:$4 sm:$0xff]   ;;  %v102_v25 = vmax.f32 %v94_v19, 0.0  ;;  %v3881_v27 = vld [vmem:[#allocation2 + $0x100] ss:$16 sps:$4 sm:$0xff]   ;;  %v4523_v32 = vpack.c.bf16 %v104_v26, %v104_v26 }
  0x2e   :  { %1708 = vmatprep.mubr.bf16.mxu0 %v4505_v10  ;;  %1749 = vmatprep.mubr.bf16.mxu1 %v4507_v11  ;;  %v3879_v24 = vld [vmem:[#allocation2 + $0x304] ss:$16 sps:$4 sm:$0xff]   ;;  %v3882_v28 = vld [vmem:[#allocation2 + $0x300] ss:$16 sps:$4 sm:$0xff]  }
  0x2f   :  { %1693 = vmatpush2.bf16.msra.mxu0 %v3839_v34  ;;  %v3885_v29 = vld [vmem:[#allocation2 + $0x4e4] ss:$16 sps:$4 sm:$0xff]   ;;  %v4521_v31 = vpack.c.bf16 %v102_v25, %v102_v25  ;;  %v3883_v33 = vld [vmem:[#allocation2 + $0x4e0] ss:$16 sps:$4 sm:$0xff]  }
  0x30   :  { %1734 = vmatpush2.bf16.msra.mxu1 %v3840_v35  ;;  %1694 = vmatprep.subr.bf16.mxu0 %v3841_v36  ;;  %v3888_v30 = vld [vmem:[#allocation2 + $0x6e4] ss:$16 sps:$4 sm:$0xff]   ;;  %v3886_v34 = vld [vmem:[#allocation2 + $0x6e0] ss:$16 sps:$4 sm:$0xff]  }
  0x31   :  { %1735 = vmatprep.subr.bf16.mxu1 %v3843_v38  ;;  %v3891_v35 = vld [vmem:[#allocation2 + $0x4c4] ss:$16 sps:$4 sm:$0xff]   ;;  %v3889_v37 = vld [vmem:[#allocation2 + $0x4c0] ss:$16 sps:$4 sm:$0xff]  }
  0x32   :  { %v3894_v36 = vld [vmem:[#allocation2 + $0x6c4] ss:$16 sps:$4 sm:$0xff]   ;;  %v3892_v38 = vld [vmem:[#allocation2 + $0x6c0] ss:$16 sps:$4 sm:$0xff]  }
  0x33   :  { %1695 = vmatpush2.bf16.msra.mxu0 %v3845_v39  ;;  %v3897_v39 = vld [vmem:[#allocation2 + $0x4a4] ss:$16 sps:$4 sm:$0xff]   ;;  %v3907_v54 = vld [vmem:[#allocation2 + $0x460] ss:$16 sps:$4 sm:$0xff]  }
  0x34   :  { %1736 = vmatpush2.bf16.msra.mxu1 %v3846_v40  ;;  %1696 = vmatprep.subr.bf16.mxu0 %v3847_v41  ;;  %v3900_v40 = vld [vmem:[#allocation2 + $0x6a4] ss:$16 sps:$4 sm:$0xff]   ;;  %v3895_v41 = vld [vmem:[#allocation2 + $0x4a0] ss:$16 sps:$4 sm:$0xff]  }
  0x35   :  { %1737 = vmatprep.subr.bf16.mxu1 %v3849_v43  ;;  %v3898_v43 = vld [vmem:[#allocation2 + $0x6a0] ss:$16 sps:$4 sm:$0xff]   ;;  %v3912_v51 = vld [vmem:[#allocation2 + $0x664] ss:$16 sps:$4 sm:$0xff]  }
  0x36   :  { %v3910_v55 = vld [vmem:[#allocation2 + $0x660] ss:$16 sps:$4 sm:$0xff]   ;;  %v3915_v57 = vld [vmem:[#allocation2 + $0x444] ss:$16 sps:$4 sm:$0xff]  }
  0x37   :  { %1697 = vmatpush2.bf16.msra.mxu0 %v3851_v44  ;;  %v3903_v44 = vld [vmem:[#allocation2 + $0x484] ss:$16 sps:$4 sm:$0xff]   ;;  %v3919_v6 = vld [vmem:[#allocation2 + $0x420] ss:$16 sps:$4 sm:$0xff]  }
  0x38   :  { %1738 = vmatpush2.bf16.msra.mxu1 %v3852_v45  ;;  %1698 = vmatprep.subr.bf16.mxu0 %v3853_v46  ;;  %v3906_v45 = vld [vmem:[#allocation2 + $0x684] ss:$16 sps:$4 sm:$0xff]   ;;  %v3901_v46 = vld [vmem:[#allocation2 + $0x480] ss:$16 sps:$4 sm:$0xff]  }
  0x39   :  { %1739 = vmatprep.subr.bf16.mxu1 %v3855_v49  ;;  %v3904_v49 = vld [vmem:[#allocation2 + $0x680] ss:$16 sps:$4 sm:$0xff]   ;;  %v3918_v58 = vld [vmem:[#allocation2 + $0x644] ss:$16 sps:$4 sm:$0xff]  }
  0x3a   :  { %v3925_v15 = vld [vmem:[#allocation2 + $0x400] ss:$16 sps:$4 sm:$0xff]   ;;  %v3933_v19 = vld [vmem:[#allocation2 + $0x5e4] ss:$16 sps:$4 sm:$0xff]  }
  0x3b   :  { %1699 = vmatpush2.bf16.msra.mxu0 %v3857_v50  ;;  %v3909_v50 = vld [vmem:[#allocation2 + $0x464] ss:$16 sps:$4 sm:$0xff]   ;;  %v3928_v16 = vld [vmem:[#allocation2 + $0x600] ss:$16 sps:$4 sm:$0xff]  }
  0x3c   :  { %1740 = vmatpush2.bf16.msra.mxu1 %v3858_v56  ;;  %1700 = vmatprep.subr.bf16.mxu0 %v3859_v59  ;;  %v84_v56 = vsub.s32 7, %v4468_v42  ;;  %v3913_v59 = vld [vmem:[#allocation2 + $0x440] ss:$16 sps:$4 sm:$0xff]   ;;  %v49_v42 = vld [vmem:[%s5091_s0 + $0x28] sm:$0xff]  ;;  %v3936_v20 = vld [vmem:[#allocation2 + $0x7e4] ss:$16 sps:$4 sm:$0xff]  }
  0x3d   :  { %1741 = vmatprep.subr.bf16.mxu1 %v3861_v60  ;;  %v3916_v60 = vld [vmem:[#allocation2 + $0x640] ss:$16 sps:$4 sm:$0xff]  }
  0x3e   :  { %v85_v62 = vrot.slane %v4483_v53, %v84_v56  ;;  %v3927_v53 = vld [vmem:[#allocation2 + $0x404] ss:$16 sps:$4 sm:$0xff]   ;;  %v3937_v25 = vld [vmem:[#allocation2 + $0x5c0] ss:$16 sps:$4 sm:$0xff]  }
  0x3f   :  { %1701 = vmatpush2.bf16.msra.mxu0 %v3863_v0  ;;  %v3921_v0 = vld [vmem:[#allocation2 + $0x424] ss:$16 sps:$4 sm:$0xff]   ;;  %v3940_v26 = vld [vmem:[#allocation2 + $0x7c0] ss:$16 sps:$4 sm:$0xff]  }
  0x40   :  { %1742 = vmatpush2.bf16.msra.mxu1 %v3864_v4  ;;  %1702 = vmatprep.subr.bf16.mxu0 %v3865_v7  ;;  %v3924_v4 = vld [vmem:[#allocation2 + $0x624] ss:$16 sps:$4 sm:$0xff]   ;;  %v3922_v7 = vld [vmem:[#allocation2 + $0x620] ss:$16 sps:$4 sm:$0xff]  }
  0x41   :  { %1743 = vmatprep.subr.bf16.mxu1 %v3867_v8  ;;  %v99_v8 = vadd.f32 %v77_v61, %v49_v42  ;;  %v3970_v56 = vld [vmem:[#allocation2 + $0x720] ss:$16 sps:$4 sm:$0xff]   ;;  %v3979_v42 = vld [vmem:[#allocation2 + $0xe8] ss:$16 sps:$4 sm:$0xff]  }
  0x42   :  { %v3973_v61 = vld [vmem:[#allocation2 + $0x500] ss:$16 sps:$4 sm:$0xff]  }
  0x43   :  { %1703 = vmatpush2.bf16.msra.mxu0 %v3869_v9  ;;  %v101_v9 = vadd.f32 %v85_v62, %v51_v5  ;;  %v107_v13 = vmax.f32 %v99_v8, 0.0  ;;  %v3976_v62 = vld [vmem:[#allocation2 + $0x700] ss:$16 sps:$4 sm:$0xff]   ;;  %v3982_v5 = vld [vmem:[#allocation2 + $0x2e8] ss:$16 sps:$4 sm:$0xff]  }
  0x44   :  { %1744 = vmatpush2.bf16.msra.mxu1 %v3870_v12  ;;  %1704 = vmatprep.subr.bf16.mxu0 %v3871_v17  ;;  %v3930_v12 = vld [vmem:[#allocation2 + $0x604] ss:$16 sps:$4 sm:$0xff]   ;;  %v3985_v8 = vld [vmem:[#allocation2 + $0xc8] ss:$16 sps:$4 sm:$0xff]  }
  0x45   :  { %1745 = vmatprep.subr.bf16.mxu1 %v3873_v18  ;;  %v109_v14 = vmax.f32 %v101_v9, 0.0  ;;  %v4537_v17 = vpack.c.bf16 %v107_v13, %v107_v13  ;;  %v3988_v9 = vld [vmem:[#allocation2 + $0x2c8] ss:$16 sps:$4 sm:$0xff]  }
  0x46   :  { %v3991_v13 = vld [vmem:[#allocation2 + $0xa8] ss:$16 sps:$4 sm:$0xff]  }
  0x47   :  { %1705 = vmatpush2.bf16.msra.mxu0 %v3875_v21  ;;  %v4539_v18 = vpack.c.bf16 %v109_v14, %v109_v14  ;;  %v3931_v21 = vld [vmem:[#allocation2 + $0x5e0] ss:$16 sps:$4 sm:$0xff]   ;;  %v3994_v14 = vld [vmem:[#allocation2 + $0x2a8] ss:$16 sps:$4 sm:$0xff]  }
  0x48   :  { %1746 = vmatpush2.bf16.msra.mxu1 %v3876_v22  ;;  %1706 = vmatprep.subr.bf16.mxu0 %v3877_v23  ;;  %v3934_v22 = vld [vmem:[#allocation2 + $0x7e0] ss:$16 sps:$4 sm:$0xff]   ;;  %v3939_v23 = vld [vmem:[#allocation2 + $0x5c4] ss:$16 sps:$4 sm:$0xff]  }
  0x49   :  { %1747 = vmatprep.subr.bf16.mxu1 %v3879_v24  ;;  %v3942_v24 = vld [vmem:[#allocation2 + $0x7c4] ss:$16 sps:$4 sm:$0xff]  }
  0x4b   :  { %1707 = vmatpush2.bf16.msra.mxu0 %v3881_v27  ;;  %v3945_v27 = vld [vmem:[#allocation2 + $0x5a4] ss:$16 sps:$4 sm:$0xff]  }
  0x4c   :  { %1748 = vmatpush2.bf16.msra.mxu1 %v3882_v28  ;;  %1758 = vmatprep.subr.bf16.mxu0 %v3885_v29  ;;  %v3948_v28 = vld [vmem:[#allocation2 + $0x7a4] ss:$16 sps:$4 sm:$0xff]   ;;  %v3943_v29 = vld [vmem:[#allocation2 + $0x5a0] ss:$16 sps:$4 sm:$0xff]  }
  0x4d   :  { %1799 = vmatprep.subr.bf16.mxu1 %v3888_v30  ;;  %v3946_v30 = vld [vmem:[#allocation2 + $0x7a0] ss:$16 sps:$4 sm:$0xff]  }
  0x4e   :  { %1709 = vmatmul.mubr.bf16.vlgmr.msra.gmra.mxu0 %v4521_v31 }
  0x4f   :  { %1750 = vmatmul.mubr.bf16.vlgmr.msra.gmra.mxu1 %v4523_v32  ;;  %1759 = vmatpush1.bf16.msra.mxu0 %v3883_v33  ;;  %v3951_v33 = vld [vmem:[#allocation2 + $0x584] ss:$16 sps:$4 sm:$0xff]  }
  0x50   :  { %1800 = vmatpush1.bf16.msra.mxu1 %v3886_v34  ;;  %1760 = vmatprep.subr.bf16.mxu0 %v3891_v35  ;;  %v3954_v34 = vld [vmem:[#allocation2 + $0x784] ss:$16 sps:$4 sm:$0xff]   ;;  %v3949_v35 = vld [vmem:[#allocation2 + $0x580] ss:$16 sps:$4 sm:$0xff]  }
  0x51   :  { %1801 = vmatprep.subr.bf16.mxu1 %v3894_v36  ;;  %1790 = vmatprep.mubr.bf16.mxu0 %v4537_v17  ;;  %v3952_v36 = vld [vmem:[#allocation2 + $0x780] ss:$16 sps:$4 sm:$0xff]  }
  0x52   :  { %1831 = vmatprep.mubr.bf16.mxu1 %v4539_v18 }
  0x53   :  { %1761 = vmatpush1.bf16.msra.mxu0 %v3889_v37  ;;  %v3957_v37 = vld [vmem:[#allocation2 + $0x564] ss:$16 sps:$4 sm:$0xff]  }
  0x54   :  { %1802 = vmatpush1.bf16.msra.mxu1 %v3892_v38  ;;  %1762 = vmatprep.subr.bf16.mxu0 %v3897_v39  ;;  %v3960_v38 = vld [vmem:[#allocation2 + $0x764] ss:$16 sps:$4 sm:$0xff]   ;;  %v3955_v39 = vld [vmem:[#allocation2 + $0x560] ss:$16 sps:$4 sm:$0xff]  }
  0x55   :  { %1803 = vmatprep.subr.bf16.mxu1 %v3900_v40  ;;  %v3958_v40 = vld [vmem:[#allocation2 + $0x760] ss:$16 sps:$4 sm:$0xff]  }
  0x57   :  { %1763 = vmatpush1.bf16.msra.mxu0 %v3895_v41  ;;  %v3963_v41 = vld [vmem:[#allocation2 + $0x544] ss:$16 sps:$4 sm:$0xff]  }
  0x58   :  { %1804 = vmatpush1.bf16.msra.mxu1 %v3898_v43  ;;  %1764 = vmatprep.subr.bf16.mxu0 %v3903_v44  ;;  %v3966_v43 = vld [vmem:[#allocation2 + $0x744] ss:$16 sps:$4 sm:$0xff]   ;;  %v3961_v44 = vld [vmem:[#allocation2 + $0x540] ss:$16 sps:$4 sm:$0xff]  }
  0x59   :  { %1805 = vmatprep.subr.bf16.mxu1 %v3906_v45  ;;  %v3964_v45 = vld [vmem:[#allocation2 + $0x740] ss:$16 sps:$4 sm:$0xff]  }
  0x5b   :  { %1765 = vmatpush1.bf16.msra.mxu0 %v3901_v46  ;;  %v48_v46 = vld [vmem:[%s5091_s0 + $0x20] sm:$0xff] }
  0x5c   :  { %1806 = vmatpush1.bf16.msra.mxu1 %v3904_v49  ;;  %1766 = vmatprep.subr.bf16.mxu0 %v3909_v50  ;;  %v50_v49 = vld [vmem:[%s5091_s0 + $0x30] sm:$0xff]  ;;  %v98_v52 = vadd.f32 %v4494_v63, %v48_v46  ;;  %v3984_v63 = vld [vmem:[#allocation2 + $0x2ec] ss:$16 sps:$4 sm:$0xff]  }
  0x5d   :  { %1807 = vmatprep.subr.bf16.mxu1 %v3912_v51  ;;  %v3969_v50 = vld [vmem:[#allocation2 + $0x524] ss:$16 sps:$4 sm:$0xff]   ;;  %v4041_v46 = vld [vmem:[#allocation2 + $0x1ac] ss:$16 sps:$4 sm:$0xff]  }
  0x5e   :  { %v3972_v51 = vld [vmem:[#allocation2 + $0x724] ss:$16 sps:$4 sm:$0xff]  }
  0x5f   :  { %1767 = vmatpush1.bf16.msra.mxu0 %v3907_v54  ;;  %v100_v54 = vadd.f32 %v4503_v3, %v50_v49  ;;  %v4044_v49 = vld [vmem:[#allocation2 + $0x3ac] ss:$16 sps:$4 sm:$0xff]  }
  0x60   :  { %1808 = vmatpush1.bf16.msra.mxu1 %v3910_v55  ;;  %1768 = vmatprep.subr.bf16.mxu0 %v3915_v57  ;;  %v3967_v55 = vld [vmem:[#allocation2 + $0x520] ss:$16 sps:$4 sm:$0xff]   ;;  %v3975_v57 = vld [vmem:[#allocation2 + $0x504] ss:$16 sps:$4 sm:$0xff]  }
  0x61   :  { %1809 = vmatprep.subr.bf16.mxu1 %v3918_v58  ;;  %v3978_v58 = vld [vmem:[#allocation2 + $0x704] ss:$16 sps:$4 sm:$0xff]  }
  0x63   :  { %1769 = vmatpush1.bf16.msra.mxu0 %v3913_v59  ;;  %v106_v59 = vmax.f32 %v98_v52, 0.0  ;;  %v4047_v52 = vld [vmem:[#allocation2 + $0x18c] ss:$16 sps:$4 sm:$0xff]  }
  0x64   :  { %1810 = vmatpush1.bf16.msra.mxu1 %v3916_v60  ;;  %1770 = vmatprep.subr.bf16.mxu0 %v3921_v0  ;;  %v108_v60 = vmax.f32 %v100_v54, 0.0  ;;  %v3981_v0 = vld [vmem:[#allocation2 + $0xec] ss:$16 sps:$4 sm:$0xff]  }
  0x65   :  { %1811 = vmatprep.subr.bf16.mxu1 %v3924_v4  ;;  %v4551_v4 = vpack.c.bf16 %v106_v59, %v106_v59  ;;  %v4050_v54 = vld [vmem:[#allocation2 + $0x38c] ss:$16 sps:$4 sm:$0xff]   ;;  %v4051_v59 = vld [vmem:[#allocation2 + $0x168] ss:$16 sps:$4 sm:$0xff]  }
  0x66   :  { %v4553_v3 = vpack.c.bf16 %v108_v60, %v108_v60  ;;  %v4054_v60 = vld [vmem:[#allocation2 + $0x368] ss:$16 sps:$4 sm:$0xff]  }
  0x67   :  { %1771 = vmatpush1.bf16.msra.mxu0 %v3919_v6  ;;  %v3987_v6 = vld [vmem:[#allocation2 + $0xcc] ss:$16 sps:$4 sm:$0xff]  }
  0x68   :  { %1812 = vmatpush1.bf16.msra.mxu1 %v3922_v7  ;;  %1772 = vmatprep.subr.bf16.mxu0 %v3927_v53  ;;  %v3990_v7 = vld [vmem:[#allocation2 + $0x2cc] ss:$16 sps:$4 sm:$0xff]  }
  0x69   :  { %1813 = vmatprep.subr.bf16.mxu1 %v3930_v12  ;;  %v3993_v53 = vld [vmem:[#allocation2 + $0xac] ss:$16 sps:$4 sm:$0xff]  }
  0x6a   :  { %v3996_v12 = vld [vmem:[#allocation2 + $0x2ac] ss:$16 sps:$4 sm:$0xff]  }
  0x6b   :  { %1773 = vmatpush1.bf16.msra.mxu0 %v3925_v15  ;;  %v3999_v15 = vld [vmem:[#allocation2 + $0x8c] ss:$16 sps:$4 sm:$0xff]  }
  0x6c   :  { %1814 = vmatpush1.bf16.msra.mxu1 %v3928_v16  ;;  %1774 = vmatprep.subr.bf16.mxu0 %v3933_v19  ;;  %v4002_v16 = vld [vmem:[#allocation2 + $0x28c] ss:$16 sps:$4 sm:$0xff]   ;;  %v3997_v19 = vld [vmem:[#allocation2 + $0x88] ss:$16 sps:$4 sm:$0xff]  }
  0x6d   :  { %1815 = vmatprep.subr.bf16.mxu1 %v3936_v20  ;;  %v4000_v20 = vld [vmem:[#allocation2 + $0x288] ss:$16 sps:$4 sm:$0xff]  }
  0x6f   :  { %1775 = vmatpush2.bf16.msra.mxu0 %v3931_v21  ;;  %v4005_v21 = vld [vmem:[#allocation2 + $0x6c] ss:$16 sps:$4 sm:$0xff]  }
  0x70   :  { %1816 = vmatpush2.bf16.msra.mxu1 %v3934_v22  ;;  %1776 = vmatprep.subr.bf16.mxu0 %v3939_v23  ;;  %v4008_v22 = vld [vmem:[#allocation2 + $0x26c] ss:$16 sps:$4 sm:$0xff]  }
  0x71   :  { %1817 = vmatprep.subr.bf16.mxu1 %v3942_v24  ;;  %v4011_v23 = vld [vmem:[#allocation2 + $0x4c] ss:$16 sps:$4 sm:$0xff]  }
  0x72   :  { %v4014_v24 = vld [vmem:[#allocation2 + $0x24c] ss:$16 sps:$4 sm:$0xff]  }
  0x73   :  { %1777 = vmatpush2.bf16.msra.mxu0 %v3937_v25  ;;  %v4009_v25 = vld [vmem:[#allocation2 + $0x48] ss:$16 sps:$4 sm:$0xff]  }
  0x74   :  { %1818 = vmatpush2.bf16.msra.mxu1 %v3940_v26  ;;  %1778 = vmatprep.subr.bf16.mxu0 %v3945_v27  ;;  %v4012_v26 = vld [vmem:[#allocation2 + $0x248] ss:$16 sps:$4 sm:$0xff]   ;;  %v4017_v27 = vld [vmem:[#allocation2 + $0x2c] ss:$16 sps:$4 sm:$0xff]  }
  0x75   :  { %1819 = vmatprep.subr.bf16.mxu1 %v3948_v28  ;;  %v4020_v28 = vld [vmem:[#allocation2 + $0x22c] ss:$16 sps:$4 sm:$0xff]  }
  0x77   :  { %1779 = vmatpush2.bf16.msra.mxu0 %v3943_v29  ;;  %v4015_v29 = vld [vmem:[#allocation2 + $0x28] ss:$16 sps:$4 sm:$0xff]  }
  0x78   :  { %1820 = vmatpush2.bf16.msra.mxu1 %v3946_v30  ;;  %1780 = vmatprep.subr.bf16.mxu0 %v3951_v33  ;;  %v4018_v30 = vld [vmem:[#allocation2 + $0x228] ss:$16 sps:$4 sm:$0xff]   ;;  %v4023_v33 = vld [vmem:[#allocation2 + $0xc] ss:$16 sps:$4 sm:$0xff]  }
  0x79   :  { %1821 = vmatprep.subr.bf16.mxu1 %v3954_v34  ;;  %v4026_v34 = vld [vmem:[#allocation2 + $0x20c] ss:$16 sps:$4 sm:$0xff]  }
  0x7b   :  { %1781 = vmatpush2.bf16.msra.mxu0 %v3949_v35  ;;  %v4021_v35 = vld [vmem:[#allocation2 + $0x8] ss:$16 sps:$4 sm:$0xff]  }
  0x7c   :  { %1822 = vmatpush2.bf16.msra.mxu1 %v3952_v36  ;;  %1782 = vmatprep.subr.bf16.mxu0 %v3957_v37  ;;  %v4024_v36 = vld [vmem:[#allocation2 + $0x208] ss:$16 sps:$4 sm:$0xff]   ;;  %v4029_v37 = vld [vmem:[#allocation2 + $0x1ec] ss:$16 sps:$4 sm:$0xff]  }
  0x7d   :  { %1823 = vmatprep.subr.bf16.mxu1 %v3960_v38  ;;  %v4032_v38 = vld [vmem:[#allocation2 + $0x3ec] ss:$16 sps:$4 sm:$0xff]  }
  0x7f   :  { %1783 = vmatpush2.bf16.msra.mxu0 %v3955_v39  ;;  %v4027_v39 = vld [vmem:[#allocation2 + $0x1e8] ss:$16 sps:$4 sm:$0xff]  }
  0x80   :  { %1824 = vmatpush2.bf16.msra.mxu1 %v3958_v40  ;;  %1784 = vmatprep.subr.bf16.mxu0 %v3963_v41  ;;  %v4030_v40 = vld [vmem:[#allocation2 + $0x3e8] ss:$16 sps:$4 sm:$0xff]   ;;  %v4035_v41 = vld [vmem:[#allocation2 + $0x1cc] ss:$16 sps:$4 sm:$0xff]  }
  0x81   :  { %1825 = vmatprep.subr.bf16.mxu1 %v3966_v43  ;;  %v4038_v43 = vld [vmem:[#allocation2 + $0x3cc] ss:$16 sps:$4 sm:$0xff]  }
  0x83   :  { %1785 = vmatpush2.bf16.msra.mxu0 %v3961_v44  ;;  %v4033_v44 = vld [vmem:[#allocation2 + $0x1c8] ss:$16 sps:$4 sm:$0xff]  }
  0x84   :  { %1826 = vmatpush2.bf16.msra.mxu1 %v3964_v45  ;;  %1786 = vmatprep.subr.bf16.mxu0 %v3969_v50  ;;  %v4036_v45 = vld [vmem:[#allocation2 + $0x3c8] ss:$16 sps:$4 sm:$0xff]  }
  0x85   :  { %1827 = vmatprep.subr.bf16.mxu1 %v3972_v51  ;;  %v4039_v50 = vld [vmem:[#allocation2 + $0x1a8] ss:$16 sps:$4 sm:$0xff]  }
  0x86   :  { %v4042_v51 = vld [vmem:[#allocation2 + $0x3a8] ss:$16 sps:$4 sm:$0xff]  }
  0x87   :  { %1787 = vmatpush2.bf16.msra.mxu0 %v3967_v55  ;;  %v4045_v55 = vld [vmem:[#allocation2 + $0x188] ss:$16 sps:$4 sm:$0xff]  }
  0x88   :  { %1828 = vmatpush2.bf16.msra.mxu1 %v3970_v56  ;;  %1788 = vmatprep.subr.bf16.mxu0 %v3975_v57  ;;  %v4048_v56 = vld [vmem:[#allocation2 + $0x388] ss:$16 sps:$4 sm:$0xff]   ;;  %v4053_v57 = vld [vmem:[#allocation2 + $0x16c] ss:$16 sps:$4 sm:$0xff]  }
  0x89   :  { %1829 = vmatprep.subr.bf16.mxu1 %v3978_v58  ;;  %v4056_v58 = vld [vmem:[#allocation2 + $0x36c] ss:$16 sps:$4 sm:$0xff]  }
  0x8b   :  { %1789 = vmatpush2.bf16.msra.mxu0 %v3973_v61  ;;  %v4059_v61 = vld [vmem:[#allocation2 + $0x14c] ss:$16 sps:$4 sm:$0xff]  }
  0x8c   :  { %1830 = vmatpush2.bf16.msra.mxu1 %v3976_v62  ;;  %1840 = vmatprep.subr.bf16.mxu0 %v3981_v0  ;;  %v4062_v62 = vld [vmem:[#allocation2 + $0x34c] ss:$16 sps:$4 sm:$0xff]   ;;  %v4057_v0 = vld [vmem:[#allocation2 + $0x148] ss:$16 sps:$4 sm:$0xff]  }
  0x8d   :  { %1881 = vmatprep.subr.bf16.mxu1 %v3984_v63  ;;  %v4060_v63 = vld [vmem:[#allocation2 + $0x348] ss:$16 sps:$4 sm:$0xff]  }
  0x8e   :  { %1791 = vmatmul.mubr.bf16.vlgmr.msra.gmra.mxu0 %v4551_v4 }
  0x8f   :  { %1832 = vmatmul.mubr.bf16.vlgmr.msra.gmra.mxu1 %v4553_v3  ;;  %1841 = vmatpush1.bf16.msra.mxu0 %v3979_v42  ;;  %v4065_v42 = vld [vmem:[#allocation2 + $0x12c] ss:$16 sps:$4 sm:$0xff]  }
  0x90   :  { %1882 = vmatpush1.bf16.msra.mxu1 %v3982_v5  ;;  %1842 = vmatprep.subr.bf16.mxu0 %v3987_v6  ;;  %v4068_v5 = vld [vmem:[#allocation2 + $0x32c] ss:$16 sps:$4 sm:$0xff]   ;;  %v4063_v6 = vld [vmem:[#allocation2 + $0x128] ss:$16 sps:$4 sm:$0xff]  }
  0x91   :  { %1883 = vmatprep.subr.bf16.mxu1 %v3990_v7  ;;  %1872 = vmatprep.mubr.bf16.mxu0 %v4505_v10  ;;  %v4003_v10 = vld [vmem:[#allocation2 + $0x68] ss:$16 sps:$4 sm:$0xff]  }
  0x92   :  { %1913 = vmatprep.mubr.bf16.mxu1 %v4507_v11  ;;  %v4006_v11 = vld [vmem:[#allocation2 + $0x268] ss:$16 sps:$4 sm:$0xff]  }
  0x93   :  { %1843 = vmatpush1.bf16.msra.mxu0 %v3985_v8  ;;  %v4066_v7 = vld [vmem:[#allocation2 + $0x328] ss:$16 sps:$4 sm:$0xff]   ;;  %v4071_v8 = vld [vmem:[#allocation2 + $0x10c] ss:$16 sps:$4 sm:$0xff]  }
  0x94   :  { %1884 = vmatpush1.bf16.msra.mxu1 %v3988_v9  ;;  %1844 = vmatprep.subr.bf16.mxu0 %v3993_v53  ;;  %v4074_v9 = vld [vmem:[#allocation2 + $0x30c] ss:$16 sps:$4 sm:$0xff]   ;;  %v4069_v53 = vld [vmem:[#allocation2 + $0x108] ss:$16 sps:$4 sm:$0xff]  }
  0x95   :  { %1885 = vmatprep.subr.bf16.mxu1 %v3996_v12  ;;  %v4072_v12 = vld [vmem:[#allocation2 + $0x308] ss:$16 sps:$4 sm:$0xff]  }
  0x97   :  { %1845 = vmatpush1.bf16.msra.mxu0 %v3991_v13  ;;  %v4077_v13 = vld [vmem:[#allocation2 + $0x4ec] ss:$16 sps:$4 sm:$0xff]  }
  0x98   :  { %1886 = vmatpush1.bf16.msra.mxu1 %v3994_v14  ;;  %1846 = vmatprep.subr.bf16.mxu0 %v3999_v15  ;;  %v4080_v14 = vld [vmem:[#allocation2 + $0x6ec] ss:$16 sps:$4 sm:$0xff]   ;;  %v4075_v15 = vld [vmem:[#allocation2 + $0x4e8] ss:$16 sps:$4 sm:$0xff]  }
  0x99   :  { %1887 = vmatprep.subr.bf16.mxu1 %v4002_v16  ;;  %v4078_v16 = vld [vmem:[#allocation2 + $0x6e8] ss:$16 sps:$4 sm:$0xff]  }
  0x9b   :  { %1847 = vmatpush1.bf16.msra.mxu0 %v3997_v19  ;;  %v4083_v19 = vld [vmem:[#allocation2 + $0x4cc] ss:$16 sps:$4 sm:$0xff]  }
  0x9c   :  { %1888 = vmatpush1.bf16.msra.mxu1 %v4000_v20  ;;  %1848 = vmatprep.subr.bf16.mxu0 %v4005_v21  ;;  %v4086_v20 = vld [vmem:[#allocation2 + $0x6cc] ss:$16 sps:$4 sm:$0xff]   ;;  %v4081_v21 = vld [vmem:[#allocation2 + $0x4c8] ss:$16 sps:$4 sm:$0xff]  }
  0x9d   :  { %1889 = vmatprep.subr.bf16.mxu1 %v4008_v22  ;;  %v4084_v22 = vld [vmem:[#allocation2 + $0x6c8] ss:$16 sps:$4 sm:$0xff]  }
  0x9f   :  { %1849 = vmatpush1.bf16.msra.mxu0 %v4003_v10  ;;  %v4089_v10 = vld [vmem:[#allocation2 + $0x4ac] ss:$16 sps:$4 sm:$0xff]  }
  0xa0   :  { %1890 = vmatpush1.bf16.msra.mxu1 %v4006_v11  ;;  %1850 = vmatprep.subr.bf16.mxu0 %v4011_v23  ;;  %v4092_v11 = vld [vmem:[#allocation2 + $0x6ac] ss:$16 sps:$4 sm:$0xff]   ;;  %v4087_v23 = vld [vmem:[#allocation2 + $0x4a8] ss:$16 sps:$4 sm:$0xff]  }
  0xa1   :  { %1891 = vmatprep.subr.bf16.mxu1 %v4014_v24  ;;  %v4090_v24 = vld [vmem:[#allocation2 + $0x6a8] ss:$16 sps:$4 sm:$0xff]  }
  0xa3   :  { %1851 = vmatpush1.bf16.msra.mxu0 %v4009_v25  ;;  %v4095_v25 = vld [vmem:[#allocation2 + $0x48c] ss:$16 sps:$4 sm:$0xff]  }
  0xa4   :  { %1892 = vmatpush1.bf16.msra.mxu1 %v4012_v26  ;;  %1852 = vmatprep.subr.bf16.mxu0 %v4017_v27  ;;  %v4093_v26 = vld [vmem:[#allocation2 + $0x488] ss:$16 sps:$4 sm:$0xff]   ;;  %v4101_v27 = vld [vmem:[#allocation2 + $0x46c] ss:$16 sps:$4 sm:$0xff]  }
  0xa5   :  { %1893 = vmatprep.subr.bf16.mxu1 %v4020_v28  ;;  %v4104_v28 = vld [vmem:[#allocation2 + $0x66c] ss:$16 sps:$4 sm:$0xff]  }
  0xa7   :  { %1853 = vmatpush1.bf16.msra.mxu0 %v4015_v29  ;;  %v4099_v29 = vld [vmem:[#allocation2 + $0x468] ss:$16 sps:$4 sm:$0xff]  }
  0xa8   :  { %1894 = vmatpush1.bf16.msra.mxu1 %v4018_v30  ;;  %1854 = vmatprep.subr.bf16.mxu0 %v4023_v33  ;;  %v4102_v30 = vld [vmem:[#allocation2 + $0x668] ss:$16 sps:$4 sm:$0xff]  }
  0xa9   :  { %1895 = vmatprep.subr.bf16.mxu1 %v4026_v34  ;;  %v4105_v33 = vld [vmem:[#allocation2 + $0x448] ss:$16 sps:$4 sm:$0xff]  }
  0xaa   :  { %v4108_v34 = vld [vmem:[#allocation2 + $0x648] ss:$16 sps:$4 sm:$0xff]  }
  0xab   :  { %1855 = vmatpush1.bf16.msra.mxu0 %v4021_v35  ;;  %v4113_v35 = vld [vmem:[#allocation2 + $0x42c] ss:$16 sps:$4 sm:$0xff]  }
  0xac   :  { %1896 = vmatpush1.bf16.msra.mxu1 %v4024_v36  ;;  %1856 = vmatprep.subr.bf16.mxu0 %v4029_v37  ;;  %v4116_v36 = vld [vmem:[#allocation2 + $0x62c] ss:$16 sps:$4 sm:$0xff]   ;;  %v4111_v37 = vld [vmem:[#allocation2 + $0x428] ss:$16 sps:$4 sm:$0xff]  }
  0xad   :  { %1897 = vmatprep.subr.bf16.mxu1 %v4032_v38  ;;  %v4114_v38 = vld [vmem:[#allocation2 + $0x628] ss:$16 sps:$4 sm:$0xff]  }
  0xaf   :  { %1857 = vmatpush2.bf16.msra.mxu0 %v4027_v39  ;;  %v4119_v39 = vld [vmem:[#allocation2 + $0x40c] ss:$16 sps:$4 sm:$0xff]  }
  0xb0   :  { %1898 = vmatpush2.bf16.msra.mxu1 %v4030_v40  ;;  %1858 = vmatprep.subr.bf16.mxu0 %v4035_v41  ;;  %v4122_v40 = vld [vmem:[#allocation2 + $0x60c] ss:$16 sps:$4 sm:$0xff]   ;;  %v4117_v41 = vld [vmem:[#allocation2 + $0x408] ss:$16 sps:$4 sm:$0xff]  }
  0xb1   :  { %1899 = vmatprep.subr.bf16.mxu1 %v4038_v43  ;;  %v4120_v43 = vld [vmem:[#allocation2 + $0x608] ss:$16 sps:$4 sm:$0xff]  }
  0xb3   :  { %1859 = vmatpush2.bf16.msra.mxu0 %v4033_v44  ;;  %v4125_v44 = vld [vmem:[#allocation2 + $0x5ec] ss:$16 sps:$4 sm:$0xff]  }
  0xb4   :  { %1900 = vmatpush2.bf16.msra.mxu1 %v4036_v45  ;;  %1860 = vmatprep.subr.bf16.mxu0 %v4041_v46  ;;  %v4128_v45 = vld [vmem:[#allocation2 + $0x7ec] ss:$16 sps:$4 sm:$0xff]   ;;  %v4123_v46 = vld [vmem:[#allocation2 + $0x5e8] ss:$16 sps:$4 sm:$0xff]  }
  0xb5   :  { %1901 = vmatprep.subr.bf16.mxu1 %v4044_v49  ;;  %v4126_v49 = vld [vmem:[#allocation2 + $0x7e8] ss:$16 sps:$4 sm:$0xff]  }
  0xb7   :  { %1861 = vmatpush2.bf16.msra.mxu0 %v4039_v50  ;;  %v4131_v50 = vld [vmem:[#allocation2 + $0x5cc] ss:$16 sps:$4 sm:$0xff]  }
  0xb8   :  { %1902 = vmatpush2.bf16.msra.mxu1 %v4042_v51  ;;  %1862 = vmatprep.subr.bf16.mxu0 %v4047_v52  ;;  %v4134_v51 = vld [vmem:[#allocation2 + $0x7cc] ss:$16 sps:$4 sm:$0xff]   ;;  %v4129_v52 = vld [vmem:[#allocation2 + $0x5c8] ss:$16 sps:$4 sm:$0xff]  }
  0xb9   :  { %1903 = vmatprep.subr.bf16.mxu1 %v4050_v54  ;;  %v4132_v54 = vld [vmem:[#allocation2 + $0x7c8] ss:$16 sps:$4 sm:$0xff]  }
  0xbb   :  { %1863 = vmatpush2.bf16.msra.mxu0 %v4045_v55  ;;  %v4137_v55 = vld [vmem:[#allocation2 + $0x5ac] ss:$16 sps:$4 sm:$0xff]  }
  0xbc   :  { %1904 = vmatpush2.bf16.msra.mxu1 %v4048_v56  ;;  %1864 = vmatprep.subr.bf16.mxu0 %v4053_v57  ;;  %v4140_v56 = vld [vmem:[#allocation2 + $0x7ac] ss:$16 sps:$4 sm:$0xff]   ;;  %v4135_v57 = vld [vmem:[#allocation2 + $0x5a8] ss:$16 sps:$4 sm:$0xff]  }
  0xbd   :  { %1905 = vmatprep.subr.bf16.mxu1 %v4056_v58  ;;  %v4138_v58 = vld [vmem:[#allocation2 + $0x7a8] ss:$16 sps:$4 sm:$0xff]  }
  0xbf   :  { %1865 = vmatpush2.bf16.msra.mxu0 %v4051_v59  ;;  %v4143_v59 = vld [vmem:[#allocation2 + $0x58c] ss:$16 sps:$4 sm:$0xff]  }
  0xc0   :  { %1906 = vmatpush2.bf16.msra.mxu1 %v4054_v60  ;;  %1866 = vmatprep.subr.bf16.mxu0 %v4059_v61  ;;  %v4146_v60 = vld [vmem:[#allocation2 + $0x78c] ss:$16 sps:$4 sm:$0xff]   ;;  %v4141_v61 = vld [vmem:[#allocation2 + $0x588] ss:$16 sps:$4 sm:$0xff]  }
  0xc1   :  { %1907 = vmatprep.subr.bf16.mxu1 %v4062_v62  ;;  %v4144_v62 = vld [vmem:[#allocation2 + $0x788] ss:$16 sps:$4 sm:$0xff]  }
  0xc3   :  { %1867 = vmatpush2.bf16.msra.mxu0 %v4057_v0  ;;  %v4149_v0 = vld [vmem:[#allocation2 + $0x56c] ss:$16 sps:$4 sm:$0xff]  }
  0xc4   :  { %1908 = vmatpush2.bf16.msra.mxu1 %v4060_v63  ;;  %1868 = vmatprep.subr.bf16.mxu0 %v4065_v42  ;;  %v4152_v63 = vld [vmem:[#allocation2 + $0x76c] ss:$16 sps:$4 sm:$0xff]   ;;  %v4147_v42 = vld [vmem:[#allocation2 + $0x568] ss:$16 sps:$4 sm:$0xff]  }
  0xc5   :  { %1909 = vmatprep.subr.bf16.mxu1 %v4068_v5  ;;  %v4150_v5 = vld [vmem:[#allocation2 + $0x768] ss:$16 sps:$4 sm:$0xff]  }
  0xc7   :  { %1869 = vmatpush2.bf16.msra.mxu0 %v4063_v6  ;;  %v4155_v6 = vld [vmem:[#allocation2 + $0x54c] ss:$16 sps:$4 sm:$0xff]  }
  0xc8   :  { %1910 = vmatpush2.bf16.msra.mxu1 %v4066_v7  ;;  %1870 = vmatprep.subr.bf16.mxu0 %v4071_v8  ;;  %v4158_v7 = vld [vmem:[#allocation2 + $0x74c] ss:$16 sps:$4 sm:$0xff]   ;;  %v4153_v8 = vld [vmem:[#allocation2 + $0x548] ss:$16 sps:$4 sm:$0xff]  }
  0xc9   :  { %1911 = vmatprep.subr.bf16.mxu1 %v4074_v9  ;;  %v4156_v9 = vld [vmem:[#allocation2 + $0x748] ss:$16 sps:$4 sm:$0xff]  }
  0xcb   :  { %1871 = vmatpush2.bf16.msra.mxu0 %v4069_v53  ;;  %v4161_v53 = vld [vmem:[#allocation2 + $0x52c] ss:$16 sps:$4 sm:$0xff]  }
  0xcc   :  { %1912 = vmatpush2.bf16.msra.mxu1 %v4072_v12  ;;  %1922 = vmatprep.subr.bf16.mxu0 %v4077_v13  ;;  %v4164_v12 = vld [vmem:[#allocation2 + $0x72c] ss:$16 sps:$4 sm:$0xff]   ;;  %v4159_v13 = vld [vmem:[#allocation2 + $0x528] ss:$16 sps:$4 sm:$0xff]  }
  0xcd   :  { %1963 = vmatprep.subr.bf16.mxu1 %v4080_v14  ;;  %v4162_v14 = vld [vmem:[#allocation2 + $0x728] ss:$16 sps:$4 sm:$0xff]  }
  0xce   :  { %1873 = vmatmul.mubr.bf16.vlgmr.msra.gmra.mxu0 %v4521_v31  ;;  %v4098_v31 = vld [vmem:[#allocation2 + $0x68c] ss:$16 sps:$4 sm:$0xff]  }
  0xcf   :  { %1914 = vmatmul.mubr.bf16.vlgmr.msra.gmra.mxu1 %v4523_v32  ;;  %1923 = vmatpush1.bf16.msra.mxu0 %v4075_v15  ;;  %v4096_v32 = vld [vmem:[#allocation2 + $0x688] ss:$16 sps:$4 sm:$0xff]   ;;  %v4167_v15 = vld [vmem:[#allocation2 + $0x50c] ss:$16 sps:$4 sm:$0xff]  }
  0xd0   :  { %1964 = vmatpush1.bf16.msra.mxu1 %v4078_v16  ;;  %1924 = vmatprep.subr.bf16.mxu0 %v4083_v19  ;;  %v4170_v16 = vld [vmem:[#allocation2 + $0x70c] ss:$16 sps:$4 sm:$0xff]   ;;  %v4165_v19 = vld [vmem:[#allocation2 + $0x508] ss:$16 sps:$4 sm:$0xff]  }
  0xd1   :  { %1965 = vmatprep.subr.bf16.mxu1 %v4086_v20  ;;  %1954 = vmatprep.mubr.bf16.mxu0 %v4537_v17  ;;  %v4107_v17 = vld [vmem:[#allocation2 + $0x44c] ss:$16 sps:$4 sm:$0xff]   ;;  %v4168_v20 = vld [vmem:[#allocation2 + $0x708] ss:$16 sps:$4 sm:$0xff]  }
  0xd2   :  { %1995 = vmatprep.mubr.bf16.mxu1 %v4539_v18  ;;  %v4110_v18 = vld [vmem:[#allocation2 + $0x64c] ss:$16 sps:$4 sm:$0xff]  }
  0xd3   :  { %1925 = vmatpush1.bf16.msra.mxu0 %v4081_v21  ;;  %v4173_v21 = vld [vmem:[%s5095_s4 + $0xe4] ss:$16 sps:$4 sm:$0xff]  }
  0xd4   :  { %1966 = vmatpush1.bf16.msra.mxu1 %v4084_v22  ;;  %1926 = vmatprep.subr.bf16.mxu0 %v4089_v10  ;;  %v4171_v22 = vld [vmem:[%s5095_s4 + $0xe0] ss:$16 sps:$4 sm:$0xff]   ;;  %v4176_v10 = vld [vmem:[%s5095_s4 + $0xc4] ss:$16 sps:$4 sm:$0xff]  }
  0xd5   :  { %1967 = vmatprep.subr.bf16.mxu1 %v4092_v11 }
  0xd7   :  { %1927 = vmatpush1.bf16.msra.mxu0 %v4087_v23 }
  0xd8   :  { %1968 = vmatpush1.bf16.msra.mxu1 %v4090_v24  ;;  %1928 = vmatprep.subr.bf16.mxu0 %v4095_v25  ;;  %v4174_v24 = vld [vmem:[%s5095_s4 + $0xc0] ss:$16 sps:$4 sm:$0xff]  }
  0xd9   :  { %1969 = vmatprep.subr.bf16.mxu1 %v4098_v31 }
  0xdb   :  { %1929 = vmatpush1.bf16.msra.mxu0 %v4093_v26  ;;  %v4179_v26 = vld [vmem:[%s5095_s4 + $0xa4] ss:$16 sps:$4 sm:$0xff]  }
  0xdc   :  { %1970 = vmatpush1.bf16.msra.mxu1 %v4096_v32  ;;  %1930 = vmatprep.subr.bf16.mxu0 %v4101_v27 }
  0xdd   :  { %1971 = vmatprep.subr.bf16.mxu1 %v4104_v28 }
  0xdf   :  { %1931 = vmatpush1.bf16.msra.mxu0 %v4099_v29  ;;  %v4182_v29 = vld [vmem:[%s5095_s4 + $0x84] ss:$16 sps:$4 sm:$0xff]  }
  0xe0   :  { %1972 = vmatpush1.bf16.msra.mxu1 %v4102_v30  ;;  %1932 = vmatprep.subr.bf16.mxu0 %v4107_v17  ;;  %v4180_v30 = vld [vmem:[%s5095_s4 + $0x80] ss:$16 sps:$4 sm:$0xff]  }
  0xe1   :  { %1973 = vmatprep.subr.bf16.mxu1 %v4110_v18  ;;  %v4267_v17 = vld [vmem:[%s5095_s4 + $0x2e0] ss:$16 sps:$4 sm:$0xff]   ;;  %v4269_v18 = vld [vmem:[%s5095_s4 + $0x2e4] ss:$16 sps:$4 sm:$0xff]  }
  0xe3   :  { %1933 = vmatpush1.bf16.msra.mxu0 %v4105_v33  ;;  %v4185_v33 = vld [vmem:[%s5095_s4 + $0x64] ss:$16 sps:$4 sm:$0xff]  }
  0xe4   :  { %1974 = vmatpush1.bf16.msra.mxu1 %v4108_v34  ;;  %1934 = vmatprep.subr.bf16.mxu0 %v4113_v35  ;;  %v4270_v34 = vld [vmem:[%s5095_s4 + $0x2c0] ss:$16 sps:$4 sm:$0xff]   ;;  %v4272_v35 = vld [vmem:[%s5095_s4 + $0x2c4] ss:$16 sps:$4 sm:$0xff]  }
  0xe5   :  { %1975 = vmatprep.subr.bf16.mxu1 %v4116_v36  ;;  %v4183_v36 = vld [vmem:[%s5095_s4 + $0x60] ss:$16 sps:$4 sm:$0xff]  }
  0xe7   :  { %1935 = vmatpush1.bf16.msra.mxu0 %v4111_v37  ;;  %v4275_v37 = vld [vmem:[%s5095_s4 + $0x2a4] ss:$16 sps:$4 sm:$0xff]  }
  0xe8   :  { %1976 = vmatpush1.bf16.msra.mxu1 %v4114_v38  ;;  %1936 = vmatprep.subr.bf16.mxu0 %v4119_v39  ;;  %v4188_v38 = vld [vmem:[%s5095_s4 + $0x44] ss:$16 sps:$4 sm:$0xff]   ;;  %v4273_v39 = vld [vmem:[%s5095_s4 + $0x2a0] ss:$16 sps:$4 sm:$0xff]  }
  0xe9   :  { %1977 = vmatprep.subr.bf16.mxu1 %v4122_v40  ;;  %v4186_v40 = vld [vmem:[%s5095_s4 + $0x40] ss:$16 sps:$4 sm:$0xff]  }
  0xeb   :  { %1937 = vmatpush1.bf16.msra.mxu0 %v4117_v41  ;;  %v4278_v41 = vld [vmem:[%s5095_s4 + $0x284] ss:$16 sps:$4 sm:$0xff]  }
  0xec   :  { %1978 = vmatpush1.bf16.msra.mxu1 %v4120_v43  ;;  %1938 = vmatprep.subr.bf16.mxu0 %v4125_v44  ;;  %v4191_v43 = vld [vmem:[%s5095_s4 + $0x24] ss:$16 sps:$4 sm:$0xff]   ;;  %v4276_v44 = vld [vmem:[%s5095_s4 + $0x280] ss:$16 sps:$4 sm:$0xff]  }
  0xed   :  { %1979 = vmatprep.subr.bf16.mxu1 %v4128_v45  ;;  %v4189_v45 = vld [vmem:[%s5095_s4 + $0x20] ss:$16 sps:$4 sm:$0xff]  }
  0xef   :  { %1939 = vmatpush2.bf16.msra.mxu0 %v4123_v46  ;;  %v4281_v46 = vld [vmem:[%s5095_s4 + $0x264] ss:$16 sps:$4 sm:$0xff]  }
  0xf0   :  { %1980 = vmatpush2.bf16.msra.mxu1 %v4126_v49  ;;  %1940 = vmatprep.subr.bf16.mxu0 %v4131_v50  ;;  %v4194_v49 = vld [vmem:[%s5095_s4 + $0x4] ss:$16 sps:$4 sm:$0xff]   ;;  %v4279_v50 = vld [vmem:[%s5095_s4 + $0x260] ss:$16 sps:$4 sm:$0xff]  }
  0xf1   :  { %1981 = vmatprep.subr.bf16.mxu1 %v4134_v51  ;;  %v4192_v51 = vld [vmem:[%s5095_s4] ss:$16 sps:$4 sm:$0xff]  }
  0xf3   :  { %1941 = vmatpush2.bf16.msra.mxu0 %v4129_v52  ;;  %v4284_v52 = vld [vmem:[%s5095_s4 + $0x244] ss:$16 sps:$4 sm:$0xff]  }
  0xf4   :  { %1982 = vmatpush2.bf16.msra.mxu1 %v4132_v54  ;;  %1942 = vmatprep.subr.bf16.mxu0 %v4137_v55  ;;  %v4197_v54 = vld [vmem:[%s5095_s4 + $0x1e4] ss:$16 sps:$4 sm:$0xff]   ;;  %v4282_v55 = vld [vmem:[%s5095_s4 + $0x240] ss:$16 sps:$4 sm:$0xff]  }
  0xf5   :  { %1983 = vmatprep.subr.bf16.mxu1 %v4140_v56  ;;  %v4195_v56 = vld [vmem:[%s5095_s4 + $0x1e0] ss:$16 sps:$4 sm:$0xff]  }
  0xf7   :  { %1943 = vmatpush2.bf16.msra.mxu0 %v4135_v57  ;;  %v4287_v57 = vld [vmem:[%s5095_s4 + $0x224] ss:$16 sps:$4 sm:$0xff]  }
  0xf8   :  { %1984 = vmatpush2.bf16.msra.mxu1 %v4138_v58  ;;  %1944 = vmatprep.subr.bf16.mxu0 %v4143_v59  ;;  %v4200_v58 = vld [vmem:[%s5095_s4 + $0x1c4] ss:$16 sps:$4 sm:$0xff]   ;;  %v4285_v59 = vld [vmem:[%s5095_s4 + $0x220] ss:$16 sps:$4 sm:$0xff]  }
  0xf9   :  { %1985 = vmatprep.subr.bf16.mxu1 %v4146_v60  ;;  %v4198_v60 = vld [vmem:[%s5095_s4 + $0x1c0] ss:$16 sps:$4 sm:$0xff]  }
  0xfb   :  { %1945 = vmatpush2.bf16.msra.mxu0 %v4141_v61  ;;  %v4290_v61 = vld [vmem:[%s5095_s4 + $0x204] ss:$16 sps:$4 sm:$0xff]  }
  0xfc   :  { %1986 = vmatpush2.bf16.msra.mxu1 %v4144_v62  ;;  %1946 = vmatprep.subr.bf16.mxu0 %v4149_v0  ;;  %v4203_v62 = vld [vmem:[%s5095_s4 + $0x1a4] ss:$16 sps:$4 sm:$0xff]   ;;  %v4288_v0 = vld [vmem:[%s5095_s4 + $0x200] ss:$16 sps:$4 sm:$0xff]  }
  0xfd   :  { %1987 = vmatprep.subr.bf16.mxu1 %v4152_v63  ;;  %v4201_v63 = vld [vmem:[%s5095_s4 + $0x1a0] ss:$16 sps:$4 sm:$0xff]  }
  0xff   :  { %1947 = vmatpush2.bf16.msra.mxu0 %v4147_v42  ;;  %v4293_v42 = vld [vmem:[%s5095_s4 + $0x3e4] ss:$16 sps:$4 sm:$0xff]  }
 0x100   :  { %1988 = vmatpush2.bf16.msra.mxu1 %v4150_v5  ;;  %1948 = vmatprep.subr.bf16.mxu0 %v4155_v6  ;;  %v4206_v5 = vld [vmem:[%s5095_s4 + $0x184] ss:$16 sps:$4 sm:$0xff]   ;;  %v4291_v6 = vld [vmem:[%s5095_s4 + $0x3e0] ss:$16 sps:$4 sm:$0xff]  }
 0x101   :  { %1989 = vmatprep.subr.bf16.mxu1 %v4158_v7  ;;  %v4204_v7 = vld [vmem:[%s5095_s4 + $0x180] ss:$16 sps:$4 sm:$0xff]  }
 0x103   :  { %1949 = vmatpush2.bf16.msra.mxu0 %v4153_v8  ;;  %v4296_v8 = vld [vmem:[%s5095_s4 + $0x3c4] ss:$16 sps:$4 sm:$0xff]  }
 0x104   :  { %1990 = vmatpush2.bf16.msra.mxu1 %v4156_v9  ;;  %1950 = vmatprep.subr.bf16.mxu0 %v4161_v53  ;;  %v4209_v9 = vld [vmem:[%s5095_s4 + $0x164] ss:$16 sps:$4 sm:$0xff]   ;;  %v4294_v53 = vld [vmem:[%s5095_s4 + $0x3c0] ss:$16 sps:$4 sm:$0xff]  }
 0x105   :  { %1991 = vmatprep.subr.bf16.mxu1 %v4164_v12  ;;  %v4207_v12 = vld [vmem:[%s5095_s4 + $0x160] ss:$16 sps:$4 sm:$0xff]  }
 0x107   :  { %1951 = vmatpush2.bf16.msra.mxu0 %v4159_v13  ;;  %v4299_v13 = vld [vmem:[%s5095_s4 + $0x3a4] ss:$16 sps:$4 sm:$0xff]  }
 0x108   :  { %1992 = vmatpush2.bf16.msra.mxu1 %v4162_v14  ;;  %1952 = vmatprep.subr.bf16.mxu0 %v4167_v15  ;;  %v4212_v14 = vld [vmem:[%s5095_s4 + $0x144] ss:$16 sps:$4 sm:$0xff]   ;;  %v4297_v15 = vld [vmem:[%s5095_s4 + $0x3a0] ss:$16 sps:$4 sm:$0xff]  }
 0x109   :  { %1993 = vmatprep.subr.bf16.mxu1 %v4170_v16  ;;  %v4210_v16 = vld [vmem:[%s5095_s4 + $0x140] ss:$16 sps:$4 sm:$0xff]  }
 0x10b   :  { %1953 = vmatpush2.bf16.msra.mxu0 %v4165_v19  ;;  %v4302_v19 = vld [vmem:[%s5095_s4 + $0x384] ss:$16 sps:$4 sm:$0xff]  }
 0x10c   :  { %1994 = vmatpush2.bf16.msra.mxu1 %v4168_v20  ;;  %2802 = vmatprep.subr.bf16.mxu0 %v4173_v21  ;;  %v4215_v20 = vld [vmem:[%s5095_s4 + $0x124] ss:$16 sps:$4 sm:$0xff]   ;;  %v4732_v21 = vld [vmem:[%s5094_s3] sm:$0xf] }
 0x10d   :  { %2843 = vmatprep.subr.bf16.mxu1 %v4269_v18 }
 0x10e   :  { %v4572_v11 = vpop.f32.mrf.mxu0  ;;  %1955 = vmatmul.mubr.bf16.vlgmr.msra.gmra.mxu0 %v4551_v4  ;;  %v4177_v4 = vld [vmem:[%s5095_s4 + $0xa0] ss:$16 sps:$4 sm:$0xff]  }
 0x10f   :  { %v4574_v23 = vpop.f32.mrf.mxu1  ;;  %1996 = vmatmul.mubr.bf16.vlgmr.msra.gmra.mxu1 %v4553_v3  ;;  %2803 = vmatpush1.bf16.msra.mxu0 %v4171_v22  ;;  %v4300_v22 = vld [vmem:[%s5095_s4 + $0x380] ss:$16 sps:$4 sm:$0xff]  }
 0x110   :  { %v4581_v25 = vpop.f32.mrf.mxu0  ;;  %2804 = vmatprep.subr.bf16.mxu0 %v4176_v10  ;;  %2844 = vmatpush1.bf16.msra.mxu1 %v4267_v17  ;;  %v4213_v10 = vld [vmem:[%s5095_s4 + $0x120] ss:$16 sps:$4 sm:$0xff]  }
 0x111   :  { %v4583_v31 = vpop.f32.mrf.mxu1  ;;  %2845 = vmatprep.subr.bf16.mxu1 %v4272_v35  ;;  %v4306_v17 = vld [vmem:[%s5095_s4 + $0x340] ss:$16 sps:$4 sm:$0xff]  }
 0x112   :  { %v1714_v32 = vpop.f32.mrf.mxu0 }
 0x113   :  { %v1755_v27 = vpop.f32.mrf.mxu1  ;;  %2805 = vmatpush1.bf16.msra.mxu0 %v4174_v24  ;;  %v4305_v24 = vld [vmem:[%s5095_s4 + $0x364] ss:$16 sps:$4 sm:$0xff]   ;;  %v379_v32 = vrot.slane %v4732_v21, %v4497_v1 }
 0x114   :  { %v1715_v3 = vpop.f32.mrf.mxu0  ;;  %2806 = vmatprep.subr.bf16.mxu0 %v4179_v26  ;;  %2846 = vmatpush1.bf16.msra.mxu1 %v4270_v34  ;;  %v4218_v26 = vld [vmem:[%s5095_s4 + $0x104] ss:$16 sps:$4 sm:$0xff]   ;;  %v4303_v27 = vld [vmem:[%s5095_s4 + $0x360] ss:$16 sps:$4 sm:$0xff]  }
 0x115   :  { %v1756_v28 = vpop.f32.mrf.mxu1  ;;  %2847 = vmatprep.subr.bf16.mxu1 %v4275_v37  ;;  %v4216_v3 = vld [vmem:[%s5095_s4 + $0x100] ss:$16 sps:$4 sm:$0xff]  }
 0x116   :  { %v4308_v28 = vld [vmem:[%s5095_s4 + $0x344] ss:$16 sps:$4 sm:$0xff]  }
 0x117   :  { %2807 = vmatpush1.bf16.msra.mxu0 %v4177_v4  ;;  %v383_v4 = vrot.slane %v4732_v21, %v4471_v47 }
 0x118   :  { %2808 = vmatprep.subr.bf16.mxu0 %v4182_v29  ;;  %2848 = vmatpush1.bf16.msra.mxu1 %v4273_v39  ;;  %v4221_v29 = vld [vmem:[%s5095_s4 + $0xec] ss:$16 sps:$4 sm:$0xff]   ;;  %v4311_v39 = vld [vmem:[%s5095_s4 + $0x324] ss:$16 sps:$4 sm:$0xff]  }
 0x119   :  { %2849 = vmatprep.subr.bf16.mxu1 %v4278_v41  ;;  %v1713_v18 = vadd.f32 %v4581_v25, %v383_v4  ;;  %v4309_v25 = vld [vmem:[%s5095_s4 + $0x320] ss:$16 sps:$4 sm:$0xff]  }
 0x11b   :  { %2809 = vmatpush1.bf16.msra.mxu0 %v4180_v30  ;;  %v1711_v30 = vadd.f32 %v4572_v11, %v379_v32  ;;  %v4263_v32 = vld [vmem:[%s5095_s4 + $0x12c] ss:$16 sps:$4 sm:$0xff]  }
 0x11c   :  { %2810 = vmatprep.subr.bf16.mxu0 %v4185_v33  ;;  %2850 = vmatpush1.bf16.msra.mxu1 %v4276_v44 }
 0x11d   :  { %2851 = vmatprep.subr.bf16.mxu1 %v4281_v46  ;;  %v1752_v33 = vadd.f32 %v4574_v23, %v1711_v30  ;;  %v4266_v30 = vld [vmem:[%s5095_s4 + $0x10c] ss:$16 sps:$4 sm:$0xff]  }
 0x11f   :  { %2811 = vmatpush1.bf16.msra.mxu0 %v4183_v36  ;;  %v1754_v36 = vadd.f32 %v4583_v31, %v1713_v18 }
 0x120   :  { %2812 = vmatprep.subr.bf16.mxu0 %v4188_v38  ;;  %2852 = vmatpush1.bf16.msra.mxu1 %v4279_v50 }
 0x121   :  { %2853 = vmatprep.subr.bf16.mxu1 %v4284_v52 }
 0x123   :  { %2813 = vmatpush1.bf16.msra.mxu0 %v4186_v40 }
 0x124   :  { %2814 = vmatprep.subr.bf16.mxu0 %v4191_v43  ;;  %2854 = vmatpush1.bf16.msra.mxu1 %v4282_v55 }
 0x125   :  { %2855 = vmatprep.subr.bf16.mxu1 %v4287_v57  ;;  %v4317_v57 = vld [vmem:[%s5095_s4 + $0x2ec] ss:$16 sps:$4 sm:$0xff]  }
 0x127   :  { %2815 = vmatpush1.bf16.msra.mxu0 %v4189_v45 }
 0x128   :  { %2816 = vmatprep.subr.bf16.mxu0 %v4194_v49  ;;  %2856 = vmatpush1.bf16.msra.mxu1 %v4285_v59  ;;  %v4314_v49 = vld [vmem:[%s5095_s4 + $0x304] ss:$16 sps:$4 sm:$0xff]   ;;  %v4227_v59 = vld [vmem:[%s5095_s4 + $0xac] ss:$16 sps:$4 sm:$0xff]  }
 0x129   :  { %2857 = vmatprep.subr.bf16.mxu1 %v4290_v61  ;;  %v4230_v61 = vld [vmem:[%s5095_s4 + $0x8c] ss:$16 sps:$4 sm:$0xff]  }
 0x12b   :  { %2817 = vmatpush1.bf16.msra.mxu0 %v4192_v51  ;;  %v4312_v51 = vld [vmem:[%s5095_s4 + $0x300] ss:$16 sps:$4 sm:$0xff]  }
 0x12c   :  { %2818 = vmatprep.subr.bf16.mxu0 %v4197_v54  ;;  %2858 = vmatpush1.bf16.msra.mxu1 %v4288_v0  ;;  %v4219_v54 = vld [vmem:[%s5095_s4 + $0xe8] ss:$16 sps:$4 sm:$0xff]   ;;  %v4233_v0 = vld [vmem:[%s5095_s4 + $0x6c] ss:$16 sps:$4 sm:$0xff]  }
 0x12d   :  { %2859 = vmatprep.subr.bf16.mxu1 %v4293_v42  ;;  %v4236_v42 = vld [vmem:[%s5095_s4 + $0x4c] ss:$16 sps:$4 sm:$0xff]  }
 0x12f   :  { %2819 = vmatpush2.bf16.msra.mxu0 %v4195_v56  ;;  %v4224_v56 = vld [vmem:[%s5095_s4 + $0xcc] ss:$16 sps:$4 sm:$0xff]  }
 0x130   :  { %2820 = vmatprep.subr.bf16.mxu0 %v4200_v58  ;;  %2860 = vmatpush2.bf16.msra.mxu1 %v4291_v6  ;;  %v4222_v58 = vld [vmem:[%s5095_s4 + $0xc8] ss:$16 sps:$4 sm:$0xff]   ;;  %v4239_v6 = vld [vmem:[%s5095_s4 + $0x2c] ss:$16 sps:$4 sm:$0xff]  }
 0x131   :  { %2861 = vmatprep.subr.bf16.mxu1 %v4296_v8  ;;  %v4242_v8 = vld [vmem:[%s5095_s4 + $0xc] ss:$16 sps:$4 sm:$0xff]  }
 0x133   :  { %2821 = vmatpush2.bf16.msra.mxu0 %v4198_v60  ;;  %v4225_v60 = vld [vmem:[%s5095_s4 + $0xa8] ss:$16 sps:$4 sm:$0xff]  }
 0x134   :  { %2822 = vmatprep.subr.bf16.mxu0 %v4203_v62  ;;  %2862 = vmatpush2.bf16.msra.mxu1 %v4294_v53  ;;  %v4228_v62 = vld [vmem:[%s5095_s4 + $0x88] ss:$16 sps:$4 sm:$0xff]   ;;  %v4245_v53 = vld [vmem:[%s5095_s4 + $0x1ec] ss:$16 sps:$4 sm:$0xff]  }
 0x135   :  { %2863 = vmatprep.subr.bf16.mxu1 %v4299_v13  ;;  %v4248_v13 = vld [vmem:[%s5095_s4 + $0x1cc] ss:$16 sps:$4 sm:$0xff]  }
 0x137   :  { %2823 = vmatpush2.bf16.msra.mxu0 %v4201_v63  ;;  %v4231_v63 = vld [vmem:[%s5095_s4 + $0x68] ss:$16 sps:$4 sm:$0xff]  }
 0x138   :  { %2824 = vmatprep.subr.bf16.mxu0 %v4206_v5  ;;  %2864 = vmatpush2.bf16.msra.mxu1 %v4297_v15  ;;  %v4234_v5 = vld [vmem:[%s5095_s4 + $0x48] ss:$16 sps:$4 sm:$0xff]   ;;  %v4251_v15 = vld [vmem:[%s5095_s4 + $0x1ac] ss:$16 sps:$4 sm:$0xff]  }
 0x139   :  { %2865 = vmatprep.subr.bf16.mxu1 %v4302_v19  ;;  %v4254_v19 = vld [vmem:[%s5095_s4 + $0x18c] ss:$16 sps:$4 sm:$0xff]  }
 0x13b   :  { %2825 = vmatpush2.bf16.msra.mxu0 %v4204_v7  ;;  %v4237_v7 = vld [vmem:[%s5095_s4 + $0x28] ss:$16 sps:$4 sm:$0xff]  }
 0x13c   :  { %2826 = vmatprep.subr.bf16.mxu0 %v4209_v9  ;;  %2866 = vmatpush2.bf16.msra.mxu1 %v4300_v22  ;;  %v4240_v9 = vld [vmem:[%s5095_s4 + $0x8] ss:$16 sps:$4 sm:$0xff]   ;;  %v4257_v22 = vld [vmem:[%s5095_s4 + $0x16c] ss:$16 sps:$4 sm:$0xff]  }
 0x13d   :  { %2867 = vmatprep.subr.bf16.mxu1 %v4305_v24  ;;  %v4260_v24 = vld [vmem:[%s5095_s4 + $0x14c] ss:$16 sps:$4 sm:$0xff]  }
 0x13f   :  { %2827 = vmatpush2.bf16.msra.mxu0 %v4207_v12  ;;  %v4243_v12 = vld [vmem:[%s5095_s4 + $0x1e8] ss:$16 sps:$4 sm:$0xff]  }
 0x140   :  { %2828 = vmatprep.subr.bf16.mxu0 %v4212_v14  ;;  %2868 = vmatpush2.bf16.msra.mxu1 %v4303_v27  ;;  %v4246_v14 = vld [vmem:[%s5095_s4 + $0x1c8] ss:$16 sps:$4 sm:$0xff]  }
 0x141   :  { %2869 = vmatprep.subr.bf16.mxu1 %v4308_v28 }
 0x143   :  { %2829 = vmatpush2.bf16.msra.mxu0 %v4210_v16  ;;  %v4249_v16 = vld [vmem:[%s5095_s4 + $0x1a8] ss:$16 sps:$4 sm:$0xff]  }
 0x144   :  { %2830 = vmatprep.subr.bf16.mxu0 %v4215_v20  ;;  %2870 = vmatpush2.bf16.msra.mxu1 %v4306_v17  ;;  %v4252_v20 = vld [vmem:[%s5095_s4 + $0x188] ss:$16 sps:$4 sm:$0xff]  }
 0x145   :  { %2871 = vmatprep.subr.bf16.mxu1 %v4311_v39 }
 0x147   :  { %2831 = vmatpush2.bf16.msra.mxu0 %v4213_v10  ;;  %v4255_v10 = vld [vmem:[%s5095_s4 + $0x168] ss:$16 sps:$4 sm:$0xff]  }
 0x148   :  { %2832 = vmatprep.subr.bf16.mxu0 %v4218_v26  ;;  %2872 = vmatpush2.bf16.msra.mxu1 %v4309_v25  ;;  %v4258_v26 = vld [vmem:[%s5095_s4 + $0x148] ss:$16 sps:$4 sm:$0xff]  }
 0x149   :  { %2873 = vmatprep.subr.bf16.mxu1 %v4314_v49 }
 0x14b   :  { %2833 = vmatpush2.bf16.msra.mxu0 %v4216_v3  ;;  %v4261_v3 = vld [vmem:[%s5095_s4 + $0x128] ss:$16 sps:$4 sm:$0xff]  }
 0x14c   :  { %2884 = vmatprep.subr.bf16.mxu0 %v4221_v29  ;;  %2874 = vmatpush2.bf16.msra.mxu1 %v4312_v51 }
 0x14d   :  { %2925 = vmatprep.subr.bf16.mxu1 %v4317_v57 }
 0x14e   :  { %v1792_v34 = vpop.f32.mrf.mxu0 }
 0x14f   :  { %v1833_v35 = vpop.f32.mrf.mxu1  ;;  %v1793_v37 = vadd.f32 %v1792_v34, %v1752_v33  ;;  %v4264_v33 = vld [vmem:[%s5095_s4 + $0x108] ss:$16 sps:$4 sm:$0xff]  }
 0x150   :  { %v1794_v38 = vpop.f32.mrf.mxu0 }
 0x151   :  { %v1835_v11 = vpop.f32.mrf.mxu1  ;;  %v1834_v40 = vadd.f32 %v1833_v35, %v1793_v37  ;;  %v1795_v41 = vadd.f32 %v1794_v38, %v1754_v36  ;;  %v387_v36 = vrot.slane %v4732_v21, %v4500_v2  ;;  %v391_v37 = vrot.slane %v4732_v21, %v4474_v48  ;;  %v4315_v21 = vld [vmem:[%s5095_s4 + $0x2e8] ss:$16 sps:$4 sm:$0xff]  }
 0x152   :  { %v1796_v43 = vpop.f32.mrf.mxu0 }
 0x153   :  { %v1837_v23 = vpop.f32.mrf.mxu1  ;;  %v1836_v44 = vadd.f32 %v1835_v11, %v1795_v41  ;;  %v2004_v45 = vmax.f32 %v1834_v40, 0.0 }
 0x154   :  { %v1797_v31 = vpop.f32.mrf.mxu0 }
 0x155   :  { %v1838_v46 = vpop.f32.mrf.mxu1  ;;  %v2005_v50 = vmax.f32 %v1836_v44, 0.0  ;;  %v4784_v55 = vpack.c.bf16 %v2004_v45, %v2004_v45 }
 0x157   :  { %v2009_v52 = vpack.c.bf16 %v2005_v50, %v2005_v50 }
 0x159   :  { %2834 = vmatprep.mubr.bf16.mxu0 %v2009_v52 }
 0x15a   :  { %2835 = vmatmul.mubr.bf16.vlgmr.msra.gmra.mxu0 %v4784_v55 }
 0x15b   :  { %2885 = vmatpush1.bf16.msra.mxu0 %v4219_v54  ;;  %2916 = vmatprep.mubr.bf16.mxu0 %v2009_v52 }
 0x15c   :  { %2886 = vmatprep.subr.bf16.mxu0 %v4224_v56 }
 0x15f   :  { %2887 = vmatpush1.bf16.msra.mxu0 %v4222_v58  ;;  %v4320_v58 = vld [vmem:[%s5095_s4 + $0x2cc] ss:$16 sps:$4 sm:$0xff]  }
 0x160   :  { %2888 = vmatprep.subr.bf16.mxu0 %v4227_v59  ;;  %v4318_v59 = vld [vmem:[%s5095_s4 + $0x2c8] ss:$16 sps:$4 sm:$0xff]  }
 0x163   :  { %2889 = vmatpush1.bf16.msra.mxu0 %v4225_v60  ;;  %v4323_v60 = vld [vmem:[%s5095_s4 + $0x2ac] ss:$16 sps:$4 sm:$0xff]  }
 0x164   :  { %2890 = vmatprep.subr.bf16.mxu0 %v4230_v61  ;;  %v4321_v61 = vld [vmem:[%s5095_s4 + $0x2a8] ss:$16 sps:$4 sm:$0xff]  }
 0x167   :  { %2891 = vmatpush1.bf16.msra.mxu0 %v4228_v62  ;;  %v4326_v62 = vld [vmem:[%s5095_s4 + $0x28c] ss:$16 sps:$4 sm:$0xff]  }
 0x168   :  { %2892 = vmatprep.subr.bf16.mxu0 %v4233_v0  ;;  %v4363_v0 = vld [vmem:[%s5097_s6 + $0x78] sm:$0xff]  }
 0x16b   :  { %2893 = vmatpush1.bf16.msra.mxu0 %v4231_v63  ;;  %v4364_v63 = vld [vmem:[%s5097_s6 + $0x38] sm:$0xff]  }
 0x16c   :  { %2894 = vmatprep.subr.bf16.mxu0 %v4236_v42  ;;  %v4365_v42 = vld [vmem:[%s5097_s6 + $0x70] sm:$0xff]  }
 0x16f   :  { %2895 = vmatpush1.bf16.msra.mxu0 %v4234_v5  ;;  %v4324_v5 = vld [vmem:[%s5095_s4 + $0x288] ss:$16 sps:$4 sm:$0xff]  }
 0x170   :  { %2896 = vmatprep.subr.bf16.mxu0 %v4239_v6  ;;  %v4366_v6 = vld [vmem:[%s5097_s6 + $0x30] sm:$0xff]  }
 0x173   :  { %2897 = vmatpush1.bf16.msra.mxu0 %v4237_v7  ;;  %v4329_v7 = vld [vmem:[%s5095_s4 + $0x26c] ss:$16 sps:$4 sm:$0xff]  }
 0x174   :  { %2898 = vmatprep.subr.bf16.mxu0 %v4242_v8  ;;  %v4367_v8 = vld [vmem:[%s5097_s6 + $0x68] sm:$0xff]  }
 0x177   :  { %2899 = vmatpush1.bf16.msra.mxu0 %v4240_v9  ;;  %v4327_v9 = vld [vmem:[%s5095_s4 + $0x268] ss:$16 sps:$4 sm:$0xff]  }
 0x178   :  { %2900 = vmatprep.subr.bf16.mxu0 %v4245_v53  ;;  %v4368_v53 = vld [vmem:[%s5097_s6 + $0x28] sm:$0xff]  }
 0x17b   :  { %2901 = vmatpush2.bf16.msra.mxu0 %v4243_v12  ;;  %v4332_v12 = vld [vmem:[%s5095_s4 + $0x24c] ss:$16 sps:$4 sm:$0xff]  }
 0x17c   :  { %2902 = vmatprep.subr.bf16.mxu0 %v4248_v13  ;;  %v4369_v13 = vld [vmem:[%s5097_s6 + $0x60] sm:$0xff]  }
 0x17f   :  { %2903 = vmatpush2.bf16.msra.mxu0 %v4246_v14  ;;  %v4330_v14 = vld [vmem:[%s5095_s4 + $0x248] ss:$16 sps:$4 sm:$0xff]  }
 0x180   :  { %2904 = vmatprep.subr.bf16.mxu0 %v4251_v15  ;;  %v4370_v15 = vld [vmem:[%s5097_s6 + $0x20] sm:$0xff]  }
 0x183   :  { %2905 = vmatpush2.bf16.msra.mxu0 %v4249_v16  ;;  %v4335_v16 = vld [vmem:[%s5095_s4 + $0x22c] ss:$16 sps:$4 sm:$0xff]  }
 0x184   :  { %2906 = vmatprep.subr.bf16.mxu0 %v4254_v19  ;;  %v4371_v19 = vld [vmem:[%s5097_s6 + $0x58] sm:$0xff]  }
 0x187   :  { %2907 = vmatpush2.bf16.msra.mxu0 %v4252_v20  ;;  %v4333_v20 = vld [vmem:[%s5095_s4 + $0x228] ss:$16 sps:$4 sm:$0xff]  }
 0x188   :  { %2908 = vmatprep.subr.bf16.mxu0 %v4257_v22  ;;  %v4372_v22 = vld [vmem:[%s5097_s6 + $0x18] sm:$0xff]  }
 0x18b   :  { %2909 = vmatpush2.bf16.msra.mxu0 %v4255_v10  ;;  %v4338_v10 = vld [vmem:[%s5095_s4 + $0x20c] ss:$16 sps:$4 sm:$0xff]  }
 0x18c   :  { %2910 = vmatprep.subr.bf16.mxu0 %v4260_v24  ;;  %v4373_v24 = vld [vmem:[%s5097_s6 + $0x50] sm:$0xff]  }
 0x18e   :  { %v1874_v27 = vpop.f32.mrf.mxu0 }
 0x18f   :  { %v1915_v4 = vpop.f32.mrf.mxu1  ;;  %2911 = vmatpush2.bf16.msra.mxu0 %v4258_v26  ;;  %v1875_v38 = vadd.f32 %v1874_v27, %v387_v36  ;;  %v4336_v26 = vld [vmem:[%s5095_s4 + $0x208] ss:$16 sps:$4 sm:$0xff]   ;;  %v4341_v27 = vld [vmem:[%s5095_s4 + $0x3ec] ss:$16 sps:$4 sm:$0xff]  }
 0x190   :  { %v1876_v28 = vpop.f32.mrf.mxu0  ;;  %2912 = vmatprep.subr.bf16.mxu0 %v4263_v32  ;;  %v4374_v32 = vld [vmem:[%s5097_s6 + $0x10] sm:$0xff]   ;;  %v4354_v36 = vld [vmem:[%s5095_s4 + $0x348] ss:$16 sps:$4 sm:$0xff]  }
 0x191   :  { %v1917_v29 = vpop.f32.mrf.mxu1  ;;  %v1877_v11 = vadd.f32 %v1876_v28, %v391_v37  ;;  %v1916_v39 = vadd.f32 %v1915_v4, %v1875_v38  ;;  %v4339_v4 = vld [vmem:[%s5095_s4 + $0x3e8] ss:$16 sps:$4 sm:$0xff]   ;;  %v4359_v37 = vld [vmem:[%s5095_s4 + $0x32c] ss:$16 sps:$4 sm:$0xff]  }
 0x192   :  { %v1878_v17 = vpop.f32.mrf.mxu0  ;;  %v4342_v28 = vld [vmem:[%s5095_s4 + $0x3c8] ss:$16 sps:$4 sm:$0xff]  }
 0x193   :  { %v1919_v18 = vpop.f32.mrf.mxu1  ;;  %2913 = vmatpush2.bf16.msra.mxu0 %v4261_v3  ;;  %v1918_v25 = vadd.f32 %v1917_v29, %v1877_v11  ;;  %v4344_v3 = vld [vmem:[%s5095_s4 + $0x3cc] ss:$16 sps:$4 sm:$0xff]   ;;  %v4357_v38 = vld [vmem:[%s5095_s4 + $0x328] ss:$16 sps:$4 sm:$0xff]  }
 0x194   :  { %v1879_v34 = vpop.f32.mrf.mxu0  ;;  %2914 = vmatprep.subr.bf16.mxu0 %v4266_v30  ;;  %v4347_v29 = vld [vmem:[%s5095_s4 + $0x3ac] ss:$16 sps:$4 sm:$0xff]   ;;  %v4345_v30 = vld [vmem:[%s5095_s4 + $0x3a8] ss:$16 sps:$4 sm:$0xff]  }
 0x195   :  { %v1920_v35 = vpop.f32.mrf.mxu1  ;;  %v4350_v17 = vld [vmem:[%s5095_s4 + $0x38c] ss:$16 sps:$4 sm:$0xff]   ;;  %v4348_v18 = vld [vmem:[%s5095_s4 + $0x388] ss:$16 sps:$4 sm:$0xff]  }
 0x196   :  { %v4351_v34 = vld [vmem:[%s5095_s4 + $0x368] ss:$16 sps:$4 sm:$0xff]   ;;  %v4356_v35 = vld [vmem:[%s5095_s4 + $0x34c] ss:$16 sps:$4 sm:$0xff]  }
 0x197   :  { %2915 = vmatpush2.bf16.msra.mxu0 %v4264_v33  ;;  %v4353_v33 = vld [vmem:[%s5095_s4 + $0x36c] ss:$16 sps:$4 sm:$0xff]  }
 0x198   :  { %3740 = vmatprep.subr.bf16.mxu0 %v4363_v0  ;;  %v4362_v11 = vld [vmem:[%s5095_s4 + $0x30c] ss:$16 sps:$4 sm:$0xff]  }
 0x19a   :  { %2917 = vmatmul.mubr.bf16.vlgmr.msra.gmra.mxu0 %v4784_v55 }
 0x19b   :  { %3741 = vmatpush3.bf16.msra.mxu0 %v4364_v63 }
 0x19c   :  { %3742 = vmatprep.subr.bf16.mxu0 %v4365_v42  ;;  %v4393_v42 = vld [vmem:[%s5097_s6 + $0xc0] sm:$0xff]  }
 0x19f   :  { %3743 = vmatpush3.bf16.msra.mxu0 %v4366_v6 }
 0x1a0   :  { %3744 = vmatprep.subr.bf16.mxu0 %v4367_v8 }
 0x1a3   :  { %3745 = vmatpush3.bf16.msra.mxu0 %v4368_v53 }
 0x1a4   :  { %3746 = vmatprep.subr.bf16.mxu0 %v4369_v13 }
 0x1a7   :  { %3747 = vmatpush3.bf16.msra.mxu0 %v4370_v15 }
 0x1a8   :  { %3748 = vmatprep.subr.bf16.mxu0 %v4371_v19 }
 0x1ab   :  { %3749 = vmatpush3.bf16.msra.mxu0 %v4372_v22 }
 0x1ac   :  { %3750 = vmatprep.subr.bf16.mxu0 %v4373_v24 }
 0x1af   :  { %3751 = vmatpush3.bf16.msra.mxu0 %v4374_v32 }
 0x1ce   :  { %v1956_v40 = vpop.f32.mrf.mxu0 }
 0x1cf   :  { %v1997_v41 = vpop.f32.mrf.mxu1  ;;  %v1957_v43 = vadd.f32 %v1956_v40, %v1916_v39  ;;  %v4360_v39 = vld [vmem:[%s5095_s4 + $0x308] ss:$16 sps:$4 sm:$0xff]  }
 0x1d0   :  { %v1958_v23 = vpop.f32.mrf.mxu0 }
 0x1d1   :  { %v1999_v44 = vpop.f32.mrf.mxu1  ;;  %v1998_v45 = vadd.f32 %v1997_v41, %v1957_v43  ;;  %v1959_v31 = vadd.f32 %v1958_v23, %v1918_v25  ;;  %v4375_v41 = vld [vmem:[%s5097_s6 + $0x48] sm:$0xff]  }
 0x1d2   :  { %v1960_v46 = vpop.f32.mrf.mxu0  ;;  %v4376_v43 = vld [vmem:[%s5097_s6 + $0x8] sm:$0xff]   ;;  %3752 = vmatprep.subr.bf16.mxu0 %v4375_v41 }
 0x1d3   :  { %v2001_v49 = vpop.f32.mrf.mxu1  ;;  %v2000_v50 = vadd.f32 %v1999_v44, %v1959_v31  ;;  %v2006_v51 = vmax.f32 %v1998_v45, 0.0  ;;  %3753 = vmatpush3.bf16.msra.mxu0 %v4376_v43  ;;  %v4377_v44 = vld [vmem:[%s5097_s6 + $0x40] sm:$0xff]   ;;  %v4379_v46 = vld [vmem:[%s5097_s6 + $0xf8] sm:$0xff]  }
 0x1d4   :  { %v1961_v52 = vpop.f32.mrf.mxu0  ;;  %v4378_v31 = vld [vmem:[%s5097_s6] sm:$0xff]   ;;  %3754 = vmatprep.subr.bf16.mxu0 %v4377_v44  ;;  %v4380_v49 = vld [vmem:[%s5097_s6 + $0xb8] sm:$0xff]  }
 0x1d5   :  { %v2002_v54 = vpop.f32.mrf.mxu1  ;;  %v2007_v55 = vmax.f32 %v2000_v50, 0.0  ;;  %v4888_v57 = vpack.c.bf16 %v2006_v51, %v2006_v51  ;;  %v4381_v50 = vld [vmem:[%s5097_s6 + $0xf0] sm:$0xff]   ;;  %v4383_v52 = vld [vmem:[%s5097_s6 + $0xe8] sm:$0xff]  }
 0x1d6   :  { %v4382_v51 = vld [vmem:[%s5097_s6 + $0xb0] sm:$0xff]   ;;  %v4384_v54 = vld [vmem:[%s5097_s6 + $0xa8] sm:$0xff]  }
 0x1d7   :  { %v2011_v56 = vpack.c.bf16 %v2007_v55, %v2007_v55  ;;  %3755 = vmatpush3.bf16.msra.mxu0 %v4378_v31  ;;  %v4385_v55 = vld [vmem:[%s5097_s6 + $0xe0] sm:$0xff]  }
 0x1d9   :  { %2875 = vmatprep.mubr.bf16.mxu1 %v2011_v56 }
 0x1da   :  { %2876 = vmatmul.mubr.bf16.vlgmr.msra.gmra.mxu1 %v4888_v57 }
 0x1db   :  { %2926 = vmatpush1.bf16.msra.mxu1 %v4315_v21  ;;  %2957 = vmatprep.mubr.bf16.mxu1 %v2011_v56  ;;  %v4386_v56 = vld [vmem:[%s5097_s6 + $0xa0] sm:$0xff]   ;;  %v4387_v21 = vld [vmem:[%s5097_s6 + $0xd8] sm:$0xff]  }
 0x1dc   :  { %2927 = vmatprep.subr.bf16.mxu1 %v4320_v58  ;;  %v4389_v58 = vld [vmem:[%s5097_s6 + $0xd0] sm:$0xff]  }
 0x1df   :  { %2928 = vmatpush1.bf16.msra.mxu1 %v4318_v59  ;;  %v4390_v59 = vld [vmem:[%s5097_s6 + $0x90] sm:$0xff]  }
 0x1e0   :  { %2929 = vmatprep.subr.bf16.mxu1 %v4323_v60 }
 0x1e3   :  { %2930 = vmatpush1.bf16.msra.mxu1 %v4321_v61  ;;  %v4391_v61 = vld [vmem:[%s5097_s6 + $0xc8] sm:$0xff]  }
 0x1e4   :  { %2931 = vmatprep.subr.bf16.mxu1 %v4326_v62  ;;  %v4392_v62 = vld [vmem:[%s5097_s6 + $0x88] sm:$0xff]  }
 0x1e7   :  { %2932 = vmatpush1.bf16.msra.mxu1 %v4324_v5  ;;  %v4394_v5 = vld [vmem:[%s5097_s6 + $0x80] sm:$0xff]  }
 0x1e8   :  { %2933 = vmatprep.subr.bf16.mxu1 %v4329_v7  ;;  %v2140_v7 = vld [vmem:[%s5096_s5] sm:$0xf] }
 0x1e9   :  { %v2145_v8 = vrot.slane %v2140_v7, %v4497_v1  ;;  %v2153_v32 = vrot.slane %v2140_v7, %v4500_v2  ;;  %v2157_v1 = vrot.slane %v2140_v7, %v4474_v48  ;;  %v3707_v48 = vld [vmem:[%s5098_s7] ss:$0 sm:$0xff] }
 0x1eb   :  { %2934 = vmatpush1.bf16.msra.mxu1 %v4327_v9  ;;  %v2149_v9 = vrot.slane %v2140_v7, %v4471_v47 }
 0x1ec   :  { %2935 = vmatprep.subr.bf16.mxu1 %v4332_v12 }
 0x1ef   :  { %2936 = vmatpush1.bf16.msra.mxu1 %v4330_v14 }
 0x1f0   :  { %2937 = vmatprep.subr.bf16.mxu1 %v4335_v16 }
 0x1f3   :  { %2938 = vmatpush1.bf16.msra.mxu1 %v4333_v20 }
 0x1f4   :  { %2939 = vmatprep.subr.bf16.mxu1 %v4338_v10 }
 0x1f7   :  { %2940 = vmatpush1.bf16.msra.mxu1 %v4336_v26 }
 0x1f8   :  { %2941 = vmatprep.subr.bf16.mxu1 %v4341_v27 }
 0x1fb   :  { %2942 = vmatpush2.bf16.msra.mxu1 %v4339_v4 }
 0x1fc   :  { %2943 = vmatprep.subr.bf16.mxu1 %v4344_v3 }
 0x1ff   :  { %2944 = vmatpush2.bf16.msra.mxu1 %v4342_v28 }
 0x200   :  { %2945 = vmatprep.subr.bf16.mxu1 %v4347_v29 }
 0x203   :  { %2946 = vmatpush2.bf16.msra.mxu1 %v4345_v30 }
 0x204   :  { %2947 = vmatprep.subr.bf16.mxu1 %v4350_v17 }
 0x207   :  { %2948 = vmatpush2.bf16.msra.mxu1 %v4348_v18 }
 0x208   :  { %2949 = vmatprep.subr.bf16.mxu1 %v4353_v33 }
 0x20b   :  { %2950 = vmatpush2.bf16.msra.mxu1 %v4351_v34 }
 0x20c   :  { %2951 = vmatprep.subr.bf16.mxu1 %v4356_v35 }
 0x20f   :  { %2952 = vmatpush2.bf16.msra.mxu1 %v4354_v36 }
 0x210   :  { %2953 = vmatprep.subr.bf16.mxu1 %v4359_v37 }
 0x213   :  { %2954 = vmatpush2.bf16.msra.mxu1 %v4357_v38 }
 0x214   :  { %2955 = vmatprep.subr.bf16.mxu1 %v4362_v11 }
 0x217   :  { %2956 = vmatpush2.bf16.msra.mxu1 %v4360_v39 }
 0x218   :  { %3762 = vmatprep.subr.bf16.mxu1 %v4379_v46 }
 0x21a   :  { %2958 = vmatmul.mubr.bf16.vlgmr.msra.gmra.mxu1 %v4888_v57  ;;  %v2836_v40 = vpop.f32.mrf.mxu0  ;;  %v4388_v57 = vld [vmem:[%s5097_s6 + $0x98] sm:$0xff]  }
 0x21b   :  { %3763 = vmatpush3.bf16.msra.mxu1 %v4380_v49  ;;  %v2837_v53 = vadd.f32 %v2836_v40, %v2145_v8 }
 0x21c   :  { %v2838_v25 = vpop.f32.mrf.mxu0  ;;  %3764 = vmatprep.subr.bf16.mxu1 %v4381_v50 }
 0x21d   :  { %v2839_v13 = vadd.f32 %v2838_v25, %v2149_v9 }
 0x21e   :  { %v2840_v23 = vpop.f32.mrf.mxu0 }
 0x21f   :  { %3765 = vmatpush3.bf16.msra.mxu1 %v4382_v51 }
 0x220   :  { %v2841_v45 = vpop.f32.mrf.mxu0  ;;  %3766 = vmatprep.subr.bf16.mxu1 %v4383_v52 }
 0x223   :  { %3767 = vmatpush3.bf16.msra.mxu1 %v4384_v54 }
 0x224   :  { %3768 = vmatprep.subr.bf16.mxu1 %v4385_v55 }
 0x227   :  { %3769 = vmatpush3.bf16.msra.mxu1 %v4386_v56 }
 0x228   :  { %3770 = vmatprep.subr.bf16.mxu1 %v4387_v21 }
 0x22b   :  { %3771 = vmatpush3.bf16.msra.mxu1 %v4388_v57 }
 0x22c   :  { %3772 = vmatprep.subr.bf16.mxu1 %v4389_v58 }
 0x22f   :  { %3773 = vmatpush3.bf16.msra.mxu1 %v4390_v59 }
 0x230   :  { %3774 = vmatprep.subr.bf16.mxu1 %v4391_v61 }
 0x233   :  { %3775 = vmatpush3.bf16.msra.mxu1 %v4392_v62 }
 0x234   :  { %3776 = vmatprep.subr.bf16.mxu1 %v4393_v42 }
 0x237   :  { %3777 = vmatpush3.bf16.msra.mxu1 %v4394_v5 }
 0x25a   :  { %v2918_v60 = vpop.f32.mrf.mxu0 }
 0x25b   :  { %v2919_v27 = vadd.f32 %v2918_v60, %v2153_v32 }
 0x25c   :  { %v2920_v0 = vpop.f32.mrf.mxu0 }
 0x25d   :  { %v2921_v4 = vadd.f32 %v2920_v0, %v2157_v1 }
 0x25e   :  { %v2922_v63 = vpop.f32.mrf.mxu0 }
 0x260   :  { %v2923_v6 = vpop.f32.mrf.mxu0 }
 0x29a   :  { %v2877_v12 = vpop.f32.mrf.mxu1 }
 0x29b   :  { %v2878_v14 = vadd.f32 %v2877_v12, %v2837_v53 }
 0x29c   :  { %v2879_v15 = vpop.f32.mrf.mxu1 }
 0x29d   :  { %v2880_v16 = vadd.f32 %v2879_v15, %v2839_v13  ;;  %v2966_v19 = vmax.f32 %v2878_v14, 0.0 }
 0x29e   :  { %v2881_v20 = vpop.f32.mrf.mxu1 }
 0x29f   :  { %v2967_v22 = vmax.f32 %v2880_v16, 0.0  ;;  %v2970_v26 = vpack.c.bf16 %v2966_v19, %v2966_v19 }
 0x2a0   :  { %v2882_v10 = vpop.f32.mrf.mxu1 }
 0x2a1   :  { %v2971_v24 = vpack.c.bf16 %v2967_v22, %v2967_v22 }
 0x2a3   :  { %3269 = vmatprep.mubr.bf16.mxu0 %v2971_v24 }
 0x2a4   :  { %3270 = vmatmul.mubr.bf16.vlgmr.msra.gmra.mxu0 %v2970_v26 }
 0x2da   :  { %v2959_v47 = vpop.f32.mrf.mxu1 }
 0x2db   :  { %v2960_v3 = vadd.f32 %v2959_v47, %v2919_v27 }
 0x2dc   :  { %v2961_v28 = vpop.f32.mrf.mxu1 }
 0x2dd   :  { %v2962_v29 = vadd.f32 %v2961_v28, %v2921_v4  ;;  %v2968_v30 = vmax.f32 %v2960_v3, 0.0 }
 0x2de   :  { %v2963_v17 = vpop.f32.mrf.mxu1 }
 0x2df   :  { %v2969_v18 = vmax.f32 %v2962_v29, 0.0  ;;  %v2972_v35 = vpack.c.bf16 %v2968_v30, %v2968_v30 }
 0x2e0   :  { %v2964_v33 = vpop.f32.mrf.mxu1 }
 0x2e1   :  { %v2973_v34 = vpack.c.bf16 %v2969_v18, %v2969_v18 }
 0x2e3   :  { %3309 = vmatprep.mubr.bf16.mxu1 %v2973_v34 }
 0x2e4   :  { %3310 = vmatmul.mubr.bf16.vlgmr.msra.gmra.mxu1 %v2972_v35 }
 0x364   :  { %v3756_v36 = vpop.f32.mrf.mxu0 }
 0x366   :  { %v3757_v37 = vpop.f32.mrf.mxu0 }
 0x367   :  { %v3758_v11 = vadd.f32 %v3757_v37, %v3756_v36 }
 0x368   :  { %v3759_v38 = vpop.f32.mrf.mxu0 }
 0x369   :  { %v3272_v41 = vadd.f32 %v3758_v11, %v3707_v48 }
 0x36a   :  { %v3760_v2 = vpop.f32.mrf.mxu0 }
 0x3a4   :  { %v3778_v39 = vpop.f32.mrf.mxu1 }
 0x3a6   :  { %v3779_v40 = vpop.f32.mrf.mxu1 }
 0x3a7   :  { %v3780_v25 = vadd.f32 %v3779_v40, %v3778_v39 }
 0x3a8   :  { %v3781_v43 = vpop.f32.mrf.mxu1 }
 0x3a9   :  { %v3312_v23 = vadd.f32 %v3780_v25, %v3272_v41 }
 0x3aa   :  { %v3782_v44 = vpop.f32.mrf.mxu1 }
 0x3ab   :  { %3317 = vst [vmem:[%s5099_s8] sm:$0xff] %v3312_v23 }
 0x3ac   :  { %3322 = vsyncpa [#allocation3], 1 }

// kernel: pointnet_forward.2
= control target key start
LH: loop header
LB: loop body
LE: loop exit
PB: predicated region body
PF: predicated region fallthrough
CT: control target
= control target key end

     0   :  { %13 = vsyncpa [#allocation4], 0  ;;  %s4893_s0 = inlined_call_operand.vmem [shape: f32[2,3,1280], index: 0, kind: input, shape index: {}]   ;;  %s4894_s1 = inlined_call_operand.vmem [shape: f32[64,3], index: 1, kind: input, shape index: {}]   ;;  %s4895_s2 = inlined_call_operand.vmem [shape: f32[64,1], index: 2, kind: input, shape index: {}]   ;;  %s4896_s3 = inlined_call_operand.hbm [shape: bf16[64,64], index: 3, kind: input, shape index: {}]   ;;  %s4897_s4 = inlined_call_operand.vmem [shape: f32[64,1], index: 4, kind: input, shape index: {}]   ;;  %s4898_s5 = inlined_call_operand.vmem [shape: bf16[128,64], index: 5, kind: input, shape index: {}]   ;;  %s4899_s6 = inlined_call_operand.vmem [shape: f32[128,1], index: 6, kind: input, shape index: {}]   ;;  %s4900_s7 = inlined_call_operand.hbm [shape: bf16[1024,128], index: 7, kind: input, shape index: {}]   ;;  %s4901_s8 = inlined_call_operand.vmem [shape: f32[2,1,1024], index: 8, kind: output, shape index: {}]  }
   0x1   :  { %14 = vsyncpa [#allocation6], 0  ;;  %s4193_s27 = smov 0   ;;  %s4195_s28 = smov 0  }
   0x2   :  { %s4197_s29 = smov 0   ;;  %s4199_s30 = smov 0  }
   0x3   :  { %s4201_s9 = smov 0  }
   0x4 LB: > { %s3759_s10 = sadd.s32 4294967295, %s4137_s9   ;;  %s29_s11 = sadd.s32 1, %s4129_s29  ;;  %s4137_s9 = sphi %s4201_s9, %s20_s9   ;;  %s4133_s30 = sphi %s4199_s30, %s4908_s30   ;;  %s4129_s29 = sphi %s4197_s29, %s4907_s29   ;;  %s4125_s28 = sphi %s4195_s28, %s4906_s28   ;;  %s4121_s27 = sphi %s4193_s27, %s4905_s27  }
   0x5   : > { %p30_p0 = scmp.ge.s32.totalorder %s29_s11, 5  ;;  %s32_s12 = sadd.s32 1, %s4133_s30 }
   0x6   : > { %p3761_p1 = scmp.ge.s32.totalorder %s4137_s9, 1  ;;  %p238_p2 = scmp.lt.s32.totalorder %s4137_s9, 11 }
   0x7   : > { %s4910_s11 = smov (%p30_p0, %s29_s11), 0  ;;  %s4912_s12 = smov (!%p30_p0, %s32_s12), %s4133_s30 }
   0x8   : > { %p4226_p3 = pnand %p3761_p1, %p238_p2  ;;  %p34_p4 = scmp.ge.s32.totalorder %s4912_s12, 2 }
   0x9   : > { %p4230_p5 = scmp.eq.s32.totalorder %s3759_s10, 0  ;;  %s4139_s15 = smov [#allocation3]  }
   0xa   : > { %p3888_p6 = pneg %p4226_p3  ;;  %s4914_s12 = smov (%p34_p4, %s4912_s12), 0 }
   0xb   : > { %s256_s16 = sshll.u32 %s4139_s15, 4  ;;  %s257_s16 = int_to_ptr.vmem [resolvable:$true] %s256_s16 }
   0xc   : > { %p4240_p7 = pnand %p4230_p5, %p3888_p6  ;;  %s4050_s18 = scalar_lea.vmem %s257_s16, 512 }
   0xd   : > { %p4051_p9 = scmp.ne.s32.totalorder %s257_s16, %s4050_s18  ;;  %p4058_p12 = scmp.lt.s32.totalorder %s257_s16, %s257_s16 }
   0xe   : > { %p4041_p8 = pneg %p4240_p7  ;;  %p4059_p13 = scmp.lt.s32.totalorder %s4050_s18, %s4050_s18 }
  0x10   : > { %p4053_p10 = pnand %p4051_p9, %p4041_p8  ;;  %p4060_p0 = por %p4059_p13, %p4058_p12 }
  0x12   : > { %p4054_p11 = pneg %p4053_p10 }
  0x14   : > { %p4061_p1 = pnand %p4060_p0, %p4054_p11 }
  0x16   : > { %4064 = shalt.err (!%p4061_p1)
}
  0x17   : > { %s4140_s19 = smov 64   ;;  %s4141_s20 = smov 4  }
  0x18   : > { %3891 = dma.hbm_to_vmem [thread:$0]  (!%p4240_p7), %s4896_s3, 512, %s257_s16, [#allocation4], %s4140_s19, %s4140_s19, %s4141_s20  }
  0x19   : > { %s4142_s23 = smov [#allocation5]  }
  0x1a   : > { %s278_s24 = sshll.u32 %s4142_s23, 4  ;;  %s279_s24 = int_to_ptr.vmem [resolvable:$true] %s278_s24 }
  0x1b   : > { %s4076_s25 = scalar_lea.vmem %s279_s24, 8192  ;;  %p4084_p9 = scmp.lt.s32.totalorder %s279_s24, %s279_s24 }
  0x1c   : > { %p4077_p2 = scmp.ne.s32.totalorder %s279_s24, %s4076_s25  ;;  %p4085_p10 = scmp.lt.s32.totalorder %s4076_s25, %s4076_s25 }
  0x1e   : > { %p4079_p4 = pnand %p4077_p2, %p4041_p8  ;;  %p4086_p11 = por %p4085_p10, %p4084_p9 }
  0x20   : > { %p4080_p6 = pneg %p4079_p4 }
  0x22   : > { %p4087_p12 = pnand %p4086_p11, %p4080_p6 }
  0x24   : > { %4090 = shalt.err (!%p4087_p12)
}
  0x25   : > { %3894 = dma.hbm_to_vmem [thread:$0]  (!%p4240_p7), %s4900_s7, 8192, %s279_s24, [#allocation6], %s4140_s19, %s4140_s19, %s4141_s20  }
  0x26   : > { %307 = sbr.rel (%p4226_p3) target bundleno = 1752 (0x6d8), region = 52 }
  0x2b   : > { %4112 = dma.done.wait (%p4230_p5), [#allocation4], 512  }
  0x2c   : > { %4114 = vsyncadd (%p4230_p5), [#allocation4], 4294966784 }
  0x2d   : > { %4116 = dma.done.wait (%p4230_p5), [#allocation6], 8192  }
  0x2e   : > { %4118 = vsyncadd (%p4230_p5), [#allocation6], 4294959104  ;;  %s3768_s15 = sshll.u32 %s4121_s27, 1  ;;  %p349_p7 = scmp.lt.s32.totalorder %s4125_s28, 1 }
  0x2f   : > { %p351_p8 = scmp.lt.s32.totalorder %s3768_s15, 9  ;;  %p3771_p3 = scmp.ne.s32.totalorder %s4121_s27, 0 }
  0x30   : > { %s4916_s28 = smov (!%p349_p7, %s4125_s28), 1 }
  0x31   : > { %s4918_s15 = smov (!%p351_p8, %s3768_s15), 9  ;;  %s3879_s13 = smul.u32 10, %s4916_s28 }
  0x32   : > { %s3770_s16 = sshll.u32 %s4916_s28, 3  ;;  %366 = sbr.rel (%p3771_p3) target bundleno = 120 (0x78), region = 64 }
  0x33   : > { %s4278_s19 = scalar_lea.vmem %s4901_s8, %s3770_s16  ;;  %s354_s20 = sadd.s32 %s3879_s13, %s4918_s15 }
  0x34   : > { %s3769_s21 = sshll.u32 %s354_s20, 2 }
  0x35   : > { %s4283_s23 = scalar_lea.vmem %s4893_s0, %s3769_s21 }
  0x37   : > { %v4143_v0 = vmov -inf  }
  0x38   : > { %367 = vst [vmem:[#allocation2 + $0x2b0] sm:$0xff] %v4143_v0  ;;  %368 = vst [vmem:[#allocation2 + $0x3b0] sm:$0xff] %v4143_v0 }
  0x39   : > { %369 = vst [vmem:[#allocation2 + $0xd8] sm:$0xff] %v4143_v0  ;;  %370 = vst [vmem:[#allocation2 + $0x18] sm:$0xff] %v4143_v0 }
  0x3a   : > { %371 = vst [vmem:[#allocation2 + $0x50] sm:$0xff] %v4143_v0  ;;  %372 = vst [vmem:[#allocation2 + $0x368] sm:$0xff] %v4143_v0 }
  0x3b   : > { %373 = vst [vmem:[#allocation2 + $0x330] sm:$0xff] %v4143_v0  ;;  %374 = vst [vmem:[#allocation2 + $0x48] sm:$0xff] %v4143_v0 }
  0x3c   : > { %375 = vst [vmem:[#allocation2 + $0x380] sm:$0xff] %v4143_v0  ;;  %376 = vst [vmem:[#allocation2 + $0x110] sm:$0xff] %v4143_v0 }
  0x3d   : > { %377 = vst [vmem:[#allocation2 + $0x118] sm:$0xff] %v4143_v0  ;;  %378 = vst [vmem:[#allocation2 + $0x98] sm:$0xff] %v4143_v0 }
  0x3e   : > { %379 = vst [vmem:[#allocation2 + $0x320] sm:$0xff] %v4143_v0  ;;  %380 = vst [vmem:[#allocation2 + $0x150] sm:$0xff] %v4143_v0 }
  0x3f   : > { %381 = vst [vmem:[#allocation2 + $0x108] sm:$0xff] %v4143_v0  ;;  %382 = vst [vmem:[#allocation2 + $0x60] sm:$0xff] %v4143_v0 }
  0x40   : > { %383 = vst [vmem:[#allocation2 + $0x2e0] sm:$0xff] %v4143_v0  ;;  %384 = vst [vmem:[#allocation2 + $0x388] sm:$0xff] %v4143_v0 }
  0x41   : > { %385 = vst [vmem:[#allocation2 + $0x338] sm:$0xff] %v4143_v0  ;;  %386 = vst [vmem:[#allocation2 + $0x340] sm:$0xff] %v4143_v0 }
  0x42   : > { %387 = vst [vmem:[#allocation2 + $0x80] sm:$0xff] %v4143_v0  ;;  %388 = vst [vmem:[#allocation2 + $0x1a8] sm:$0xff] %v4143_v0 }
  0x43   : > { %389 = vst [vmem:[#allocation2 + $0x1b8] sm:$0xff] %v4143_v0  ;;  %390 = vst [vmem:[#allocation2 + $0x168] sm:$0xff] %v4143_v0 }
  0x44   : > { %391 = vst [vmem:[#allocation2 + $0x3e8] sm:$0xff] %v4143_v0  ;;  %392 = vst [vmem:[#allocation2 + $0x2f8] sm:$0xff] %v4143_v0 }
  0x45   : > { %393 = vst [vmem:[#allocation2 + $0x290] sm:$0xff] %v4143_v0  ;;  %394 = vst [vmem:[#allocation2 + $0x28] sm:$0xff] %v4143_v0 }
  0x46   : > { %395 = vst [vmem:[#allocation2 + $0x138] sm:$0xff] %v4143_v0  ;;  %396 = vst [vmem:[#allocation2 + $0xc0] sm:$0xff] %v4143_v0 }
  0x47   : > { %397 = vst [vmem:[#allocation2 + $0x1c0] sm:$0xff] %v4143_v0  ;;  %398 = vst [vmem:[#allocation2 + $0x280] sm:$0xff] %v4143_v0 }
  0x48   : > { %399 = vst [vmem:[#allocation2 + $0x100] sm:$0xff] %v4143_v0  ;;  %400 = vst [vmem:[#allocation2 + $0x3c0] sm:$0xff] %v4143_v0 }
  0x49   : > { %401 = vst [vmem:[#allocation2 + $0x158] sm:$0xff] %v4143_v0  ;;  %402 = vst [vmem:[#allocation2 + $0x3e0] sm:$0xff] %v4143_v0 }
  0x4a   : > { %403 = vst [vmem:[#allocation2 + $0x218] sm:$0xff] %v4143_v0  ;;  %404 = vst [vmem:[#allocation2 + $0x3f8] sm:$0xff] %v4143_v0 }
  0x4b   : > { %405 = vst [vmem:[#allocation2 + $0x8] sm:$0xff] %v4143_v0  ;;  %406 = vst [vmem:[#allocation2 + $0x128] sm:$0xff] %v4143_v0 }
  0x4c   : > { %407 = vst [vmem:[#allocation2 + $0x2a0] sm:$0xff] %v4143_v0  ;;  %408 = vst [vmem:[#allocation2 + $0x3f0] sm:$0xff] %v4143_v0 }
  0x4d   : > { %409 = vst [vmem:[#allocation2 + $0xa0] sm:$0xff] %v4143_v0  ;;  %410 = vst [vmem:[#allocation2 + $0x2c0] sm:$0xff] %v4143_v0 }
  0x4e   : > { %411 = vst [vmem:[#allocation2 + $0xb0] sm:$0xff] %v4143_v0  ;;  %412 = vst [vmem:[#allocation2 + $0x1e0] sm:$0xff] %v4143_v0 }
  0x4f   : > { %413 = vst [vmem:[#allocation2 + $0x1f0] sm:$0xff] %v4143_v0  ;;  %414 = vst [vmem:[#allocation2 + $0x10] sm:$0xff] %v4143_v0 }
  0x50   : > { %415 = vst [vmem:[#allocation2 + $0x230] sm:$0xff] %v4143_v0  ;;  %416 = vst [vmem:[#allocation2 + $0x240] sm:$0xff] %v4143_v0 }
  0x51   : > { %417 = vst [vmem:[#allocation2 + $0x90] sm:$0xff] %v4143_v0  ;;  %418 = vst [vmem:[#allocation2 + $0x3a0] sm:$0xff] %v4143_v0 }
  0x52   : > { %419 = vst [vmem:[#allocation2 + $0x208] sm:$0xff] %v4143_v0  ;;  %420 = vst [vmem:[#allocation2 + $0xd0] sm:$0xff] %v4143_v0 }
  0x53   : > { %421 = vst [vmem:[#allocation2 + $0x88] sm:$0xff] %v4143_v0  ;;  %422 = vst [vmem:[#allocation2 + $0x2f0] sm:$0xff] %v4143_v0 }
  0x54   : > { %423 = vst [vmem:[#allocation2 + $0x358] sm:$0xff] %v4143_v0  ;;  %424 = vst [vmem:[#allocation2 + $0x268] sm:$0xff] %v4143_v0 }
  0x55   : > { %425 = vst [vmem:[#allocation2 + $0x350] sm:$0xff] %v4143_v0  ;;  %426 = vst [vmem:[#allocation2 + $0x188] sm:$0xff] %v4143_v0 }
  0x56   : > { %427 = vst [vmem:[#allocation2 + $0x1d8] sm:$0xff] %v4143_v0  ;;  %428 = vst [vmem:[#allocation2 + $0x30] sm:$0xff] %v4143_v0 }
  0x57   : > { %429 = vst [vmem:[#allocation2 + $0x140] sm:$0xff] %v4143_v0  ;;  %430 = vst [vmem:[#allocation2 + $0x2a8] sm:$0xff] %v4143_v0 }
  0x58   : > { %431 = vst [vmem:[#allocation2 + $0x130] sm:$0xff] %v4143_v0  ;;  %432 = vst [vmem:[#allocation2 + $0x200] sm:$0xff] %v4143_v0 }
  0x59   : > { %433 = vst [vmem:[#allocation2 + $0x318] sm:$0xff] %v4143_v0  ;;  %434 = vst [vmem:[#allocation2 + $0x220] sm:$0xff] %v4143_v0 }
  0x5a   : > { %435 = vst [vmem:[#allocation2 + $0x70] sm:$0xff] %v4143_v0  ;;  %436 = vst [vmem:[#allocation2 + $0x300] sm:$0xff] %v4143_v0 }
  0x5b   : > { %437 = vst [vmem:[#allocation2 + $0xe0] sm:$0xff] %v4143_v0  ;;  %438 = vst [vmem:[#allocation2 + $0x178] sm:$0xff] %v4143_v0 }
  0x5c   : > { %439 = vst [vmem:[#allocation2 + $0x328] sm:$0xff] %v4143_v0  ;;  %440 = vst [vmem:[#allocation2 + $0x260] sm:$0xff] %v4143_v0 }
  0x5d   : > { %441 = vst [vmem:[#allocation2 + $0x3b8] sm:$0xff] %v4143_v0  ;;  %442 = vst [vmem:[#allocation2 + $0x2b8] sm:$0xff] %v4143_v0 }
  0x5e   : > { %443 = vst [vmem:[#allocation2 + $0x248] sm:$0xff] %v4143_v0  ;;  %444 = vst [vmem:[#allocation2 + $0x40] sm:$0xff] %v4143_v0 }
  0x5f   : > { %445 = vst [vmem:[#allocation2 + $0x20] sm:$0xff] %v4143_v0  ;;  %446 = vst [vmem:[#allocation2 + $0xe8] sm:$0xff] %v4143_v0 }
  0x60   : > { %447 = vst [vmem:[#allocation2 + $0x288] sm:$0xff] %v4143_v0  ;;  %448 = vst [vmem:[#allocation2 + $0x3a8] sm:$0xff] %v4143_v0 }
  0x61   : > { %449 = vst [vmem:[#allocation2 + $0x3c8] sm:$0xff] %v4143_v0  ;;  %450 = vst [vmem:[#allocation2 + $0x160] sm:$0xff] %v4143_v0 }
  0x62   : > { %451 = vst [vmem:[#allocation2 + $0x2c8] sm:$0xff] %v4143_v0  ;;  %452 = vst [vmem:[#allocation2 + $0x210] sm:$0xff] %v4143_v0 }
  0x63   : > { %453 = vst [vmem:[#allocation2 + $0x3d8] sm:$0xff] %v4143_v0  ;;  %454 = vst [vmem:[#allocation2 + $0x1e8] sm:$0xff] %v4143_v0 }
  0x64   : > { %455 = vst [vmem:[#allocation2 + $0x1b0] sm:$0xff] %v4143_v0  ;;  %456 = vst [vmem:[#allocation2 + $0x1c8] sm:$0xff] %v4143_v0 }
  0x65   : > { %457 = vst [vmem:[#allocation2 + $0x2d0] sm:$0xff] %v4143_v0  ;;  %458 = vst [vmem:[#allocation2 + $0x1d0] sm:$0xff] %v4143_v0 }
  0x66   : > { %459 = vst [vmem:[#allocation2 + $0x58] sm:$0xff] %v4143_v0  ;;  %460 = vst [vmem:[#allocation2 + $0x120] sm:$0xff] %v4143_v0 }
  0x67   : > { %461 = vst [vmem:[#allocation2 + $0x198] sm:$0xff] %v4143_v0  ;;  %462 = vst [vmem:[#allocation2 + $0x2e8] sm:$0xff] %v4143_v0 }
  0x68   : > { %463 = vst [vmem:[#allocation2 + $0x1f8] sm:$0xff] %v4143_v0  ;;  %464 = vst [vmem:[#allocation2 + $0x238] sm:$0xff] %v4143_v0 }
  0x69   : > { %465 = vst [vmem:[#allocation2 + $0x398] sm:$0xff] %v4143_v0  ;;  %466 = vst [vmem:[#allocation2 + $0x390] sm:$0xff] %v4143_v0 }
  0x6a   : > { %467 = vst [vmem:[#allocation2 + $0x1a0] sm:$0xff] %v4143_v0  ;;  %468 = vst [vmem:[#allocation2 + $0xa8] sm:$0xff] %v4143_v0 }
  0x6b   : > { %469 = vst [vmem:[#allocation2 + $0x258] sm:$0xff] %v4143_v0  ;;  %470 = vst [vmem:[#allocation2 + $0x2d8] sm:$0xff] %v4143_v0 }
  0x6c   : > { %471 = vst [vmem:[#allocation2 + $0xf0] sm:$0xff] %v4143_v0  ;;  %472 = vst [vmem:[#allocation2 + $0x180] sm:$0xff] %v4143_v0 }
  0x6d   : > { %473 = vst [vmem:[#allocation2 + $0x170] sm:$0xff] %v4143_v0  ;;  %474 = vst [vmem:[#allocation2 + $0x3d0] sm:$0xff] %v4143_v0 }
  0x6e   : > { %475 = vst [vmem:[#allocation2 + $0x250] sm:$0xff] %v4143_v0  ;;  %476 = vst [vmem:[#allocation2 + $0x378] sm:$0xff] %v4143_v0 }
  0x6f   : > { %477 = vst [vmem:[#allocation2 + $0xb8] sm:$0xff] %v4143_v0  ;;  %478 = vst [vmem:[#allocation2 + $0x38] sm:$0xff] %v4143_v0 }
  0x70   : > { %479 = vst [vmem:[#allocation2 + $0x78] sm:$0xff] %v4143_v0  ;;  %480 = vst [vmem:[#allocation2 + $0x308] sm:$0xff] %v4143_v0 }
  0x71   : > { %481 = vst [vmem:[#allocation2 + $0x370] sm:$0xff] %v4143_v0  ;;  %482 = vst [vmem:[#allocation2 + $0xc8] sm:$0xff] %v4143_v0 }
  0x72   : > { %483 = vst [vmem:[#allocation2 + $0x278] sm:$0xff] %v4143_v0  ;;  %484 = vst [vmem:[#allocation2 + $0x360] sm:$0xff] %v4143_v0 }
  0x73   : > { %485 = vst [vmem:[#allocation2 + $0x228] sm:$0xff] %v4143_v0  ;;  %486 = vst [vmem:[#allocation2 + $0x348] sm:$0xff] %v4143_v0 }
  0x74   : > { %487 = vst [vmem:[#allocation2 + $0x148] sm:$0xff] %v4143_v0  ;;  %488 = vst [vmem:[#allocation2 + $0xf8] sm:$0xff] %v4143_v0 }
  0x75   : > { %489 = vst [vmem:[#allocation2 + $0x68] sm:$0xff] %v4143_v0  ;;  %490 = vst [vmem:[#allocation2] sm:$0xff] %v4143_v0 }
  0x76   : > { %491 = vst [vmem:[#allocation2 + $0x298] sm:$0xff] %v4143_v0  ;;  %492 = vst [vmem:[#allocation2 + $0x270] sm:$0xff] %v4143_v0 }
  0x77   : > { %493 = vst [vmem:[#allocation2 + $0x310] sm:$0xff] %v4143_v0  ;;  %494 = vst [vmem:[#allocation2 + $0x190] sm:$0xff] %v4143_v0 }
  0x78 PF: > { %v502_v1 = vld [vmem:[%s4894_s1 + $0x30] sm:$0xff]  ;;  %v4144_v2 = vmov 2   ;;  %v4145_v3 = vmov 1   ;;  %v503_v4 = vld [vmem:[%s4894_s1 + $0x38] sm:$0xff]  ;;  %v500_v5 = vld [vmem:[%s4894_s1 + $0x20] sm:$0xff]  ;;  %v4146_v6 = vmov 0   ;;  %v545_v47 = vlaneseq }
  0x79   : > { %3949 = vset.pattern.permute.xlu0 %v4144_v2  ;;  %3948 = vset.pattern.permute.xlu1 %v4145_v3  ;;  %v499_v7 = vld [vmem:[%s4894_s1 + $0x18] sm:$0xff]  ;;  %v498_v8 = vld [vmem:[%s4894_s1 + $0x10] sm:$0xff]  ;;  %v497_v9 = vld [vmem:[%s4894_s1 + $0x8] sm:$0xff]  ;;  %vm907_vm0 = vcmask 523264   ;;  %p3860_p5 = scmp.ne.s32.totalorder %s4121_s27, 4 }
  0x7a   : > { %686 = vperm.xlu0 %3949, %v502_v1   ;;  %604 = vperm.xlu1 %3948, %v502_v1   ;;  %v501_v10 = vld [vmem:[%s4894_s1 + $0x28] sm:$0xff]  ;;  %v749_v11 = vld [vmem:[%s4895_s2 + $0x30] sm:$0xff]  ;;  %v750_v12 = vld [vmem:[%s4895_s2 + $0x38] sm:$0xff]  ;;  %v4555_v51 = vshrl.u32 %v545_v47, 7 }
  0x7b   : > { %952 = vmatprep.mubr.bf16.mxu0 %v4146_v6  ;;  %1225 = vmatprep.mubr.bf16.mxu1 %v4146_v6  ;;  %v496_v13 = vld [vmem:[%s4894_s1] sm:$0xff]  ;;  %v745_v14 = vld [vmem:[%s4895_s2 + $0x10] sm:$0xff]  ;;  %v744_v15 = vld [vmem:[%s4895_s2 + $0x8] sm:$0xff] }
  0x7c   : > { %v846_v16 = vld [vmem:[%s4897_s4 + $0x38] sm:$0xff]  ;;  %v844_v17 = vld [vmem:[%s4897_s4 + $0x28] sm:$0xff]  ;;  %v747_v18 = vld [vmem:[%s4895_s2 + $0x20] sm:$0xff]  ;;  %v613_v53 = vsub.s32 1, %v4555_v51  ;;  %v617_v54 = vsub.s32 5, %v4555_v51  ;;  %v547_v55 = vsub.s32 0, %v4555_v51 }
  0x7d   : > { %v842_v19 = vld [vmem:[%s4897_s4 + $0x18] sm:$0xff]  ;;  %v748_v20 = vld [vmem:[%s4895_s2 + $0x28] sm:$0xff]  ;;  %v743_v29 = vld [vmem:[%s4895_s2] sm:$0xff]  ;;  %v551_v56 = vsub.s32 4, %v4555_v51  ;;  %v695_v59 = vsub.s32 2, %v4555_v51  ;;  %v699_v60 = vsub.s32 6, %v4555_v51 }
  0x7e   : > { %608 = vperm.xlu1 %3948, %v503_v4   ;;  %678 = vperm.xlu0 %3949, %v500_v5   ;;  %v840_v21 = vld [vmem:[%s4897_s4 + $0x8] sm:$0xff]  ;;  %v1048_v22 = vld [vmem:[%s4899_s6 + $0x78] sm:$0xff]  ;;  %v845_v31 = vld [vmem:[%s4897_s4 + $0x30] sm:$0xff] }
  0x7f   : > { %v1046_v23 = vld [vmem:[%s4899_s6 + $0x68] sm:$0xff]  ;;  %v1044_v24 = vld [vmem:[%s4899_s6 + $0x58] sm:$0xff]  ;;  %v843_v33 = vld [vmem:[%s4897_s4 + $0x20] sm:$0xff] }
  0x80   : > { %v1042_v25 = vld [vmem:[%s4899_s6 + $0x48] sm:$0xff]  ;;  %v1040_v26 = vld [vmem:[%s4899_s6 + $0x38] sm:$0xff]  ;;  %v841_v34 = vld [vmem:[%s4897_s4 + $0x10] sm:$0xff] }
  0x81   : > { %v746_v27 = vld [vmem:[%s4895_s2 + $0x18] sm:$0xff]  ;;  %v1038_v28 = vld [vmem:[%s4899_s6 + $0x28] sm:$0xff]  ;;  %v839_v35 = vld [vmem:[%s4897_s4] sm:$0xff] }
  0x82   : > { %3950 = vset.pattern.permute.xlu1 %v4144_v2  ;;  %674 = vperm.xlu0 %3949, %v499_v7   ;;  %v1036_v30 = vld [vmem:[%s4899_s6 + $0x18] sm:$0xff]  ;;  %v1034_v32 = vld [vmem:[%s4899_s6 + $0x8] sm:$0xff]  ;;  %v1047_v36 = vld [vmem:[%s4899_s6 + $0x70] sm:$0xff] }
  0x83   : > { %690 = vperm.xlu1 %3950, %v503_v4   ;;  %v1045_v37 = vld [vmem:[%s4899_s6 + $0x60] sm:$0xff]  ;;  %v1043_v38 = vld [vmem:[%s4899_s6 + $0x50] sm:$0xff] }
  0x84   : > { %v1041_v39 = vld [vmem:[%s4899_s6 + $0x40] sm:$0xff]  ;;  %v1039_v40 = vld [vmem:[%s4899_s6 + $0x30] sm:$0xff] }
  0x85   : > { %v1037_v43 = vld [vmem:[%s4899_s6 + $0x20] sm:$0xff]  ;;  %v1035_v46 = vld [vmem:[%s4899_s6 + $0x10] sm:$0xff] }
  0x86   : > { %3957 = vset.pattern.permute.xlu0 %v4145_v3  ;;  %v1033_v50 = vld [vmem:[%s4899_s6] sm:$0xff] }
  0x87   : > { %3951 = vset.pattern.permute.xlu1 %v4146_v6  ;;  %588 = vperm.xlu0 %3957, %v498_v8   ;;  %v495_v58 = vld [vmem:[%s4283_s23] sm:$0x77] }
  0x88   : > { %526 = vperm.xlu1 %3951, %v500_v5   ;;  %v614_v62 = vrot.slane %v495_v58, %v613_v53  ;;  %v618_v63 = vrot.slane %v495_v58, %v617_v54  ;;  %v548_v0 = vrot.slane %v495_v58, %v547_v55 }
  0x8b   : > { %584 = vperm.xlu0 %3957, %v497_v9  }
  0x8c   : > { %3952 = vset.pattern.permute.xlu1 %v4145_v3 }
  0x8d   : > { %596 = vperm.xlu1 %3952, %v500_v5   ;;  %v4570_v5 = vrot.slane %v614_v62, %v613_v53 }
  0x8f   : > { %3960 = vset.pattern.permute.xlu0 %v4146_v6 }
  0x90   : > { %536 = vperm.xlu0 %3960, %v502_v1   ;;  %v552_v1 = vrot.slane %v495_v58, %v551_v56 }
  0x91   : > { %600 = vperm.xlu1 %3952, %v501_v10  }
  0x94   : > { %541 = vperm.xlu0 %3960, %v503_v4   ;;  %v700_v4 = vrot.slane %v495_v58, %v699_v60 }
  0x95   : > { %3953 = vset.pattern.permute.xlu1 %v4144_v2 }
  0x96   : > { %682 = vperm.xlu1 %3953, %v501_v10  }
  0x98   : > { %531 = vperm.xlu0 %3960, %v501_v10  }
  0x9a   : > { %3954 = vset.pattern.permute.xlu1 %v4146_v6 }
  0x9b   : > { %783 = vperm.xlu1 %3954, %v749_v11  }
  0x9c   : > { %788 = vperm.xlu0 %3960, %v750_v12  }
  0x9f   : > { %516 = vperm.xlu1 %3954, %v498_v8  }
  0xa0   : > { %506 = vperm.xlu0 %3960, %v496_v13  }
  0xa3   : > { %521 = vperm.xlu1 %3954, %v499_v7  }
  0xa4   : > { %763 = vperm.xlu0 %3960, %v745_v14  }
  0xa7   : > { %3955 = vset.pattern.permute.xlu1 %v4145_v3 }
  0xa8   : > { %592 = vperm.xlu1 %3955, %v499_v7   ;;  %758 = vperm.xlu0 %3960, %v744_v15   ;;  %v4572_v7 = vrot.slane %v618_v63, %v613_v53 }
  0xac   : > { %3956 = vset.pattern.permute.xlu1 %v4144_v2  ;;  %884 = vperm.xlu0 %3960, %v846_v16  }
  0xad   : > { %670 = vperm.xlu1 %3956, %v498_v8   ;;  %v4574_v8 = vrot.slane %v548_v0, %v547_v55 }
  0xb0   : > { %874 = vperm.xlu0 %3960, %v844_v17   ;;  %v4584_v17 = vrot.slane %v700_v4, %v695_v59 }
  0xb1   : > { %3958 = vset.pattern.permute.xlu1 %v4146_v6 }
  0xb2   : > { %773 = vperm.xlu1 %3958, %v747_v18  }
  0xb4   : > { %864 = vperm.xlu0 %3960, %v842_v19  }
  0xb6   : > { %778 = vperm.xlu1 %3958, %v748_v20  }
  0xb8   : > { %854 = vperm.xlu0 %3960, %v840_v21  }
  0xba   : > { %511 = vperm.xlu1 %3958, %v497_v9  }
  0xbc   : > { %1126 = vperm.xlu0 %3960, %v1048_v22  }
  0xbe   : > { %3959 = vset.pattern.permute.xlu1 %v4145_v3  ;;  %v696_v3 = vrot.slane %v495_v58, %v695_v59 }
  0xbf   : > { %580 = vperm.xlu1 %3959, %v496_v13  }
  0xc0   : > { %1116 = vperm.xlu0 %3960, %v1046_v23   ;;  %v4582_v16 = vrot.slane %v696_v3, %v695_v59 }
  0xc3   : > { %3961 = vset.pattern.permute.xlu1 %v4144_v2 }
  0xc4   : > { %1106 = vperm.xlu0 %3960, %v1044_v24   ;;  %662 = vperm.xlu1 %3961, %v496_v13  }
  0xc8   : > { %1096 = vperm.xlu0 %3960, %v1042_v25   ;;  %666 = vperm.xlu1 %3961, %v497_v9   ;;  %v4576_v9 = vrot.slane %v552_v1, %v547_v55 }
  0xcc   : > { %1086 = vperm.xlu0 %3960, %v1040_v26   ;;  %3962 = vset.pattern.permute.xlu1 %v4146_v6 }
  0xcd   : > { %768 = vperm.xlu1 %3962, %v746_v27  }
  0xd0   : > { %1076 = vperm.xlu0 %3960, %v1038_v28  }
  0xd1   : > { %753 = vperm.xlu1 %3962, %v743_v29  }
  0xd4   : > { %1066 = vperm.xlu0 %3960, %v1036_v30  }
  0xd5   : > { %879 = vperm.xlu1 %3962, %v845_v31  }
  0xd8   : > { %1056 = vperm.xlu0 %3960, %v1034_v32  }
  0xd9   : > { %869 = vperm.xlu1 %3962, %v843_v33  }
  0xdd   : > { %859 = vperm.xlu1 %3962, %v841_v34  }
  0xe1   : > { %849 = vperm.xlu1 %3962, %v839_v35  }
  0xe5   : > { %1121 = vperm.xlu1 %3962, %v1047_v36  }
  0xe9   : > { %1111 = vperm.xlu1 %3962, %v1045_v37  }
  0xed   : > { %1101 = vperm.xlu1 %3962, %v1043_v38  }
  0xf1   : > { %1091 = vperm.xlu1 %3962, %v1041_v39  }
  0xf5   : > { %v605_v41 = vpop.permute.xlu1 %604  ;;  %1081 = vperm.xlu1 %3962, %v1039_v40   ;;  %v687_v42 = vpop.permute.xlu0 %686 }
  0xf6   : > { %v641_v14 = vmul.f32 %v4570_v5, %v605_v41  ;;  %v642_v15 = vmul.f32 %v4572_v7, %v605_v41  ;;  %v723_v23 = vmul.f32 %v4582_v16, %v687_v42  ;;  %v724_v24 = vmul.f32 %v4584_v17, %v687_v42 }
  0xf9   : > { %v609_v44 = vpop.permute.xlu1 %608  ;;  %1071 = vperm.xlu1 %3962, %v1037_v43   ;;  %v4545_v45 = vpop.permute.xlu0 %678 }
  0xfa   : > { %v643_v19 = vmul.f32 %v4570_v5, %v609_v44  ;;  %v644_v20 = vmul.f32 %v4572_v7, %v609_v44  ;;  %v719_v1 = vmul.f32 %v4582_v16, %v4545_v45  ;;  %v720_v3 = vmul.f32 %v4584_v17, %v4545_v45 }
  0xfd   : > { %1061 = vperm.xlu1 %3962, %v1035_v46   ;;  %v4550_v48 = vpop.permute.xlu0 %674 }
  0xfe   : > { %v691_v49 = vpop.permute.xlu1 %690 }
  0xff   : > { %v725_v31 = vmul.f32 %v4582_v16, %v691_v49  ;;  %v726_v32 = vmul.f32 %v4584_v17, %v691_v49 }
 0x101   : > { %1051 = vperm.xlu1 %3962, %v1033_v50  }
 0x102   : > { %v4557_v52 = vpop.permute.xlu0 %588 }
 0x103   : > { %v4563_v57 = vpop.permute.xlu1 %526 }
 0x104   : > { %v571_v59 = vmul.f32 %v4574_v8, %v4563_v57  ;;  %v572_v60 = vmul.f32 %v4576_v9, %v4563_v57 }
 0x106   : > { %v4568_v61 = vpop.permute.xlu0 %584 }
 0x108   : > { %v597_v2 = vpop.permute.xlu1 %596 }
 0x109   : > { %v637_v56 = vmul.f32 %v4570_v5, %v597_v2  ;;  %v638_v58 = vmul.f32 %v4572_v7, %v597_v2 }
 0x10b   : > { %v537_v10 = vpop.permute.xlu0 %536  ;;  %v653_v4 = vadd.f32 %v637_v56, %v571_v59  ;;  %v718_v56 = vmul.f32 %v4584_v17, %v4550_v48 }
 0x10c   : > { %v601_v11 = vpop.permute.xlu1 %600  ;;  %v575_v12 = vmul.f32 %v4574_v8, %v537_v10  ;;  %v576_v13 = vmul.f32 %v4576_v9, %v537_v10  ;;  %v654_v10 = vadd.f32 %v638_v58, %v572_v60  ;;  %v632_v60 = vmul.f32 %v4572_v7, %v4568_v61 }
 0x10d   : > { %v639_v2 = vmul.f32 %v4570_v5, %v601_v11 }
 0x10e   : > { %v657_v25 = vadd.f32 %v641_v14, %v575_v12  ;;  %v658_v26 = vadd.f32 %v642_v15, %v576_v13  ;;  %v640_v12 = vmul.f32 %v4572_v7, %v601_v11 }
 0x10f   : > { %v542_v18 = vpop.permute.xlu0 %541 }
 0x110   : > { %v577_v21 = vmul.f32 %v4574_v8, %v542_v18  ;;  %v578_v22 = vmul.f32 %v4576_v9, %v542_v18  ;;  %v739_v33 = vadd.f32 %v723_v23, %v657_v25  ;;  %v740_v34 = vadd.f32 %v724_v24, %v658_v26 }
 0x111   : > { %v683_v27 = vpop.permute.xlu1 %682 }
 0x112   : > { %v659_v28 = vadd.f32 %v643_v19, %v577_v21  ;;  %v660_v29 = vadd.f32 %v644_v20, %v578_v22  ;;  %v721_v15 = vmul.f32 %v4582_v16, %v683_v27  ;;  %v722_v18 = vmul.f32 %v4584_v17, %v683_v27 }
 0x113   : > { %v532_v30 = vpop.permute.xlu0 %531  ;;  %v735_v19 = vadd.f32 %v719_v1, %v653_v4  ;;  %v736_v20 = vadd.f32 %v720_v3, %v654_v10  ;;  %v633_v27 = vmul.f32 %v4570_v5, %v4557_v52 }
 0x114   : > { %v741_v36 = vadd.f32 %v725_v31, %v659_v28  ;;  %v742_v37 = vadd.f32 %v726_v32, %v660_v29  ;;  %v573_v62 = vmul.f32 %v4574_v8, %v532_v30  ;;  %v574_v63 = vmul.f32 %v4576_v9, %v532_v30 }
 0x116   : > { %v784_v35 = vpop.permute.xlu1 %783  ;;  %v655_v13 = vadd.f32 %v639_v2, %v573_v62  ;;  %v656_v14 = vadd.f32 %v640_v12, %v574_v63 }
 0x117   : > { %v803_v38 = vadd.f32 %v784_v35, %v739_v33  ;;  %v804_v39 = vadd.f32 %v784_v35, %v740_v34  ;;  %v789_v40 = vpop.permute.xlu0 %788  ;;  %v634_v35 = vmul.f32 %v4572_v7, %v4557_v52 }
 0x118   : > { %v805_v41 = vadd.f32 %v789_v40, %v741_v36  ;;  %v806_v42 = vadd.f32 %v789_v40, %v742_v37  ;;  %v737_v23 = vadd.f32 %v721_v15, %v655_v13  ;;  %v738_v24 = vadd.f32 %v722_v18, %v656_v14 }
 0x119   : > { %v819_v43 = vmax.f32 %v803_v38, 0.0  ;;  %v820_v44 = vmax.f32 %v804_v39, 0.0 }
 0x11a   : > { %v821_v46 = vmax.f32 %v805_v41, 0.0  ;;  %v517_v47 = vpop.permute.xlu1 %516  ;;  %v822_v50 = vmax.f32 %v806_v42, 0.0 }
 0x11b   : > { %v567_v36 = vmul.f32 %v4574_v8, %v517_v47  ;;  %v568_v37 = vmul.f32 %v4576_v9, %v517_v47  ;;  %v507_v38 = vpop.permute.xlu0 %506 }
 0x11c   : > { %v838_v53 = vpack.c.bf16 %v822_v50, %v820_v44  ;;  %v837_v54 = vpack.c.bf16 %v821_v46, %v819_v43  ;;  %v563_v10 = vmul.f32 %v4574_v8, %v507_v38  ;;  %v564_v2 = vmul.f32 %v4576_v9, %v507_v38 }
 0x11d   : > { %v649_v44 = vadd.f32 %v633_v27, %v567_v36  ;;  %v650_v46 = vadd.f32 %v634_v35, %v568_v37 }
 0x11e   : > { %v522_v55 = vpop.permute.xlu1 %521  ;;  %928 = vmatprep.subr.bf16.mxu0 %v838_v53 }
 0x11f   : > { %929 = vmatpush1.bf16.msra.mxu0 %v837_v54  ;;  %v569_v50 = vmul.f32 %v4574_v8, %v522_v55  ;;  %v570_v52 = vmul.f32 %v4576_v9, %v522_v55  ;;  %v717_v54 = vmul.f32 %v4582_v16, %v4550_v48 }
 0x123   : > { %v593_v49 = vpop.permute.xlu1 %592 }
 0x124   : > { %v635_v41 = vmul.f32 %v4570_v5, %v593_v49  ;;  %v636_v42 = vmul.f32 %v4572_v7, %v593_v49  ;;  %v631_v49 = vmul.f32 %v4570_v5, %v4568_v61 }
 0x126   : > { %v651_v62 = vadd.f32 %v635_v41, %v569_v50  ;;  %v652_v55 = vadd.f32 %v636_v42, %v570_v52  ;;  %v3965_v41 = vld [vmem:[#allocation3 + $0x10] sm:$0xff]   ;;  %v3966_v42 = vld [vmem:[#allocation3 + $0x18] sm:$0xff]  }
 0x128   : > { %v671_v0 = vpop.permute.xlu1 %670 }
 0x129   : > { %v715_v39 = vmul.f32 %v4582_v16, %v671_v0  ;;  %v716_v40 = vmul.f32 %v4584_v17, %v671_v0  ;;  %v764_v0 = vpop.permute.xlu0 %763 }
 0x12b   : > { %v731_v58 = vadd.f32 %v715_v39, %v649_v44  ;;  %v732_v59 = vadd.f32 %v716_v40, %v650_v46  ;;  %v3963_v39 = vld [vmem:[#allocation3] sm:$0xff]   ;;  %v3964_v40 = vld [vmem:[#allocation3 + $0x8] sm:$0xff]  }
 0x12d   : > { %v774_v57 = vpop.permute.xlu1 %773  ;;  %v795_v14 = vadd.f32 %v764_v0, %v731_v58  ;;  %v796_v61 = vadd.f32 %v764_v0, %v732_v59 }
 0x12e   : > { %v799_v21 = vadd.f32 %v774_v57, %v735_v19  ;;  %v800_v22 = vadd.f32 %v774_v57, %v736_v20  ;;  %v733_v19 = vadd.f32 %v717_v54, %v651_v62 }
 0x130   : > { %v815_v28 = vmax.f32 %v799_v21, 0.0  ;;  %v816_v29 = vmax.f32 %v800_v22, 0.0 }
 0x131   : > { %v779_v45 = vpop.permute.xlu1 %778 }
 0x132   : > { %v801_v25 = vadd.f32 %v779_v45, %v737_v23  ;;  %v802_v26 = vadd.f32 %v779_v45, %v738_v24 }
 0x134   : > { %v817_v30 = vmax.f32 %v801_v25, 0.0  ;;  %v818_v11 = vmax.f32 %v802_v26, 0.0  ;;  %v812_v25 = vmax.f32 %v796_v61, 0.0  ;;  %v811_v26 = vmax.f32 %v795_v14, 0.0 }
 0x135   : > { %v512_v31 = vpop.permute.xlu1 %511 }
 0x136   : > { %v836_v32 = vpack.c.bf16 %v818_v11, %v816_v29  ;;  %v835_v33 = vpack.c.bf16 %v817_v30, %v815_v28  ;;  %v565_v53 = vmul.f32 %v4574_v8, %v512_v31  ;;  %v566_v47 = vmul.f32 %v4576_v9, %v512_v31  ;;  %v759_v8 = vpop.permute.xlu0 %758 }
 0x138   : > { %930 = vmatprep.subr.bf16.mxu0 %v836_v32  ;;  %v647_v12 = vadd.f32 %v631_v49, %v565_v53  ;;  %v648_v13 = vadd.f32 %v632_v60, %v566_v47 }
 0x139   : > { %931 = vmatpush1.bf16.msra.mxu0 %v835_v33 }
 0x13a   : > { %v581_v34 = vpop.permute.xlu1 %580  ;;  %v885_v58 = vpop.permute.xlu0 %884 }
 0x13b   : > { %v629_v1 = vmul.f32 %v4570_v5, %v581_v34  ;;  %v630_v3 = vmul.f32 %v4572_v7, %v581_v34  ;;  %v734_v7 = vadd.f32 %v718_v56, %v652_v55 }
 0x13d   : > { %v645_v20 = vadd.f32 %v629_v1, %v563_v10  ;;  %v646_v21 = vadd.f32 %v630_v3, %v564_v2 }
 0x13e   : > { %v875_v55 = vpop.permute.xlu0 %874 }
 0x13f   : > { %v663_v43 = vpop.permute.xlu1 %662 }
 0x140   : > { %v711_v57 = vmul.f32 %v4582_v16, %v663_v43  ;;  %v712_v15 = vmul.f32 %v4584_v17, %v663_v43 }
 0x142   : > { %v727_v45 = vadd.f32 %v711_v57, %v645_v20  ;;  %v728_v9 = vadd.f32 %v712_v15, %v646_v21  ;;  %v865_v2 = vpop.permute.xlu0 %864 }
 0x143   : > { %v667_v63 = vpop.permute.xlu1 %666 }
 0x144   : > { %v713_v4 = vmul.f32 %v4582_v16, %v667_v63  ;;  %v714_v48 = vmul.f32 %v4584_v17, %v667_v63 }
 0x146   : > { %v729_v18 = vadd.f32 %v713_v4, %v647_v12  ;;  %v730_v5 = vadd.f32 %v714_v48, %v648_v13 }
 0x148   : > { %v769_v22 = vpop.permute.xlu1 %768  ;;  %v793_v28 = vadd.f32 %v759_v8, %v729_v18  ;;  %v794_v29 = vadd.f32 %v759_v8, %v730_v5 }
 0x149   : > { %v797_v23 = vadd.f32 %v769_v22, %v733_v19  ;;  %v798_v24 = vadd.f32 %v769_v22, %v734_v7 }
 0x14a   : > { %v810_v35 = vmax.f32 %v794_v29, 0.0  ;;  %v809_v36 = vmax.f32 %v793_v28, 0.0 }
 0x14b   : > { %v813_v30 = vmax.f32 %v797_v23, 0.0  ;;  %v814_v16 = vmax.f32 %v798_v24, 0.0 }
 0x14c   : > { %v754_v11 = vpop.permute.xlu1 %753 }
 0x14d   : > { %v791_v17 = vadd.f32 %v754_v11, %v727_v45  ;;  %v792_v31 = vadd.f32 %v754_v11, %v728_v9  ;;  %v834_v32 = vpack.c.bf16 %v814_v16, %v812_v25  ;;  %v833_v33 = vpack.c.bf16 %v813_v30, %v811_v26  ;;  %v855_v45 = vpop.permute.xlu0 %854 }
 0x14f   : > { %v807_v34 = vmax.f32 %v791_v17, 0.0  ;;  %v808_v27 = vmax.f32 %v792_v31, 0.0  ;;  %932 = vmatprep.subr.bf16.mxu0 %v834_v32 }
 0x150   : > { %933 = vmatpush1.bf16.msra.mxu0 %v833_v33  ;;  %v880_v49 = vpop.permute.xlu1 %879 }
 0x151   : > { %v832_v37 = vpack.c.bf16 %v810_v35, %v808_v27  ;;  %v831_v38 = vpack.c.bf16 %v809_v36, %v807_v34 }
 0x153   : > { %934 = vmatprep.subr.bf16.mxu0 %v832_v37 }
 0x154   : > { %935 = vmatpush1.bf16.msra.mxu0 %v831_v38  ;;  %v870_v0 = vpop.permute.xlu1 %869 }
 0x157   : > { %3776 = vmatmul.mubr.msk.bf16.vlgmr.msra.gmra.mxu0 %vm907_vm0, %v3963_v39 }
 0x158   : > { %962 = vmatprep.mubr.bf16.mxu0 %v4146_v6  ;;  %v860_v57 = vpop.permute.xlu1 %859 }
 0x15c   : > { %v850_v16 = vpop.permute.xlu1 %849 }
 0x15f   : > { %3777 = vmatmul.mubr.msk.bf16.gmra.mxu0 %vm907_vm0, %v3964_v40 }
 0x160   : > { %972 = vmatprep.mubr.bf16.mxu0 %v4146_v6 }
 0x167   : > { %3778 = vmatmul.mubr.msk.bf16.gmra.mxu0 %vm907_vm0, %v3965_v41 }
 0x168   : > { %982 = vmatprep.mubr.bf16.mxu0 %v4146_v6 }
 0x16f   : > { %3779 = vmatmul.mubr.msk.bf16.gmra.mxu0 %vm907_vm0, %v3966_v42 }
 0x170   : > { %1898 = vmatprep.mubr.bf16.mxu0 %v4146_v6 }
 0x217   : > { %v954_v43 = vpop.f32.mrf.mxu0 }
 0x218   : > { %v955_v37 = vadd.f32 %v954_v43, %v850_v16  ;;  %v3968_v43 = vld [vmem:[%s4898_s5 + $0x8] sm:$0xff]  }
 0x219   : > { %v956_v44 = vpop.f32.mrf.mxu0 }
 0x21a   : > { %v957_v31 = vadd.f32 %v956_v44, %v850_v16  ;;  %v3967_v44 = vld [vmem:[%s4898_s5] sm:$0xff]  }
 0x21b   : > { %v958_v46 = vpop.f32.mrf.mxu0 }
 0x21c   : > { %v959_v33 = vadd.f32 %v958_v46, %v855_v45  ;;  %v994_v39 = vmax.f32 %v957_v31, 0.0  ;;  %v3969_v46 = vld [vmem:[%s4898_s5 + $0x10] sm:$0xff]  }
 0x21d   : > { %v960_v50 = vpop.f32.mrf.mxu0 }
 0x21e   : > { %v961_v28 = vadd.f32 %v960_v50, %v855_v45  ;;  %v995_v40 = vmax.f32 %v959_v33, 0.0  ;;  %v993_v50 = vmax.f32 %v955_v37, 0.0 }
 0x21f   : > { %v964_v52 = vpop.f32.mrf.mxu0 }
 0x220   : > { %v965_v11 = vadd.f32 %v964_v52, %v860_v57  ;;  %v996_v35 = vmax.f32 %v961_v28, 0.0  ;;  %v1025_v52 = vpack.c.bf16 %v995_v40, %v993_v50 }
 0x221   : > { %v966_v53 = vpop.f32.mrf.mxu0 }
 0x222   : > { %v967_v23 = vadd.f32 %v966_v53, %v860_v57  ;;  %v997_v38 = vmax.f32 %v965_v11, 0.0  ;;  %v1026_v42 = vpack.c.bf16 %v996_v35, %v994_v39  ;;  %v3970_v53 = vld [vmem:[%s4898_s5 + $0x18] sm:$0xff]  }
 0x223   : > { %v968_v47 = vpop.f32.mrf.mxu0 }
 0x224   : > { %v969_v9 = vadd.f32 %v968_v47, %v865_v2  ;;  %v998_v32 = vmax.f32 %v967_v23, 0.0  ;;  %v3971_v47 = vld [vmem:[%s4898_s5 + $0x20] sm:$0xff]  }
 0x225   : > { %v970_v54 = vpop.f32.mrf.mxu0 }
 0x226   : > { %v971_v5 = vadd.f32 %v970_v54, %v865_v2  ;;  %v999_v34 = vmax.f32 %v969_v9, 0.0  ;;  %v3972_v54 = vld [vmem:[%s4898_s5 + $0x28] sm:$0xff]  }
 0x227   : > { %v974_v56 = vpop.f32.mrf.mxu0 }
 0x228   : > { %v975_v21 = vadd.f32 %v974_v56, %v870_v0  ;;  %v1000_v29 = vmax.f32 %v971_v5, 0.0  ;;  %v1027_v41 = vpack.c.bf16 %v999_v34, %v997_v38  ;;  %v3973_v56 = vld [vmem:[%s4898_s5 + $0x30] sm:$0xff]  }
 0x229   : > { %v976_v59 = vpop.f32.mrf.mxu0 }
 0x22a   : > { %v977_v14 = vadd.f32 %v976_v59, %v870_v0  ;;  %v1001_v17 = vmax.f32 %v975_v21, 0.0  ;;  %v1028_v36 = vpack.c.bf16 %v1000_v29, %v998_v32  ;;  %v1122_v59 = vpop.permute.xlu1 %1121 }
 0x22b   : > { %v978_v60 = vpop.f32.mrf.mxu0 }
 0x22c   : > { %v979_v15 = vadd.f32 %v978_v60, %v875_v55  ;;  %v1002_v24 = vmax.f32 %v977_v14, 0.0 }
 0x22d   : > { %v980_v62 = vpop.f32.mrf.mxu0 }
 0x22e   : > { %v981_v4 = vadd.f32 %v980_v62, %v875_v55  ;;  %v1003_v25 = vmax.f32 %v979_v15, 0.0  ;;  %v4688_v60 = vpop.permute.xlu1 %1111 }
 0x22f   : > { %v984_v63 = vpop.f32.mrf.mxu0 }
 0x230   : > { %v985_v12 = vadd.f32 %v984_v63, %v880_v49  ;;  %v1004_v19 = vmax.f32 %v981_v4, 0.0  ;;  %v1029_v27 = vpack.c.bf16 %v1003_v25, %v1001_v17 }
 0x231   : > { %v986_v1 = vpop.f32.mrf.mxu0 }
 0x232   : > { %v987_v48 = vadd.f32 %v986_v1, %v880_v49  ;;  %v1005_v22 = vmax.f32 %v985_v12, 0.0  ;;  %v1030_v30 = vpack.c.bf16 %v1004_v19, %v1002_v24  ;;  %v1127_v49 = vpop.permute.xlu0 %1126  ;;  %v4690_v55 = vpop.permute.xlu1 %1101 }
 0x233   : > { %v988_v3 = vpop.f32.mrf.mxu0 }
 0x234   : > { %v989_v10 = vadd.f32 %v988_v3, %v885_v58  ;;  %v1006_v7 = vmax.f32 %v987_v48, 0.0 }
 0x235   : > { %v990_v13 = vpop.f32.mrf.mxu0 }
 0x236   : > { %v991_v61 = vadd.f32 %v990_v13, %v885_v58  ;;  %v1007_v18 = vmax.f32 %v989_v10, 0.0  ;;  %v3974_v58 = vld [vmem:[%s4898_s5 + $0x38] sm:$0xff]   ;;  %v1117_v62 = vpop.permute.xlu0 %1116  ;;  %v4694_v0 = vpop.permute.xlu1 %1091 }
 0x238   : > { %v1008_v20 = vmax.f32 %v991_v61, 0.0  ;;  %v1031_v26 = vpack.c.bf16 %v1007_v18, %v1005_v22 }
 0x23a   : > { %v1032_v8 = vpack.c.bf16 %v1008_v20, %v1006_v7  ;;  %v4692_v63 = vpop.permute.xlu0 %1106  ;;  %v4698_v3 = vpop.permute.xlu1 %1081 }
 0x23c   : > { %1201 = vmatprep.subr.bf16.mxu1 %v1032_v8 }
 0x23d   : > { %1202 = vmatpush1.bf16.msra.mxu1 %v1031_v26 }
 0x23e   : > { %1203 = vmatprep.subr.bf16.mxu1 %v1030_v30  ;;  %v4696_v1 = vpop.permute.xlu0 %1096  ;;  %v4702_v48 = vpop.permute.xlu1 %1071 }
 0x241   : > { %1204 = vmatpush1.bf16.msra.mxu1 %v1029_v27 }
 0x242   : > { %1205 = vmatprep.subr.bf16.mxu1 %v1028_v36  ;;  %v4700_v4 = vpop.permute.xlu0 %1086  ;;  %v4706_v2 = vpop.permute.xlu1 %1061 }
 0x245   : > { %1206 = vmatpush1.bf16.msra.mxu1 %v1027_v41 }
 0x246   : > { %1207 = vmatprep.subr.bf16.mxu1 %v1026_v42  ;;  %v4704_v10 = vpop.permute.xlu0 %1076  ;;  %v4710_v14 = vpop.permute.xlu1 %1051 }
 0x249   : > { %1208 = vmatpush1.bf16.msra.mxu1 %v1025_v52 }
 0x24a   : > { %v4708_v12 = vpop.permute.xlu0 %1066 }
 0x24c   : > { %3788 = vmatmul.mubr.msk.bf16.vlgmr.msra.gmra.mxu1 %vm907_vm0, %v3967_v44 }
 0x24d   : > { %1235 = vmatprep.mubr.bf16.mxu1 %v4146_v6 }
 0x24e   : > { %v4715_v15 = vpop.permute.xlu0 %1056 }
 0x254   : > { %3789 = vmatmul.mubr.msk.bf16.gmra.mxu1 %vm907_vm0, %v3968_v43 }
 0x255   : > { %1245 = vmatprep.mubr.bf16.mxu1 %v4146_v6 }
 0x25c   : > { %3790 = vmatmul.mubr.msk.bf16.gmra.mxu1 %vm907_vm0, %v3969_v46 }
 0x25d   : > { %1255 = vmatprep.mubr.bf16.mxu1 %v4146_v6 }
 0x264   : > { %3791 = vmatmul.mubr.msk.bf16.gmra.mxu1 %vm907_vm0, %v3970_v53 }
 0x265   : > { %1265 = vmatprep.mubr.bf16.mxu1 %v4146_v6 }
 0x26c   : > { %3792 = vmatmul.mubr.msk.bf16.gmra.mxu1 %vm907_vm0, %v3971_v47 }
 0x26d   : > { %1275 = vmatprep.mubr.bf16.mxu1 %v4146_v6 }
 0x274   : > { %3793 = vmatmul.mubr.msk.bf16.gmra.mxu1 %vm907_vm0, %v3972_v54 }
 0x275   : > { %1285 = vmatprep.mubr.bf16.mxu1 %v4146_v6 }
 0x27c   : > { %3794 = vmatmul.mubr.msk.bf16.gmra.mxu1 %vm907_vm0, %v3973_v56 }
 0x27d   : > { %1295 = vmatprep.mubr.bf16.mxu1 %v4146_v6 }
 0x284   : > { %3795 = vmatmul.mubr.msk.bf16.gmra.mxu1 %vm907_vm0, %v3974_v58 }
 0x285   : > { %2238 = vmatprep.mubr.bf16.mxu1 %v4146_v6 }
 0x30c   : > { %v1227_v13 = vpop.f32.mrf.mxu1 }
 0x30d   : > { %v1228_v57 = vadd.f32 %v1227_v13, %v4710_v14 }
 0x30e   : > { %v4712_v61 = vpop.f32.mrf.mxu1 }
 0x30f   : > { %v1306_v7 = vmax.f32 %v1228_v57, 0.0 }
 0x310   : > { %v1231_v18 = vpop.f32.mrf.mxu1 }
 0x311   : > { %v1232_v5 = vadd.f32 %v1231_v18, %v4715_v15 }
 0x312   : > { %v4718_v19 = vpop.f32.mrf.mxu1 }
 0x313   : > { %v1308_v20 = vmax.f32 %v1232_v5, 0.0 }
 0x314   : > { %v1237_v21 = vpop.f32.mrf.mxu1 }
 0x315   : > { %v4720_v22 = vpack.c.bf16 %v1308_v20, %v1306_v7  ;;  %v1238_v24 = vadd.f32 %v1237_v21, %v4706_v2 }
 0x316   : > { %v4722_v23 = vpop.f32.mrf.mxu1 }
 0x317   : > { %v1310_v25 = vmax.f32 %v1238_v24, 0.0 }
 0x318   : > { %v1241_v8 = vpop.f32.mrf.mxu1 }
 0x319   : > { %v1242_v45 = vadd.f32 %v1241_v8, %v4708_v12 }
 0x31a   : > { %v4726_v9 = vpop.f32.mrf.mxu1 }
 0x31b   : > { %v1312_v26 = vmax.f32 %v1242_v45, 0.0 }
 0x31c   : > { %v4728_v28 = vpop.f32.mrf.mxu1 }
 0x31d   : > { %v4730_v29 = vpack.c.bf16 %v1312_v26, %v1310_v25 }
 0x31e   : > { %v4732_v30 = vpop.f32.mrf.mxu1 }
 0x320   : > { %v4734_v16 = vpop.f32.mrf.mxu1 }
 0x322   : > { %v4736_v11 = vpop.f32.mrf.mxu1 }
 0x324   : > { %v4738_v17 = vpop.f32.mrf.mxu1 }
 0x326   : > { %v1259_v31 = vpop.f32.mrf.mxu1 }
 0x328   : > { %v4740_v32 = vpop.f32.mrf.mxu1 }
 0x32a   : > { %v1263_v33 = vpop.f32.mrf.mxu1 }
 0x32c   : > { %v1267_v34 = vpop.f32.mrf.mxu1 }
 0x32e   : > { %v1269_v27 = vpop.f32.mrf.mxu1 }
 0x330   : > { %v1271_v35 = vpop.f32.mrf.mxu1 }
 0x332   : > { %v1273_v36 = vpop.f32.mrf.mxu1 }
 0x334   : > { %v1277_v37 = vpop.f32.mrf.mxu1 }
 0x336   : > { %v1279_v38 = vpop.f32.mrf.mxu1 }
 0x337   : > { %v1280_v25 = vadd.f32 %v1279_v38, %v4690_v55 }
 0x338   : > { %v1281_v39 = vpop.f32.mrf.mxu1 }
 0x339   : > { %v1327_v38 = vmax.f32 %v1280_v25, 0.0  ;;  %v3983_v25 = vld [vmem:[#allocation5 + $0x120] sm:$0xff]  }
 0x33a   : > { %v1283_v40 = vpop.f32.mrf.mxu1 }
 0x33b   : > { %v1284_v7 = vadd.f32 %v1283_v40, %v4692_v63 }
 0x33c   : > { %v1287_v41 = vpop.f32.mrf.mxu1 }
 0x33d   : > { %v1288_v8 = vadd.f32 %v1287_v41, %v4688_v60 }
 0x33e   : > { %v1289_v42 = vpop.f32.mrf.mxu1 }
 0x33f   : > { %v1290_v13 = vadd.f32 %v1289_v42, %v4688_v60  ;;  %v1278_v42 = vadd.f32 %v1277_v37, %v4690_v55  ;;  %v1270_v60 = vadd.f32 %v1269_v27, %v4694_v0  ;;  %v1260_v55 = vadd.f32 %v1259_v31, %v4698_v3 }
 0x340   : > { %v1291_v50 = vpop.f32.mrf.mxu1  ;;  %v1262_v27 = vadd.f32 %v4740_v32, %v4700_v4  ;;  %v1250_v31 = vadd.f32 %v4732_v30, %v4702_v48  ;;  %v1240_v30 = vadd.f32 %v4722_v23, %v4706_v2 }
 0x341   : > { %v1292_v18 = vadd.f32 %v1291_v50, %v1117_v62  ;;  %v1331_v26 = vmax.f32 %v1290_v13, 0.0  ;;  %v1330_v50 = vmax.f32 %v1288_v8, 0.0  ;;  %v1323_v37 = vmax.f32 %v1270_v60, 0.0  ;;  %v3995_v60 = vld [vmem:[#allocation5 + $0x150] sm:$0xff]  }
 0x342   : > { %v1293_v52 = vpop.f32.mrf.mxu1  ;;  %v1319_v13 = vmax.f32 %v1260_v55, 0.0  ;;  %v1320_v32 = vmax.f32 %v1262_v27, 0.0  ;;  %v4005_v55 = vld [vmem:[#allocation5 + $0x178] sm:$0xff]   ;;  %v4007_v27 = vld [vmem:[#allocation5 + $0x180] sm:$0xff]  }
 0x343   : > { %v1294_v53 = vadd.f32 %v1293_v52, %v1117_v62  ;;  %v1329_v62 = vmax.f32 %v1284_v7, 0.0  ;;  %v1315_v7 = vmax.f32 %v1250_v31, 0.0  ;;  %v4015_v31 = vld [vmem:[#allocation5 + $0x1a0] sm:$0xff]  }
 0x344   : > { %v1297_v44 = vpop.f32.mrf.mxu1 }
 0x345   : > { %v1298_v56 = vadd.f32 %v1297_v44, %v1122_v59  ;;  %v1333_v20 = vmax.f32 %v1294_v53, 0.0  ;;  %v1332_v44 = vmax.f32 %v1292_v18, 0.0  ;;  %v1477_v53 = vpack.c.bf16 %v1329_v62, %v1327_v38  ;;  %v3991_v62 = vld [vmem:[#allocation5 + $0x140] sm:$0xff]   ;;  %v3990_v38 = vld [vmem:[#allocation5 + $0x48] sm:$0xff]  }
 0x346   : > { %v1299_v43 = vpop.f32.mrf.mxu1 }
 0x347   : > { %v1300_v47 = vadd.f32 %v1299_v43, %v1122_v59  ;;  %v1334_v45 = vmax.f32 %v1298_v56, 0.0  ;;  %v1282_v59 = vadd.f32 %v1281_v39, %v4692_v63  ;;  %v1479_v40 = vpack.c.bf16 %v1333_v20, %v1331_v26  ;;  %v3985_v26 = vld [vmem:[#allocation5 + $0x128] sm:$0xff]  }
 0x348   : > { %v1301_v46 = vpop.f32.mrf.mxu1  ;;  %v1272_v63 = vadd.f32 %v1271_v35, %v4696_v1  ;;  %v1478_v41 = vpack.c.bf16 %v1332_v44, %v1330_v50  ;;  %v1234_v20 = vadd.f32 %v4718_v19, %v4715_v15  ;;  %v3975_v19 = vld [vmem:[#allocation5] sm:$0xff]   ;;  %v3982_v44 = vld [vmem:[#allocation5 + $0x28] sm:$0xff]  }
 0x349   : > { %v1302_v54 = vadd.f32 %v1301_v46, %v1127_v49  ;;  %v1335_v21 = vmax.f32 %v1300_v47, 0.0  ;;  %v1328_v39 = vmax.f32 %v1282_v59, 0.0  ;;  %v1268_v47 = vadd.f32 %v1267_v34, %v4694_v0  ;;  %v3987_v59 = vld [vmem:[#allocation5 + $0x130] sm:$0xff]   ;;  %v3988_v50 = vld [vmem:[#allocation5 + $0x40] sm:$0xff]  }
 0x34a   : > { %v1303_v58 = vpop.f32.mrf.mxu1  ;;  %v1258_v0 = vadd.f32 %v4738_v17, %v4698_v3  ;;  %v1248_v3 = vadd.f32 %v4728_v28, %v4702_v48  ;;  %v1230_v48 = vadd.f32 %v4712_v61, %v4710_v14  ;;  %v1311_v28 = vmax.f32 %v1240_v30, 0.0  ;;  %v3979_v14 = vld [vmem:[#allocation5 + $0x110] sm:$0xff]   ;;  %v3976_v61 = vld [vmem:[#allocation5 + $0x8] sm:$0xff]  }
 0x34b   : > { %v1304_v57 = vadd.f32 %v1303_v58, %v1127_v49  ;;  %v1336_v5 = vmax.f32 %v1302_v54, 0.0  ;;  %v1274_v49 = vadd.f32 %v1273_v36, %v4696_v1  ;;  %v1264_v36 = vadd.f32 %v1263_v33, %v4700_v4  ;;  %v4025_v30 = vld [vmem:[#allocation5 + $0x1c8] sm:$0xff]  }
 0x34c   : > { %v1326_v54 = vmax.f32 %v1278_v42, 0.0  ;;  %v1324_v1 = vmax.f32 %v1272_v63, 0.0  ;;  %v1254_v33 = vadd.f32 %v4736_v11, %v4704_v10  ;;  %v1322_v34 = vmax.f32 %v1268_v47, 0.0  ;;  %v3993_v42 = vld [vmem:[#allocation5 + $0x148] sm:$0xff]   ;;  %v3997_v63 = vld [vmem:[#allocation5 + $0x158] sm:$0xff]   ;;  %v4003_v47 = vld [vmem:[#allocation5 + $0x170] sm:$0xff]  }
 0x34d   : > { %v1337_v24 = vmax.f32 %v1304_v57, 0.0  ;;  %v1480_v43 = vpack.c.bf16 %v1336_v5, %v1334_v45  ;;  %v1325_v46 = vmax.f32 %v1274_v49, 0.0  ;;  %v1321_v56 = vmax.f32 %v1264_v36, 0.0  ;;  %v3981_v45 = vld [vmem:[#allocation5 + $0x118] sm:$0xff]   ;;  %v3984_v49 = vld [vmem:[#allocation5 + $0x30] sm:$0xff]  }
 0x34e   : > { %v1476_v35 = vpack.c.bf16 %v1328_v39, %v1326_v54  ;;  %v1252_v4 = vadd.f32 %v4734_v16, %v4704_v10  ;;  %v1474_v57 = vpack.c.bf16 %v1324_v1, %v1322_v34  ;;  %v1244_v11 = vadd.f32 %v4726_v9, %v4708_v12  ;;  %v3992_v39 = vld [vmem:[#allocation5 + $0x50] sm:$0xff]   ;;  %v3994_v36 = vld [vmem:[#allocation5 + $0x58] sm:$0xff]   ;;  %v3998_v54 = vld [vmem:[#allocation5 + $0x68] sm:$0xff]  }
 0x34f   : > { %v1481_v52 = vpack.c.bf16 %v1337_v24, %v1335_v21  ;;  %v1475_v58 = vpack.c.bf16 %v1325_v46, %v1323_v37  ;;  %v1317_v18 = vmax.f32 %v1254_v33, 0.0  ;;  %v1473_v5 = vpack.c.bf16 %v1321_v56, %v1319_v13  ;;  %v4001_v46 = vld [vmem:[#allocation5 + $0x168] sm:$0xff]   ;;  %v4000_v37 = vld [vmem:[#allocation5 + $0x70] sm:$0xff]   ;;  %v4002_v1 = vld [vmem:[#allocation5 + $0x78] sm:$0xff]  }
 0x350   : > { %v1318_v17 = vmax.f32 %v1258_v0, 0.0  ;;  %v1316_v10 = vmax.f32 %v1252_v4, 0.0  ;;  %v1313_v12 = vmax.f32 %v1244_v11, 0.0  ;;  %v1314_v21 = vmax.f32 %v1248_v3, 0.0  ;;  %v4004_v33 = vld [vmem:[#allocation5 + $0x80] sm:$0xff]   ;;  %v4011_v56 = vld [vmem:[#allocation5 + $0x190] sm:$0xff]  }
 0x351   : > { %1866 = vmatprep.subr.bf16.mxu0 %v1481_v52  ;;  %3863 = vmatprep.subr.bf16.mxu1 %v1481_v52  ;;  %v1471_v9 = vpack.c.bf16 %v1317_v18, %v1315_v7  ;;  %v1309_v23 = vmax.f32 %v1234_v20, 0.0  ;;  %v1307_v8 = vmax.f32 %v1230_v48, 0.0  ;;  %v3980_v52 = vld [vmem:[#allocation5 + $0x20] sm:$0xff]   ;;  %v4013_v0 = vld [vmem:[#allocation5 + $0x198] sm:$0xff]   ;;  %v4008_v34 = vld [vmem:[#allocation5 + $0x90] sm:$0xff]  }
 0x352   : > { %1867 = vmatpush1.bf16.msra.mxu0 %v1480_v43  ;;  %3871 = vmatpush1.bf16.msra.mxu1 %v1480_v43  ;;  %v1472_v16 = vpack.c.bf16 %v1320_v32, %v1318_v17  ;;  %v1470_v2 = vpack.c.bf16 %v1316_v10, %v1314_v21  ;;  %v1469_v24 = vpack.c.bf16 %v1313_v12, %v1311_v28  ;;  %v3989_v43 = vld [vmem:[#allocation5 + $0x138] sm:$0xff]   ;;  %v4017_v4 = vld [vmem:[#allocation5 + $0x1a8] sm:$0xff]   ;;  %v4012_v32 = vld [vmem:[#allocation5 + $0xa0] sm:$0xff]  }
 0x353   : > { %1868 = vmatprep.subr.bf16.mxu0 %v1479_v40  ;;  %3864 = vmatprep.subr.bf16.mxu1 %v1479_v40  ;;  %v1467_v15 = vpack.c.bf16 %v1309_v23, %v1307_v8  ;;  %v3986_v40 = vld [vmem:[#allocation5 + $0x38] sm:$0xff]   ;;  %v4014_v11 = vld [vmem:[#allocation5 + $0xa8] sm:$0xff]   ;;  %v4023_v3 = vld [vmem:[#allocation5 + $0x1c0] sm:$0xff]  }
 0x354   : > { %v4010_v13 = vld [vmem:[#allocation5 + $0x98] sm:$0xff]   ;;  %v4020_v7 = vld [vmem:[#allocation5 + $0xc0] sm:$0xff]   ;;  %v4027_v10 = vld [vmem:[#allocation5 + $0x1d0] sm:$0xff]  }
 0x355   : > { %v4021_v18 = vld [vmem:[#allocation5 + $0x1b8] sm:$0xff]   ;;  %v2735_v48 = vld [vmem:[#allocation2 + $0x70] sm:$0xff] }
 0x356   : > { %1869 = vmatpush1.bf16.msra.mxu0 %v1478_v41  ;;  %3872 = vmatpush1.bf16.msra.mxu1 %v1478_v41  ;;  %v3999_v41 = vld [vmem:[#allocation5 + $0x160] sm:$0xff]   ;;  %v4018_v17 = vld [vmem:[#allocation5 + $0xb8] sm:$0xff]  }
 0x357   : > { %1870 = vmatprep.subr.bf16.mxu0 %v1477_v53  ;;  %3865 = vmatprep.subr.bf16.mxu1 %v1477_v53  ;;  %v3996_v53 = vld [vmem:[#allocation5 + $0x60] sm:$0xff]  }
 0x35a   : > { %1871 = vmatpush1.bf16.msra.mxu0 %v1476_v35  ;;  %3873 = vmatpush1.bf16.msra.mxu1 %v1476_v35  ;;  %v4009_v35 = vld [vmem:[#allocation5 + $0x188] sm:$0xff]  }
 0x35b   : > { %1872 = vmatprep.subr.bf16.mxu0 %v1475_v58  ;;  %3866 = vmatprep.subr.bf16.mxu1 %v1475_v58  ;;  %v4006_v58 = vld [vmem:[#allocation5 + $0x88] sm:$0xff]  }
 0x35e   : > { %1873 = vmatpush1.bf16.msra.mxu0 %v1474_v57  ;;  %3874 = vmatpush1.bf16.msra.mxu1 %v1474_v57  ;;  %v4019_v57 = vld [vmem:[#allocation5 + $0x1b0] sm:$0xff]  }
 0x35f   : > { %1874 = vmatprep.subr.bf16.mxu0 %v1473_v5  ;;  %3867 = vmatprep.subr.bf16.mxu1 %v1473_v5  ;;  %v4016_v5 = vld [vmem:[#allocation5 + $0xb0] sm:$0xff]  }
 0x362   : > { %1875 = vmatpush1.bf16.msra.mxu0 %v1472_v16  ;;  %3875 = vmatpush1.bf16.msra.mxu1 %v1472_v16 }
 0x363   : > { %1876 = vmatprep.subr.bf16.mxu0 %v1471_v9  ;;  %3868 = vmatprep.subr.bf16.mxu1 %v1471_v9  ;;  %v2667_v9 = vld [vmem:[#allocation2 + $0x2b0] sm:$0xff] }
 0x366   : > { %1877 = vmatpush1.bf16.msra.mxu0 %v1470_v2  ;;  %3876 = vmatpush1.bf16.msra.mxu1 %v1470_v2 }
 0x367   : > { %1878 = vmatprep.subr.bf16.mxu0 %v1469_v24  ;;  %3869 = vmatprep.subr.bf16.mxu1 %v1469_v24  ;;  %v4022_v24 = vld [vmem:[#allocation5 + $0xc8] sm:$0xff]  }
 0x36a   : > { %1879 = vmatpush1.bf16.msra.mxu0 %v4730_v29  ;;  %3877 = vmatpush1.bf16.msra.mxu1 %v4730_v29  ;;  %v3977_v29 = vld [vmem:[#allocation5 + $0x10] sm:$0xff]  }
 0x36b   : > { %1880 = vmatprep.subr.bf16.mxu0 %v1467_v15  ;;  %3870 = vmatprep.subr.bf16.mxu1 %v1467_v15  ;;  %v4029_v15 = vld [vmem:[#allocation5 + $0x1d8] sm:$0xff]  }
 0x36e   : > { %1881 = vmatpush1.bf16.msra.mxu0 %v4720_v22  ;;  %3878 = vmatpush1.bf16.msra.mxu1 %v4720_v22  ;;  %v3978_v22 = vld [vmem:[#allocation5 + $0x18] sm:$0xff]  }
 0x371   : > { %1899 = vmatmul.mubr.bf16.vlgmr.msra.gmra.mxu0 %v3975_v19  ;;  %2239 = vmatmul.mubr.bf16.vlgmr.msra.gmra.mxu1 %v3979_v14 }
 0x372   : > { %1908 = vmatprep.mubr.bf16.mxu0 %v4146_v6  ;;  %2248 = vmatprep.mubr.bf16.mxu1 %v4146_v6 }
 0x379   : > { %1909 = vmatmul.mubr.bf16.gmra.mxu0 %v3976_v61  ;;  %2249 = vmatmul.mubr.bf16.gmra.mxu1 %v3981_v45  ;;  %v2668_v45 = vld [vmem:[#allocation2 + $0x3b0] sm:$0xff] }
 0x37a   : > { %1918 = vmatprep.mubr.bf16.mxu0 %v4146_v6  ;;  %2258 = vmatprep.mubr.bf16.mxu1 %v4146_v6 }
 0x381   : > { %1919 = vmatmul.mubr.bf16.gmra.mxu0 %v3977_v29  ;;  %2259 = vmatmul.mubr.bf16.gmra.mxu1 %v3983_v25  ;;  %v2736_v25 = vld [vmem:[#allocation2 + $0x300] sm:$0xff] }
 0x382   : > { %1928 = vmatprep.mubr.bf16.mxu0 %v4146_v6  ;;  %2268 = vmatprep.mubr.bf16.mxu1 %v4146_v6 }
 0x389   : > { %1929 = vmatmul.mubr.bf16.gmra.mxu0 %v3978_v22  ;;  %2269 = vmatmul.mubr.bf16.gmra.mxu1 %v3985_v26 }
 0x38a   : > { %1938 = vmatprep.mubr.bf16.mxu0 %v4146_v6  ;;  %2278 = vmatprep.mubr.bf16.mxu1 %v4146_v6 }
 0x391   : > { %1939 = vmatmul.mubr.bf16.gmra.mxu0 %v3980_v52  ;;  %2279 = vmatmul.mubr.bf16.gmra.mxu1 %v3987_v59 }
 0x392   : > { %1948 = vmatprep.mubr.bf16.mxu0 %v4146_v6  ;;  %2288 = vmatprep.mubr.bf16.mxu1 %v4146_v6 }
 0x399   : > { %1949 = vmatmul.mubr.bf16.gmra.mxu0 %v3982_v44  ;;  %2289 = vmatmul.mubr.bf16.gmra.mxu1 %v3989_v43 }
 0x39a   : > { %1958 = vmatprep.mubr.bf16.mxu0 %v4146_v6  ;;  %2298 = vmatprep.mubr.bf16.mxu1 %v4146_v6 }
 0x3a1   : > { %1959 = vmatmul.mubr.bf16.gmra.mxu0 %v3984_v49  ;;  %2299 = vmatmul.mubr.bf16.gmra.mxu1 %v3991_v62  ;;  %v2669_v62 = vld [vmem:[#allocation2 + $0xd8] sm:$0xff] }
 0x3a2   : > { %1968 = vmatprep.mubr.bf16.mxu0 %v4146_v6  ;;  %2308 = vmatprep.mubr.bf16.mxu1 %v4146_v6 }
 0x3a9   : > { %1969 = vmatmul.mubr.bf16.gmra.mxu0 %v3986_v40  ;;  %2309 = vmatmul.mubr.bf16.gmra.mxu1 %v3993_v42  ;;  %v2737_v42 = vld [vmem:[#allocation2 + $0xe0] sm:$0xff] }
 0x3aa   : > { %1978 = vmatprep.mubr.bf16.mxu0 %v4146_v6  ;;  %2318 = vmatprep.mubr.bf16.mxu1 %v4146_v6 }
 0x3b1   : > { %1979 = vmatmul.mubr.bf16.gmra.mxu0 %v3988_v50  ;;  %2319 = vmatmul.mubr.bf16.gmra.mxu1 %v3995_v60 }
 0x3b2   : > { %1988 = vmatprep.mubr.bf16.mxu0 %v4146_v6  ;;  %2328 = vmatprep.mubr.bf16.mxu1 %v4146_v6 }
 0x3b9   : > { %1989 = vmatmul.mubr.bf16.gmra.mxu0 %v3990_v38  ;;  %2329 = vmatmul.mubr.bf16.gmra.mxu1 %v3997_v63  ;;  %v4024_v63 = vld [vmem:[#allocation5 + $0xd0] sm:$0xff]  }
 0x3ba   : > { %1998 = vmatprep.mubr.bf16.mxu0 %v4146_v6  ;;  %2338 = vmatprep.mubr.bf16.mxu1 %v4146_v6 }
 0x3c1   : > { %1999 = vmatmul.mubr.bf16.gmra.mxu0 %v3992_v39  ;;  %2339 = vmatmul.mubr.bf16.gmra.mxu1 %v3999_v41  ;;  %v4031_v41 = vld [vmem:[#allocation5 + $0x1e0] sm:$0xff]  }
 0x3c2   : > { %2008 = vmatprep.mubr.bf16.mxu0 %v4146_v6  ;;  %2348 = vmatprep.mubr.bf16.mxu1 %v4146_v6 }
 0x3c9   : > { %2009 = vmatmul.mubr.bf16.gmra.mxu0 %v3994_v36  ;;  %2349 = vmatmul.mubr.bf16.gmra.mxu1 %v4001_v46 }
 0x3ca   : > { %2018 = vmatprep.mubr.bf16.mxu0 %v4146_v6  ;;  %2358 = vmatprep.mubr.bf16.mxu1 %v4146_v6 }
 0x3d1   : > { %2019 = vmatmul.mubr.bf16.gmra.mxu0 %v3996_v53  ;;  %2359 = vmatmul.mubr.bf16.gmra.mxu1 %v4003_v47  ;;  %v2670_v47 = vld [vmem:[#allocation2 + $0x18] sm:$0xff] }
 0x3d2   : > { %2028 = vmatprep.mubr.bf16.mxu0 %v4146_v6  ;;  %2368 = vmatprep.mubr.bf16.mxu1 %v4146_v6 }
 0x3d9   : > { %2029 = vmatmul.mubr.bf16.gmra.mxu0 %v3998_v54  ;;  %2369 = vmatmul.mubr.bf16.gmra.mxu1 %v4005_v55  ;;  %v2738_v55 = vld [vmem:[#allocation2 + $0x178] sm:$0xff] }
 0x3da   : > { %2038 = vmatprep.mubr.bf16.mxu0 %v4146_v6  ;;  %2378 = vmatprep.mubr.bf16.mxu1 %v4146_v6 }
 0x3e1   : > { %2039 = vmatmul.mubr.bf16.gmra.mxu0 %v4000_v37  ;;  %2379 = vmatmul.mubr.bf16.gmra.mxu1 %v4007_v27 }
 0x3e2   : > { %2048 = vmatprep.mubr.bf16.mxu0 %v4146_v6  ;;  %2388 = vmatprep.mubr.bf16.mxu1 %v4146_v6 }
 0x3e9   : > { %2049 = vmatmul.mubr.bf16.gmra.mxu0 %v4002_v1  ;;  %2389 = vmatmul.mubr.bf16.gmra.mxu1 %v4009_v35 }
 0x3ea   : > { %2058 = vmatprep.mubr.bf16.mxu0 %v4146_v6  ;;  %2398 = vmatprep.mubr.bf16.mxu1 %v4146_v6 }
 0x3f1   : > { %2059 = vmatmul.mubr.bf16.gmra.mxu0 %v4004_v33  ;;  %2399 = vmatmul.mubr.bf16.gmra.mxu1 %v4011_v56 }
 0x3f2   : > { %2068 = vmatprep.mubr.bf16.mxu0 %v4146_v6  ;;  %2408 = vmatprep.mubr.bf16.mxu1 %v4146_v6 }
 0x3f9   : > { %2069 = vmatmul.mubr.bf16.gmra.mxu0 %v4006_v58  ;;  %2409 = vmatmul.mubr.bf16.gmra.mxu1 %v4013_v0  ;;  %v2671_v0 = vld [vmem:[#allocation2 + $0x50] sm:$0xff] }
 0x3fa   : > { %2078 = vmatprep.mubr.bf16.mxu0 %v4146_v6  ;;  %2418 = vmatprep.mubr.bf16.mxu1 %v4146_v6 }
 0x401   : > { %2079 = vmatmul.mubr.bf16.gmra.mxu0 %v4008_v34  ;;  %2419 = vmatmul.mubr.bf16.gmra.mxu1 %v4015_v31  ;;  %v2739_v31 = vld [vmem:[#allocation2 + $0x328] sm:$0xff] }
 0x402   : > { %2088 = vmatprep.mubr.bf16.mxu0 %v4146_v6  ;;  %2428 = vmatprep.mubr.bf16.mxu1 %v4146_v6 }
 0x409   : > { %2089 = vmatmul.mubr.bf16.gmra.mxu0 %v4010_v13  ;;  %2429 = vmatmul.mubr.bf16.gmra.mxu1 %v4017_v4 }
 0x40a   : > { %2098 = vmatprep.mubr.bf16.mxu0 %v4146_v6  ;;  %2438 = vmatprep.mubr.bf16.mxu1 %v4146_v6 }
 0x411   : > { %2099 = vmatmul.mubr.bf16.gmra.mxu0 %v4012_v32  ;;  %2439 = vmatmul.mubr.bf16.gmra.mxu1 %v4019_v57  ;;  %v4026_v57 = vld [vmem:[#allocation5 + $0xd8] sm:$0xff]  }
 0x412   : > { %2108 = vmatprep.mubr.bf16.mxu0 %v4146_v6  ;;  %2448 = vmatprep.mubr.bf16.mxu1 %v4146_v6 }
 0x419   : > { %2109 = vmatmul.mubr.bf16.gmra.mxu0 %v4014_v11  ;;  %2449 = vmatmul.mubr.bf16.gmra.mxu1 %v4021_v18  ;;  %v4033_v18 = vld [vmem:[#allocation5 + $0x1e8] sm:$0xff]  }
 0x41a   : > { %2118 = vmatprep.mubr.bf16.mxu0 %v4146_v6  ;;  %2458 = vmatprep.mubr.bf16.mxu1 %v4146_v6 }
 0x421   : > { %2119 = vmatmul.mubr.bf16.gmra.mxu0 %v4016_v5  ;;  %2459 = vmatmul.mubr.bf16.gmra.mxu1 %v4023_v3 }
 0x422   : > { %2128 = vmatprep.mubr.bf16.mxu0 %v4146_v6  ;;  %2468 = vmatprep.mubr.bf16.mxu1 %v4146_v6 }
 0x429   : > { %2129 = vmatmul.mubr.bf16.gmra.mxu0 %v4018_v17  ;;  %2469 = vmatmul.mubr.bf16.gmra.mxu1 %v4025_v30  ;;  %v2672_v30 = vld [vmem:[#allocation2 + $0x368] sm:$0xff] }
 0x42a   : > { %2138 = vmatprep.mubr.bf16.mxu0 %v4146_v6  ;;  %2478 = vmatprep.mubr.bf16.mxu1 %v4146_v6 }
 0x431   : > { %v1900_v16 = vpop.f32.mrf.mxu0  ;;  %2139 = vmatmul.mubr.bf16.gmra.mxu0 %v4020_v7  ;;  %v2240_v20 = vpop.f32.mrf.mxu1  ;;  %2479 = vmatmul.mubr.bf16.gmra.mxu1 %v4027_v10  ;;  %v2740_v10 = vld [vmem:[#allocation2 + $0x260] sm:$0xff] }
 0x432   : > { %2148 = vmatprep.mubr.bf16.mxu0 %v4146_v6  ;;  %2488 = vmatprep.mubr.bf16.mxu1 %v4146_v6 }
 0x433   : > { %v1902_v12 = vpop.f32.mrf.mxu0  ;;  %v2242_v21 = vpop.f32.mrf.mxu1 }
 0x434   : > { %v2539_v28 = vmax.f32 %v1900_v16, %v1902_v12  ;;  %v2607_v2 = vmax.f32 %v2240_v20, %v2242_v21 }
 0x435   : > { %v1904_v23 = vpop.f32.mrf.mxu0  ;;  %v2244_v8 = vpop.f32.mrf.mxu1 }
 0x436   : > { %v2795_v19 = vmax.f32 %v2667_v9, %v2539_v28  ;;  %v2863_v14 = vmax.f32 %v2735_v48, %v2607_v2  ;;  %v2673_v2 = vld [vmem:[#allocation2 + $0x330] sm:$0xff] }
 0x437   : > { %v1906_v61 = vpop.f32.mrf.mxu0  ;;  %v2246_v29 = vpop.f32.mrf.mxu1 }
 0x438   : > { %2923 = vst [vmem:[#allocation2 + $0x2b0] sm:$0xff] %v2795_v19  ;;  %v2540_v22 = vmax.f32 %v1904_v23, %v1906_v61  ;;  %2991 = vst [vmem:[#allocation2 + $0x70] sm:$0xff] %v2863_v14  ;;  %v2608_v26 = vmax.f32 %v2244_v8, %v2246_v29  ;;  %v4028_v14 = vld [vmem:[#allocation5 + $0xe0] sm:$0xff]  }
 0x439   : > { %v1910_v52 = vpop.f32.mrf.mxu0  ;;  %2149 = vmatmul.mubr.bf16.gmra.mxu0 %v4022_v24  ;;  %v2250_v59 = vpop.f32.mrf.mxu1  ;;  %2489 = vmatmul.mubr.bf16.gmra.mxu1 %v4029_v15  ;;  %v2741_v24 = vld [vmem:[#allocation2 + $0x3b8] sm:$0xff] }
 0x43a   : > { %v2796_v44 = vmax.f32 %v2668_v45, %v2540_v22  ;;  %2158 = vmatprep.mubr.bf16.mxu0 %v4146_v6  ;;  %v2864_v43 = vmax.f32 %v2736_v25, %v2608_v26  ;;  %2498 = vmatprep.mubr.bf16.mxu1 %v4146_v6  ;;  %v4035_v45 = vld [vmem:[#allocation5 + $0x1f0] sm:$0xff]   ;;  %v2674_v26 = vld [vmem:[#allocation2 + $0x48] sm:$0xff] }
 0x43b   : > { %v1912_v49 = vpop.f32.mrf.mxu0  ;;  %v2252_v40 = vpop.f32.mrf.mxu1 }
 0x43c   : > { %2924 = vst [vmem:[#allocation2 + $0x3b0] sm:$0xff] %v2796_v44  ;;  %v2541_v50 = vmax.f32 %v1910_v52, %v1912_v49  ;;  %2992 = vst [vmem:[#allocation2 + $0x300] sm:$0xff] %v2864_v43  ;;  %v2609_v60 = vmax.f32 %v2250_v59, %v2252_v40  ;;  %v2742_v59 = vld [vmem:[#allocation2 + $0x2b8] sm:$0xff] }
 0x43d   : > { %v1914_v38 = vpop.f32.mrf.mxu0  ;;  %v2254_v39 = vpop.f32.mrf.mxu1 }
 0x43e   : > { %v2797_v36 = vmax.f32 %v2669_v62, %v2541_v50  ;;  %v2865_v46 = vmax.f32 %v2737_v42, %v2609_v60  ;;  %v2675_v60 = vld [vmem:[#allocation2 + $0x380] sm:$0xff] }
 0x43f   : > { %v1916_v53 = vpop.f32.mrf.mxu0  ;;  %v2256_v54 = vpop.f32.mrf.mxu1 }
 0x440   : > { %2925 = vst [vmem:[#allocation2 + $0xd8] sm:$0xff] %v2797_v36  ;;  %v2542_v37 = vmax.f32 %v1914_v38, %v1916_v53  ;;  %2993 = vst [vmem:[#allocation2 + $0xe0] sm:$0xff] %v2865_v46  ;;  %v2610_v27 = vmax.f32 %v2254_v39, %v2256_v54  ;;  %v4030_v46 = vld [vmem:[#allocation5 + $0xe8] sm:$0xff]  }
 0x441   : > { %v1920_v1 = vpop.f32.mrf.mxu0  ;;  %2159 = vmatmul.mubr.bf16.gmra.mxu0 %v4024_v63  ;;  %v2260_v35 = vpop.f32.mrf.mxu1  ;;  %2499 = vmatmul.mubr.bf16.gmra.mxu1 %v4031_v41  ;;  %v2743_v63 = vld [vmem:[#allocation2 + $0x248] sm:$0xff] }
 0x442   : > { %v2798_v33 = vmax.f32 %v2670_v47, %v2542_v37  ;;  %2168 = vmatprep.mubr.bf16.mxu0 %v4146_v6  ;;  %v2866_v56 = vmax.f32 %v2738_v55, %v2610_v27  ;;  %2508 = vmatprep.mubr.bf16.mxu1 %v4146_v6  ;;  %v4037_v47 = vld [vmem:[#allocation5 + $0x1f8] sm:$0xff]   ;;  %v2676_v27 = vld [vmem:[#allocation2 + $0x110] sm:$0xff] }
 0x443   : > { %v1922_v58 = vpop.f32.mrf.mxu0  ;;  %v2262_v34 = vpop.f32.mrf.mxu1 }
 0x444   : > { %2926 = vst [vmem:[#allocation2 + $0x18] sm:$0xff] %v2798_v33  ;;  %v2543_v13 = vmax.f32 %v1920_v1, %v1922_v58  ;;  %2994 = vst [vmem:[#allocation2 + $0x178] sm:$0xff] %v2866_v56  ;;  %v2611_v4 = vmax.f32 %v2260_v35, %v2262_v34  ;;  %v2744_v35 = vld [vmem:[#allocation2 + $0x40] sm:$0xff] }
 0x445   : > { %v1924_v32 = vpop.f32.mrf.mxu0  ;;  %v2264_v11 = vpop.f32.mrf.mxu1 }
 0x446   : > { %v2799_v5 = vmax.f32 %v2671_v0, %v2543_v13  ;;  %v2867_v3 = vmax.f32 %v2739_v31, %v2611_v4  ;;  %v2677_v4 = vld [vmem:[#allocation2 + $0x118] sm:$0xff] }
 0x447   : > { %v1926_v17 = vpop.f32.mrf.mxu0  ;;  %v2266_v7 = vpop.f32.mrf.mxu1 }
 0x448   : > { %2927 = vst [vmem:[#allocation2 + $0x50] sm:$0xff] %v2799_v5  ;;  %v2544_v16 = vmax.f32 %v1924_v32, %v1926_v17  ;;  %2995 = vst [vmem:[#allocation2 + $0x328] sm:$0xff] %v2867_v3  ;;  %v2612_v20 = vmax.f32 %v2264_v11, %v2266_v7  ;;  %v4032_v3 = vld [vmem:[#allocation5 + $0xf0] sm:$0xff]  }
 0x449   : > { %v1930_v12 = vpop.f32.mrf.mxu0  ;;  %2169 = vmatmul.mubr.bf16.gmra.mxu0 %v4026_v57  ;;  %v2270_v9 = vpop.f32.mrf.mxu1  ;;  %2509 = vmatmul.mubr.bf16.gmra.mxu1 %v4033_v18  ;;  %v2745_v57 = vld [vmem:[#allocation2 + $0x20] sm:$0xff] }
 0x44a   : > { %v2800_v21 = vmax.f32 %v2672_v30, %v2544_v16  ;;  %2178 = vmatprep.mubr.bf16.mxu0 %v4146_v6  ;;  %v2868_v48 = vmax.f32 %v2740_v10, %v2612_v20  ;;  %2518 = vmatprep.mubr.bf16.mxu1 %v4146_v6  ;;  %v2678_v16 = vld [vmem:[#allocation2 + $0x98] sm:$0xff] }
 0x44b   : > { %v1932_v28 = vpop.f32.mrf.mxu0  ;;  %v2272_v23 = vpop.f32.mrf.mxu1 }
 0x44c   : > { %2928 = vst [vmem:[#allocation2 + $0x368] sm:$0xff] %v2800_v21  ;;  %v2545_v8 = vmax.f32 %v1930_v12, %v1932_v28  ;;  %2996 = vst [vmem:[#allocation2 + $0x260] sm:$0xff] %v2868_v48  ;;  %v2613_v15 = vmax.f32 %v2270_v9, %v2272_v23  ;;  %v2746_v12 = vld [vmem:[#allocation2 + $0xe8] sm:$0xff] }
 0x44d   : > { %v1934_v19 = vpop.f32.mrf.mxu0  ;;  %v2274_v61 = vpop.f32.mrf.mxu1 }
 0x44e   : > { %v2801_v29 = vmax.f32 %v2673_v2, %v2545_v8  ;;  %v2869_v25 = vmax.f32 %v2741_v24, %v2613_v15  ;;  %v2679_v8 = vld [vmem:[#allocation2 + $0x320] sm:$0xff] }
 0x44f   : > { %v1936_v22 = vpop.f32.mrf.mxu0  ;;  %v2276_v52 = vpop.f32.mrf.mxu1 }
 0x450   : > { %2929 = vst [vmem:[#allocation2 + $0x330] sm:$0xff] %v2801_v29  ;;  %v2546_v44 = vmax.f32 %v1934_v19, %v1936_v22  ;;  %2997 = vst [vmem:[#allocation2 + $0x3b8] sm:$0xff] %v2869_v25  ;;  %v2614_v43 = vmax.f32 %v2274_v61, %v2276_v52  ;;  %v2747_v19 = vld [vmem:[#allocation2 + $0x288] sm:$0xff]  ;;  %v4034_v29 = vld [vmem:[#allocation5 + $0xf8] sm:$0xff]  }
 0x451   : > { %v1940_v49 = vpop.f32.mrf.mxu0  ;;  %2179 = vmatmul.mubr.bf16.gmra.mxu0 %v4028_v14  ;;  %v2280_v62 = vpop.f32.mrf.mxu1  ;;  %2519 = vmatmul.mubr.bf16.gmra.mxu1 %v4035_v45 }
 0x452   : > { %v2802_v40 = vmax.f32 %v2674_v26, %v2546_v44  ;;  %2188 = vmatprep.mubr.bf16.mxu0 %v4146_v6  ;;  %v2870_v42 = vmax.f32 %v2742_v59, %v2614_v43  ;;  %2528 = vmatprep.mubr.bf16.mxu1 %v4146_v6  ;;  %v2680_v59 = vld [vmem:[#allocation2 + $0x150] sm:$0xff]  ;;  %v2748_v43 = vld [vmem:[#allocation2 + $0x3a8] sm:$0xff] }
 0x453   : > { %v1942_v50 = vpop.f32.mrf.mxu0  ;;  %v2282_v38 = vpop.f32.mrf.mxu1 }
 0x454   : > { %2930 = vst [vmem:[#allocation2 + $0x48] sm:$0xff] %v2802_v40  ;;  %v2547_v39 = vmax.f32 %v1940_v49, %v1942_v50  ;;  %2998 = vst [vmem:[#allocation2 + $0x2b8] sm:$0xff] %v2870_v42  ;;  %v2615_v41 = vmax.f32 %v2280_v62, %v2282_v38 }
 0x455   : > { %v1944_v36 = vpop.f32.mrf.mxu0  ;;  %v2284_v53 = vpop.f32.mrf.mxu1 }
 0x456   : > { %v2803_v54 = vmax.f32 %v2675_v60, %v2547_v39  ;;  %v2871_v55 = vmax.f32 %v2743_v63, %v2615_v41  ;;  %v2681_v63 = vld [vmem:[#allocation2 + $0x108] sm:$0xff] }
 0x457   : > { %v1946_v37 = vpop.f32.mrf.mxu0  ;;  %v2286_v1 = vpop.f32.mrf.mxu1  ;;  %v2749_v41 = vld [vmem:[#allocation2 + $0x3c8] sm:$0xff] }
 0x458   : > { %2931 = vst [vmem:[#allocation2 + $0x380] sm:$0xff] %v2803_v54  ;;  %v2548_v33 = vmax.f32 %v1944_v36, %v1946_v37  ;;  %2999 = vst [vmem:[#allocation2 + $0x248] sm:$0xff] %v2871_v55  ;;  %v2616_v56 = vmax.f32 %v2284_v53, %v2286_v1  ;;  %v2682_v1 = vld [vmem:[#allocation2 + $0x60] sm:$0xff] }
 0x459   : > { %v1950_v58 = vpop.f32.mrf.mxu0  ;;  %2189 = vmatmul.mubr.bf16.gmra.mxu0 %v4030_v46  ;;  %v2290_v0 = vpop.f32.mrf.mxu1  ;;  %2529 = vmatmul.mubr.bf16.gmra.mxu1 %v4037_v47  ;;  %v4036_v47 = vld [vmem:[#allocation5 + $0x100] sm:$0xff]  }
 0x45a   : > { %v2804_v34 = vmax.f32 %v2676_v27, %v2548_v33  ;;  %2198 = vmatprep.mubr.bf16.mxu0 %v4146_v6  ;;  %v2872_v31 = vmax.f32 %v2744_v35, %v2616_v56  ;;  %v2750_v33 = vld [vmem:[#allocation2 + $0x160] sm:$0xff] }
 0x45b   : > { %v1952_v13 = vpop.f32.mrf.mxu0  ;;  %v2292_v32 = vpop.f32.mrf.mxu1 }
 0x45c   : > { %2932 = vst [vmem:[#allocation2 + $0x110] sm:$0xff] %v2804_v34  ;;  %v2549_v11 = vmax.f32 %v1950_v58, %v1952_v13  ;;  %3000 = vst [vmem:[#allocation2 + $0x40] sm:$0xff] %v2872_v31  ;;  %v2617_v18 = vmax.f32 %v2290_v0, %v2292_v32  ;;  %v2683_v32 = vld [vmem:[#allocation2 + $0x2e0] sm:$0xff] }
 0x45d   : > { %v1954_v5 = vpop.f32.mrf.mxu0  ;;  %v2294_v17 = vpop.f32.mrf.mxu1 }
 0x45e   : > { %v2805_v30 = vmax.f32 %v2677_v4, %v2549_v11  ;;  %v2873_v7 = vmax.f32 %v2745_v57, %v2617_v18  ;;  %v2751_v11 = vld [vmem:[#allocation2 + $0x2c8] sm:$0xff] }
 0x45f   : > { %v1956_v10 = vpop.f32.mrf.mxu0  ;;  %v2296_v20 = vpop.f32.mrf.mxu1 }
 0x460   : > { %2933 = vst [vmem:[#allocation2 + $0x118] sm:$0xff] %v2805_v30  ;;  %v2550_v9 = vmax.f32 %v1954_v5, %v1956_v10  ;;  %3001 = vst [vmem:[#allocation2 + $0x20] sm:$0xff] %v2873_v7  ;;  %v2618_v21 = vmax.f32 %v2294_v17, %v2296_v20  ;;  %v4038_v17 = vld [vmem:[#allocation5 + $0x108] sm:$0xff]  }
 0x461   : > { %v1960_v48 = vpop.f32.mrf.mxu0  ;;  %2199 = vmatmul.mubr.bf16.gmra.mxu0 %v4032_v3  ;;  %v2300_v28 = vpop.f32.mrf.mxu1  ;;  %v2684_v20 = vld [vmem:[#allocation2 + $0x388] sm:$0xff] }
 0x462   : > { %v2806_v2 = vmax.f32 %v2678_v16, %v2550_v9  ;;  %2208 = vmatprep.mubr.bf16.mxu0 %v4146_v6  ;;  %v2874_v23 = vmax.f32 %v2746_v12, %v2618_v21  ;;  %v2752_v9 = vld [vmem:[#allocation2 + $0x210] sm:$0xff] }
 0x463   : > { %v1962_v24 = vpop.f32.mrf.mxu0  ;;  %v2302_v15 = vpop.f32.mrf.mxu1 }
 0x464   : > { %2934 = vst [vmem:[#allocation2 + $0x98] sm:$0xff] %v2806_v2  ;;  %v2551_v14 = vmax.f32 %v1960_v48, %v1962_v24  ;;  %3002 = vst [vmem:[#allocation2 + $0xe8] sm:$0xff] %v2874_v23  ;;  %v2619_v61 = vmax.f32 %v2300_v28, %v2302_v15 }
 0x465   : > { %v1964_v45 = vpop.f32.mrf.mxu0  ;;  %v2304_v25 = vpop.f32.mrf.mxu1 }
 0x466   : > { %v2807_v22 = vmax.f32 %v2679_v8, %v2551_v14  ;;  %v2875_v26 = vmax.f32 %v2747_v19, %v2619_v61  ;;  %v2685_v8 = vld [vmem:[#allocation2 + $0x338] sm:$0xff] }
 0x467   : > { %v1966_v52 = vpop.f32.mrf.mxu0  ;;  %v2306_v44 = vpop.f32.mrf.mxu1  ;;  %v2753_v19 = vld [vmem:[#allocation2 + $0x3d8] sm:$0xff] }
 0x468   : > { %2935 = vst [vmem:[#allocation2 + $0x320] sm:$0xff] %v2807_v22  ;;  %v2552_v49 = vmax.f32 %v1964_v45, %v1966_v52  ;;  %3003 = vst [vmem:[#allocation2 + $0x288] sm:$0xff] %v2875_v26  ;;  %v2620_v62 = vmax.f32 %v2304_v25, %v2306_v44  ;;  %v2686_v52 = vld [vmem:[#allocation2 + $0x340] sm:$0xff]  ;;  %v2754_v44 = vld [vmem:[#allocation2 + $0x1e8] sm:$0xff] }
 0x469   : > { %v1970_v40 = vpop.f32.mrf.mxu0  ;;  %2209 = vmatmul.mubr.bf16.gmra.mxu0 %v4034_v29  ;;  %v2310_v42 = vpop.f32.mrf.mxu1 }
 0x46a   : > { %v2808_v50 = vmax.f32 %v2680_v59, %v2552_v49  ;;  %2218 = vmatprep.mubr.bf16.mxu0 %v4146_v6  ;;  %v2876_v60 = vmax.f32 %v2748_v43, %v2620_v62 }
 0x46b   : > { %v1972_v38 = vpop.f32.mrf.mxu0  ;;  %v2312_v39 = vpop.f32.mrf.mxu1 }
 0x46c   : > { %2936 = vst [vmem:[#allocation2 + $0x150] sm:$0xff] %v2808_v50  ;;  %v2553_v36 = vmax.f32 %v1970_v40, %v1972_v38  ;;  %3004 = vst [vmem:[#allocation2 + $0x3a8] sm:$0xff] %v2876_v60  ;;  %v2621_v46 = vmax.f32 %v2310_v42, %v2312_v39  ;;  %v2687_v38 = vld [vmem:[#allocation2 + $0x80] sm:$0xff]  ;;  %v2755_v39 = vld [vmem:[#allocation2 + $0x1b0] sm:$0xff] }
 0x46d   : > { %v1974_v53 = vpop.f32.mrf.mxu0  ;;  %v2314_v54 = vpop.f32.mrf.mxu1 }
 0x46e   : > { %v2809_v55 = vmax.f32 %v2681_v63, %v2553_v36  ;;  %v2877_v37 = vmax.f32 %v2749_v41, %v2621_v46 }
 0x46f   : > { %v1976_v27 = vpop.f32.mrf.mxu0  ;;  %v2316_v35 = vpop.f32.mrf.mxu1 }
 0x470   : > { %2937 = vst [vmem:[#allocation2 + $0x108] sm:$0xff] %v2809_v55  ;;  %v2554_v56 = vmax.f32 %v1974_v53, %v1976_v27  ;;  %3005 = vst [vmem:[#allocation2 + $0x3c8] sm:$0xff] %v2877_v37  ;;  %v2622_v58 = vmax.f32 %v2314_v54, %v2316_v35  ;;  %v2688_v37 = vld [vmem:[#allocation2 + $0x1a8] sm:$0xff] }
 0x471   : > { %v1980_v0 = vpop.f32.mrf.mxu0  ;;  %2219 = vmatmul.mubr.bf16.gmra.mxu0 %v4036_v47  ;;  %v2320_v34 = vpop.f32.mrf.mxu1 }
 0x472   : > { %v2810_v31 = vmax.f32 %v2682_v1, %v2554_v56  ;;  %2228 = vmatprep.mubr.bf16.mxu0 %v4146_v6  ;;  %v2878_v13 = vmax.f32 %v2750_v33, %v2622_v58  ;;  %v2756_v1 = vld [vmem:[#allocation2 + $0x1c8] sm:$0xff] }
 0x473   : > { %v1982_v4 = vpop.f32.mrf.mxu0  ;;  %v2322_v57 = vpop.f32.mrf.mxu1 }
 0x474   : > { %2938 = vst [vmem:[#allocation2 + $0x60] sm:$0xff] %v2810_v31  ;;  %v2555_v18 = vmax.f32 %v1980_v0, %v1982_v4  ;;  %3006 = vst [vmem:[#allocation2 + $0x160] sm:$0xff] %v2878_v13  ;;  %v2623_v5 = vmax.f32 %v2320_v34, %v2322_v57  ;;  %v2689_v13 = vld [vmem:[#allocation2 + $0x1b8] sm:$0xff] }
 0x475   : > { %v1984_v3 = vpop.f32.mrf.mxu0  ;;  %v2324_v30 = vpop.f32.mrf.mxu1 }
 0x476   : > { %v2811_v7 = vmax.f32 %v2683_v32, %v2555_v18  ;;  %v2879_v10 = vmax.f32 %v2751_v11, %v2623_v5  ;;  %v2757_v32 = vld [vmem:[#allocation2 + $0x2d0] sm:$0xff] }
 0x477   : > { %v1986_v16 = vpop.f32.mrf.mxu0  ;;  %v2326_v12 = vpop.f32.mrf.mxu1 }
 0x478   : > { %2939 = vst [vmem:[#allocation2 + $0x2e0] sm:$0xff] %v2811_v7  ;;  %v2556_v6 = vmax.f32 %v1984_v3, %v1986_v16  ;;  %3007 = vst [vmem:[#allocation2 + $0x2c8] sm:$0xff] %v2879_v10  ;;  %v2624_v21 = vmax.f32 %v2324_v30, %v2326_v12  ;;  %v2690_v7 = vld [vmem:[#allocation2 + $0x168] sm:$0xff]  ;;  %v2758_v16 = vld [vmem:[#allocation2 + $0x1d0] sm:$0xff] }
 0x479   : > { %v1990_v48 = vpop.f32.mrf.mxu0  ;;  %2229 = vmatmul.mubr.bf16.gmra.mxu0 %v4038_v17  ;;  %v2330_v28 = vpop.f32.mrf.mxu1 }
 0x47a   : > { %v2812_v2 = vmax.f32 %v2684_v20, %v2556_v6  ;;  %v2880_v23 = vmax.f32 %v2752_v9, %v2624_v21 }
 0x47b   : > { %v1992_v24 = vpop.f32.mrf.mxu0  ;;  %v2332_v15 = vpop.f32.mrf.mxu1 }
 0x47c   : > { %2940 = vst [vmem:[#allocation2 + $0x388] sm:$0xff] %v2812_v2  ;;  %v2557_v14 = vmax.f32 %v1990_v48, %v1992_v24  ;;  %3008 = vst [vmem:[#allocation2 + $0x210] sm:$0xff] %v2880_v23  ;;  %v2625_v61 = vmax.f32 %v2330_v28, %v2332_v15  ;;  %v2691_v2 = vld [vmem:[#allocation2 + $0x3e8] sm:$0xff]  ;;  %v2759_v24 = vld [vmem:[#allocation2 + $0x58] sm:$0xff] }
 0x47d   : > { %v1994_v45 = vpop.f32.mrf.mxu0  ;;  %v2334_v29 = vpop.f32.mrf.mxu1 }
 0x47e   : > { %v2813_v25 = vmax.f32 %v2685_v8, %v2557_v14  ;;  %v2881_v22 = vmax.f32 %v2753_v19, %v2625_v61 }
 0x47f   : > { %v1996_v26 = vpop.f32.mrf.mxu0  ;;  %v2336_v59 = vpop.f32.mrf.mxu1 }
 0x480   : > { %2941 = vst [vmem:[#allocation2 + $0x338] sm:$0xff] %v2813_v25  ;;  %v2558_v43 = vmax.f32 %v1994_v45, %v1996_v26  ;;  %3009 = vst [vmem:[#allocation2 + $0x3d8] sm:$0xff] %v2881_v22  ;;  %v2626_v49 = vmax.f32 %v2334_v29, %v2336_v59  ;;  %v2692_v25 = vld [vmem:[#allocation2 + $0x2f8] sm:$0xff]  ;;  %v2760_v26 = vld [vmem:[#allocation2 + $0x120] sm:$0xff] }
 0x481   : > { %v2000_v62 = vpop.f32.mrf.mxu0  ;;  %v2340_v40 = vpop.f32.mrf.mxu1 }
 0x482   : > { %v2814_v42 = vmax.f32 %v2686_v52, %v2558_v43  ;;  %v2882_v50 = vmax.f32 %v2754_v44, %v2626_v49 }
 0x483   : > { %v2002_v60 = vpop.f32.mrf.mxu0  ;;  %v2342_v63 = vpop.f32.mrf.mxu1 }
 0x484   : > { %2942 = vst [vmem:[#allocation2 + $0x340] sm:$0xff] %v2814_v42  ;;  %v2559_v41 = vmax.f32 %v2000_v62, %v2002_v60  ;;  %3010 = vst [vmem:[#allocation2 + $0x1e8] sm:$0xff] %v2882_v50  ;;  %v2627_v36 = vmax.f32 %v2340_v40, %v2342_v63  ;;  %v2693_v42 = vld [vmem:[#allocation2 + $0x290] sm:$0xff]  ;;  %v2761_v60 = vld [vmem:[#allocation2 + $0x198] sm:$0xff] }
 0x485   : > { %v2004_v46 = vpop.f32.mrf.mxu0  ;;  %v2344_v53 = vpop.f32.mrf.mxu1 }
 0x486   : > { %v2815_v47 = vmax.f32 %v2687_v38, %v2559_v41  ;;  %v2883_v54 = vmax.f32 %v2755_v39, %v2627_v36 }
 0x487   : > { %v2006_v55 = vpop.f32.mrf.mxu0  ;;  %v2346_v27 = vpop.f32.mrf.mxu1 }
 0x488   : > { %2943 = vst [vmem:[#allocation2 + $0x80] sm:$0xff] %v2815_v47  ;;  %v2560_v35 = vmax.f32 %v2004_v46, %v2006_v55  ;;  %3011 = vst [vmem:[#allocation2 + $0x1b0] sm:$0xff] %v2883_v54  ;;  %v2628_v33 = vmax.f32 %v2344_v53, %v2346_v27  ;;  %v2694_v47 = vld [vmem:[#allocation2 + $0x28] sm:$0xff] }
 0x489   : > { %v2010_v56 = vpop.f32.mrf.mxu0  ;;  %v2350_v58 = vpop.f32.mrf.mxu1  ;;  %v2762_v55 = vld [vmem:[#allocation2 + $0x2e8] sm:$0xff] }
 0x48a   : > { %v2816_v0 = vmax.f32 %v2688_v37, %v2560_v35  ;;  %v2884_v34 = vmax.f32 %v2756_v1, %v2628_v33 }
 0x48b   : > { %v2012_v31 = vpop.f32.mrf.mxu0  ;;  %v2352_v4 = vpop.f32.mrf.mxu1 }
 0x48c   : > { %2944 = vst [vmem:[#allocation2 + $0x1a8] sm:$0xff] %v2816_v0  ;;  %v2561_v57 = vmax.f32 %v2010_v56, %v2012_v31  ;;  %3012 = vst [vmem:[#allocation2 + $0x1c8] sm:$0xff] %v2884_v34  ;;  %v2629_v11 = vmax.f32 %v2350_v58, %v2352_v4  ;;  %v2695_v0 = vld [vmem:[#allocation2 + $0x138] sm:$0xff] }
 0x48d   : > { %v2014_v18 = vpop.f32.mrf.mxu0  ;;  %v2354_v5 = vpop.f32.mrf.mxu1  ;;  %v2763_v31 = vld [vmem:[#allocation2 + $0x1f8] sm:$0xff] }
 0x48e   : > { %v2817_v3 = vmax.f32 %v2689_v13, %v2561_v57  ;;  %v2885_v17 = vmax.f32 %v2757_v32, %v2629_v11 }
 0x48f   : > { %v2016_v30 = vpop.f32.mrf.mxu0  ;;  %v2356_v10 = vpop.f32.mrf.mxu1 }
 0x490   : > { %2945 = vst [vmem:[#allocation2 + $0x1b8] sm:$0xff] %v2817_v3  ;;  %v2562_v20 = vmax.f32 %v2014_v18, %v2016_v30  ;;  %3013 = vst [vmem:[#allocation2 + $0x2d0] sm:$0xff] %v2885_v17  ;;  %v2630_v12 = vmax.f32 %v2354_v5, %v2356_v10  ;;  %v2696_v3 = vld [vmem:[#allocation2 + $0xc0] sm:$0xff]  ;;  %v2764_v30 = vld [vmem:[#allocation2 + $0x238] sm:$0xff] }
 0x491   : > { %v2020_v9 = vpop.f32.mrf.mxu0  ;;  %v2360_v6 = vpop.f32.mrf.mxu1 }
 0x492   : > { %v2818_v21 = vmax.f32 %v2690_v7, %v2562_v20  ;;  %v2886_v48 = vmax.f32 %v2758_v16, %v2630_v12 }
 0x493   : > { %v2022_v28 = vpop.f32.mrf.mxu0  ;;  %v2362_v23 = vpop.f32.mrf.mxu1 }
 0x494   : > { %2946 = vst [vmem:[#allocation2 + $0x168] sm:$0xff] %v2818_v21  ;;  %v2563_v8 = vmax.f32 %v2020_v9, %v2022_v28  ;;  %3014 = vst [vmem:[#allocation2 + $0x1d0] sm:$0xff] %v2886_v48  ;;  %v2631_v15 = vmax.f32 %v2360_v6, %v2362_v23  ;;  %v2697_v21 = vld [vmem:[#allocation2 + $0x1c0] sm:$0xff]  ;;  %v2765_v28 = vld [vmem:[#allocation2 + $0x398] sm:$0xff] }
 0x495   : > { %v2024_v19 = vpop.f32.mrf.mxu0  ;;  %v2364_v14 = vpop.f32.mrf.mxu1 }
 0x496   : > { %v2819_v61 = vmax.f32 %v2691_v2, %v2563_v8  ;;  %v2887_v45 = vmax.f32 %v2759_v24, %v2631_v15 }
 0x497   : > { %v2026_v29 = vpop.f32.mrf.mxu0  ;;  %v2366_v22 = vpop.f32.mrf.mxu1 }
 0x498   : > { %2947 = vst [vmem:[#allocation2 + $0x3e8] sm:$0xff] %v2819_v61  ;;  %v2564_v52 = vmax.f32 %v2024_v19, %v2026_v29  ;;  %3015 = vst [vmem:[#allocation2 + $0x58] sm:$0xff] %v2887_v45  ;;  %v2632_v59 = vmax.f32 %v2364_v14, %v2366_v22  ;;  %v2698_v61 = vld [vmem:[#allocation2 + $0x280] sm:$0xff]  ;;  %v2766_v29 = vld [vmem:[#allocation2 + $0x390] sm:$0xff] }
 0x499   : > { %v2030_v44 = vpop.f32.mrf.mxu0  ;;  %v2370_v43 = vpop.f32.mrf.mxu1 }
 0x49a   : > { %v2820_v49 = vmax.f32 %v2692_v25, %v2564_v52  ;;  %v2888_v62 = vmax.f32 %v2760_v26, %v2632_v59 }
 0x49b   : > { %v2032_v40 = vpop.f32.mrf.mxu0  ;;  %v2372_v50 = vpop.f32.mrf.mxu1 }
 0x49c   : > { %2948 = vst [vmem:[#allocation2 + $0x2f8] sm:$0xff] %v2820_v49  ;;  %v2565_v38 = vmax.f32 %v2030_v44, %v2032_v40  ;;  %3016 = vst [vmem:[#allocation2 + $0x120] sm:$0xff] %v2888_v62  ;;  %v2633_v63 = vmax.f32 %v2370_v43, %v2372_v50  ;;  %v2699_v49 = vld [vmem:[#allocation2 + $0x100] sm:$0xff] }
 0x49d   : > { %v2034_v39 = vpop.f32.mrf.mxu0  ;;  %v2374_v41 = vpop.f32.mrf.mxu1  ;;  %v2767_v40 = vld [vmem:[#allocation2 + $0x1a0] sm:$0xff] }
 0x49e   : > { %v2821_v36 = vmax.f32 %v2693_v42, %v2565_v38  ;;  %v2889_v46 = vmax.f32 %v2761_v60, %v2633_v63 }
 0x49f   : > { %v2036_v53 = vpop.f32.mrf.mxu0  ;;  %v2376_v54 = vpop.f32.mrf.mxu1 }
 0x4a0   : > { %2949 = vst [vmem:[#allocation2 + $0x290] sm:$0xff] %v2821_v36  ;;  %v2566_v37 = vmax.f32 %v2034_v39, %v2036_v53  ;;  %3017 = vst [vmem:[#allocation2 + $0x198] sm:$0xff] %v2889_v46  ;;  %v2634_v27 = vmax.f32 %v2374_v41, %v2376_v54  ;;  %v2700_v36 = vld [vmem:[#allocation2 + $0x3c0] sm:$0xff]  ;;  %v2768_v53 = vld [vmem:[#allocation2 + $0xa8] sm:$0xff] }
 0x4a1   : > { %v2040_v1 = vpop.f32.mrf.mxu0  ;;  %v2380_v35 = vpop.f32.mrf.mxu1 }
 0x4a2   : > { %v2822_v33 = vmax.f32 %v2694_v47, %v2566_v37  ;;  %v2890_v56 = vmax.f32 %v2762_v55, %v2634_v27 }
 0x4a3   : > { %v2042_v58 = vpop.f32.mrf.mxu0  ;;  %v2382_v34 = vpop.f32.mrf.mxu1 }
 0x4a4   : > { %2950 = vst [vmem:[#allocation2 + $0x28] sm:$0xff] %v2822_v33  ;;  %v2567_v13 = vmax.f32 %v2040_v1, %v2042_v58  ;;  %3018 = vst [vmem:[#allocation2 + $0x2e8] sm:$0xff] %v2890_v56  ;;  %v2635_v4 = vmax.f32 %v2380_v35, %v2382_v34  ;;  %v2701_v33 = vld [vmem:[#allocation2 + $0x158] sm:$0xff] }
 0x4a5   : > { %v2044_v32 = vpop.f32.mrf.mxu0  ;;  %v2384_v57 = vpop.f32.mrf.mxu1  ;;  %v2769_v58 = vld [vmem:[#allocation2 + $0x258] sm:$0xff] }
 0x4a6   : > { %v2823_v11 = vmax.f32 %v2695_v0, %v2567_v13  ;;  %v2891_v18 = vmax.f32 %v2763_v31, %v2635_v4 }
 0x4a7   : > { %v2046_v5 = vpop.f32.mrf.mxu0  ;;  %v2386_v17 = vpop.f32.mrf.mxu1 }
 0x4a8   : > { %2951 = vst [vmem:[#allocation2 + $0x138] sm:$0xff] %v2823_v11  ;;  %v2568_v7 = vmax.f32 %v2044_v32, %v2046_v5  ;;  %3019 = vst [vmem:[#allocation2 + $0x1f8] sm:$0xff] %v2891_v18  ;;  %v2636_v10 = vmax.f32 %v2384_v57, %v2386_v17  ;;  %v2702_v11 = vld [vmem:[#allocation2 + $0x3e0] sm:$0xff]  ;;  %v2770_v5 = vld [vmem:[#allocation2 + $0x2d8] sm:$0xff] }
 0x4a9   : > { %v2050_v16 = vpop.f32.mrf.mxu0  ;;  %v2390_v20 = vpop.f32.mrf.mxu1 }
 0x4aa   : > { %v2824_v12 = vmax.f32 %v2696_v3, %v2568_v7  ;;  %v2892_v9 = vmax.f32 %v2764_v30, %v2636_v10 }
 0x4ab   : > { %v2052_v6 = vpop.f32.mrf.mxu0  ;;  %v2392_v48 = vpop.f32.mrf.mxu1 }
 0x4ac   : > { %2952 = vst [vmem:[#allocation2 + $0xc0] sm:$0xff] %v2824_v12  ;;  %v2569_v2 = vmax.f32 %v2050_v16, %v2052_v6  ;;  %3020 = vst [vmem:[#allocation2 + $0x238] sm:$0xff] %v2892_v9  ;;  %v2637_v23 = vmax.f32 %v2390_v20, %v2392_v48  ;;  %v2703_v12 = vld [vmem:[#allocation2 + $0x218] sm:$0xff]  ;;  %v2771_v6 = vld [vmem:[#allocation2 + $0xf0] sm:$0xff] }
 0x4ad   : > { %v2054_v24 = vpop.f32.mrf.mxu0  ;;  %v2394_v8 = vpop.f32.mrf.mxu1 }
 0x4ae   : > { %v2825_v15 = vmax.f32 %v2697_v21, %v2569_v2  ;;  %v2893_v19 = vmax.f32 %v2765_v28, %v2637_v23 }
 0x4af   : > { %v2056_v14 = vpop.f32.mrf.mxu0  ;;  %v2396_v45 = vpop.f32.mrf.mxu1 }
 0x4b0   : > { %2953 = vst [vmem:[#allocation2 + $0x1c0] sm:$0xff] %v2825_v15  ;;  %v2570_v25 = vmax.f32 %v2054_v24, %v2056_v14  ;;  %3021 = vst [vmem:[#allocation2 + $0x398] sm:$0xff] %v2893_v19  ;;  %v2638_v22 = vmax.f32 %v2394_v8, %v2396_v45  ;;  %v2704_v15 = vld [vmem:[#allocation2 + $0x3f8] sm:$0xff]  ;;  %v2772_v14 = vld [vmem:[#allocation2 + $0x180] sm:$0xff] }
 0x4b1   : > { %v2060_v26 = vpop.f32.mrf.mxu0  ;;  %v2400_v52 = vpop.f32.mrf.mxu1 }
 0x4b2   : > { %v2826_v59 = vmax.f32 %v2698_v61, %v2570_v25  ;;  %v2894_v44 = vmax.f32 %v2766_v29, %v2638_v22 }
 0x4b3   : > { %v2062_v43 = vpop.f32.mrf.mxu0  ;;  %v2402_v62 = vpop.f32.mrf.mxu1 }
 0x4b4   : > { %2954 = vst [vmem:[#allocation2 + $0x280] sm:$0xff] %v2826_v59  ;;  %v2571_v42 = vmax.f32 %v2060_v26, %v2062_v43  ;;  %3022 = vst [vmem:[#allocation2 + $0x390] sm:$0xff] %v2894_v44  ;;  %v2639_v50 = vmax.f32 %v2400_v52, %v2402_v62  ;;  %v2705_v59 = vld [vmem:[#allocation2 + $0x8] sm:$0xff]  ;;  %v2773_v43 = vld [vmem:[#allocation2 + $0x170] sm:$0xff] }
 0x4b5   : > { %v2064_v60 = vpop.f32.mrf.mxu0  ;;  %v2404_v38 = vpop.f32.mrf.mxu1 }
 0x4b6   : > { %v2827_v63 = vmax.f32 %v2699_v49, %v2571_v42  ;;  %v2895_v39 = vmax.f32 %v2767_v40, %v2639_v50 }
 0x4b7   : > { %v2066_v41 = vpop.f32.mrf.mxu0  ;;  %v2406_v46 = vpop.f32.mrf.mxu1 }
 0x4b8   : > { %2955 = vst [vmem:[#allocation2 + $0x100] sm:$0xff] %v2827_v63  ;;  %v2572_v47 = vmax.f32 %v2064_v60, %v2066_v41  ;;  %3023 = vst [vmem:[#allocation2 + $0x1a0] sm:$0xff] %v2895_v39  ;;  %v2640_v54 = vmax.f32 %v2404_v38, %v2406_v46  ;;  %v2706_v63 = vld [vmem:[#allocation2 + $0x128] sm:$0xff]  ;;  %v2774_v41 = vld [vmem:[#allocation2 + $0x3d0] sm:$0xff] }
 0x4b9   : > { %v2070_v55 = vpop.f32.mrf.mxu0  ;;  %v2410_v37 = vpop.f32.mrf.mxu1 }
 0x4ba   : > { %v2828_v27 = vmax.f32 %v2700_v36, %v2572_v47  ;;  %v2896_v1 = vmax.f32 %v2768_v53, %v2640_v54 }
 0x4bb   : > { %v2072_v35 = vpop.f32.mrf.mxu0  ;;  %v2412_v56 = vpop.f32.mrf.mxu1 }
 0x4bc   : > { %2956 = vst [vmem:[#allocation2 + $0x3c0] sm:$0xff] %v2828_v27  ;;  %v2573_v0 = vmax.f32 %v2070_v55, %v2072_v35  ;;  %3024 = vst [vmem:[#allocation2 + $0xa8] sm:$0xff] %v2896_v1  ;;  %v2641_v34 = vmax.f32 %v2410_v37, %v2412_v56  ;;  %v2707_v27 = vld [vmem:[#allocation2 + $0x2a0] sm:$0xff]  ;;  %v2775_v35 = vld [vmem:[#allocation2 + $0x250] sm:$0xff] }
 0x4bd   : > { %v2074_v31 = vpop.f32.mrf.mxu0  ;;  %v2414_v13 = vpop.f32.mrf.mxu1 }
 0x4be   : > { %v2829_v4 = vmax.f32 %v2701_v33, %v2573_v0  ;;  %v2897_v32 = vmax.f32 %v2769_v58, %v2641_v34 }
 0x4bf   : > { %v2076_v57 = vpop.f32.mrf.mxu0  ;;  %v2416_v18 = vpop.f32.mrf.mxu1 }
 0x4c0   : > { %2957 = vst [vmem:[#allocation2 + $0x158] sm:$0xff] %v2829_v4  ;;  %v2574_v3 = vmax.f32 %v2074_v31, %v2076_v57  ;;  %3025 = vst [vmem:[#allocation2 + $0x258] sm:$0xff] %v2897_v32  ;;  %v2642_v17 = vmax.f32 %v2414_v13, %v2416_v18  ;;  %v2708_v4 = vld [vmem:[#allocation2 + $0x3f0] sm:$0xff]  ;;  %v2776_v57 = vld [vmem:[#allocation2 + $0x378] sm:$0xff] }
 0x4c1   : > { %v2080_v30 = vpop.f32.mrf.mxu0  ;;  %v2420_v7 = vpop.f32.mrf.mxu1 }
 0x4c2   : > { %v2830_v10 = vmax.f32 %v2702_v11, %v2574_v3  ;;  %v2898_v16 = vmax.f32 %v2770_v5, %v2642_v17 }
 0x4c3   : > { %v2082_v20 = vpop.f32.mrf.mxu0  ;;  %v2422_v9 = vpop.f32.mrf.mxu1 }
 0x4c4   : > { %2958 = vst [vmem:[#allocation2 + $0x3e0] sm:$0xff] %v2830_v10  ;;  %v2575_v21 = vmax.f32 %v2080_v30, %v2082_v20  ;;  %3026 = vst [vmem:[#allocation2 + $0x2d8] sm:$0xff] %v2898_v16  ;;  %v2643_v48 = vmax.f32 %v2420_v7, %v2422_v9  ;;  %v2709_v10 = vld [vmem:[#allocation2 + $0xa0] sm:$0xff]  ;;  %v2777_v20 = vld [vmem:[#allocation2 + $0xb8] sm:$0xff] }
 0x4c5   : > { %v2084_v28 = vpop.f32.mrf.mxu0  ;;  %v2424_v2 = vpop.f32.mrf.mxu1 }
 0x4c6   : > { %v2831_v23 = vmax.f32 %v2703_v12, %v2575_v21  ;;  %v2899_v24 = vmax.f32 %v2771_v6, %v2643_v48 }
 0x4c7   : > { %v2086_v8 = vpop.f32.mrf.mxu0  ;;  %v2426_v19 = vpop.f32.mrf.mxu1 }
 0x4c8   : > { %2959 = vst [vmem:[#allocation2 + $0x218] sm:$0xff] %v2831_v23  ;;  %v2576_v61 = vmax.f32 %v2084_v28, %v2086_v8  ;;  %3027 = vst [vmem:[#allocation2 + $0xf0] sm:$0xff] %v2899_v24  ;;  %v2644_v45 = vmax.f32 %v2424_v2, %v2426_v19  ;;  %v2710_v23 = vld [vmem:[#allocation2 + $0x2c0] sm:$0xff]  ;;  %v2778_v8 = vld [vmem:[#allocation2 + $0x38] sm:$0xff] }
 0x4c9   : > { %v2090_v29 = vpop.f32.mrf.mxu0  ;;  %v2430_v25 = vpop.f32.mrf.mxu1 }
 0x4ca   : > { %v2832_v22 = vmax.f32 %v2704_v15, %v2576_v61  ;;  %v2900_v26 = vmax.f32 %v2772_v14, %v2644_v45 }
 0x4cb   : > { %v2092_v52 = vpop.f32.mrf.mxu0  ;;  %v2432_v44 = vpop.f32.mrf.mxu1 }
 0x4cc   : > { %2960 = vst [vmem:[#allocation2 + $0x3f8] sm:$0xff] %v2832_v22  ;;  %v2577_v49 = vmax.f32 %v2090_v29, %v2092_v52  ;;  %3028 = vst [vmem:[#allocation2 + $0x180] sm:$0xff] %v2900_v26  ;;  %v2645_v62 = vmax.f32 %v2430_v25, %v2432_v44  ;;  %v2711_v22 = vld [vmem:[#allocation2 + $0xb0] sm:$0xff]  ;;  %v2779_v52 = vld [vmem:[#allocation2 + $0x78] sm:$0xff] }
 0x4cd   : > { %v2094_v40 = vpop.f32.mrf.mxu0  ;;  %v2434_v42 = vpop.f32.mrf.mxu1 }
 0x4ce   : > { %v2833_v50 = vmax.f32 %v2705_v59, %v2577_v49  ;;  %v2901_v60 = vmax.f32 %v2773_v43, %v2645_v62 }
 0x4cf   : > { %v2096_v38 = vpop.f32.mrf.mxu0  ;;  %v2436_v39 = vpop.f32.mrf.mxu1 }
 0x4d0   : > { %2961 = vst [vmem:[#allocation2 + $0x8] sm:$0xff] %v2833_v50  ;;  %v2578_v36 = vmax.f32 %v2094_v40, %v2096_v38  ;;  %3029 = vst [vmem:[#allocation2 + $0x170] sm:$0xff] %v2901_v60  ;;  %v2646_v46 = vmax.f32 %v2434_v42, %v2436_v39  ;;  %v2712_v50 = vld [vmem:[#allocation2 + $0x1e0] sm:$0xff]  ;;  %v2780_v38 = vld [vmem:[#allocation2 + $0x308] sm:$0xff] }
 0x4d1   : > { %v2100_v53 = vpop.f32.mrf.mxu0  ;;  %v2440_v47 = vpop.f32.mrf.mxu1 }
 0x4d2   : > { %v2834_v54 = vmax.f32 %v2706_v63, %v2578_v36  ;;  %v2902_v55 = vmax.f32 %v2774_v41, %v2646_v46 }
 0x4d3   : > { %v2102_v37 = vpop.f32.mrf.mxu0  ;;  %v2442_v1 = vpop.f32.mrf.mxu1 }
 0x4d4   : > { %2962 = vst [vmem:[#allocation2 + $0x128] sm:$0xff] %v2834_v54  ;;  %v2579_v33 = vmax.f32 %v2100_v53, %v2102_v37  ;;  %3030 = vst [vmem:[#allocation2 + $0x3d0] sm:$0xff] %v2902_v55  ;;  %v2647_v56 = vmax.f32 %v2440_v47, %v2442_v1  ;;  %v2713_v54 = vld [vmem:[#allocation2 + $0x1f0] sm:$0xff] }
 0x4d5   : > { %v2104_v58 = vpop.f32.mrf.mxu0  ;;  %v2444_v0 = vpop.f32.mrf.mxu1  ;;  %v2781_v37 = vld [vmem:[#allocation2 + $0x370] sm:$0xff] }
 0x4d6   : > { %v2835_v34 = vmax.f32 %v2707_v27, %v2579_v33  ;;  %v2903_v31 = vmax.f32 %v2775_v35, %v2647_v56 }
 0x4d7   : > { %v2106_v13 = vpop.f32.mrf.mxu0  ;;  %v2446_v32 = vpop.f32.mrf.mxu1 }
 0x4d8   : > { %2963 = vst [vmem:[#allocation2 + $0x2a0] sm:$0xff] %v2835_v34  ;;  %v2580_v11 = vmax.f32 %v2104_v58, %v2106_v13  ;;  %3031 = vst [vmem:[#allocation2 + $0x250] sm:$0xff] %v2903_v31  ;;  %v2648_v18 = vmax.f32 %v2444_v0, %v2446_v32  ;;  %v2714_v34 = vld [vmem:[#allocation2 + $0x10] sm:$0xff]  ;;  %v2782_v13 = vld [vmem:[#allocation2 + $0xc8] sm:$0xff] }
 0x4d9   : > { %v2110_v5 = vpop.f32.mrf.mxu0  ;;  %v2450_v3 = vpop.f32.mrf.mxu1 }
 0x4da   : > { %v2836_v17 = vmax.f32 %v2708_v4, %v2580_v11  ;;  %v2904_v30 = vmax.f32 %v2776_v57, %v2648_v18 }
 0x4db   : > { %v2112_v7 = vpop.f32.mrf.mxu0  ;;  %v2452_v16 = vpop.f32.mrf.mxu1 }
 0x4dc   : > { %2964 = vst [vmem:[#allocation2 + $0x3f0] sm:$0xff] %v2836_v17  ;;  %v2581_v12 = vmax.f32 %v2110_v5, %v2112_v7  ;;  %3032 = vst [vmem:[#allocation2 + $0x378] sm:$0xff] %v2904_v30  ;;  %v2649_v9 = vmax.f32 %v2450_v3, %v2452_v16  ;;  %v2715_v17 = vld [vmem:[#allocation2 + $0x230] sm:$0xff]  ;;  %v2783_v7 = vld [vmem:[#allocation2 + $0x278] sm:$0xff] }
 0x4dd   : > { %v2114_v6 = vpop.f32.mrf.mxu0  ;;  %v2454_v21 = vpop.f32.mrf.mxu1 }
 0x4de   : > { %v2837_v48 = vmax.f32 %v2709_v10, %v2581_v12  ;;  %v2905_v28 = vmax.f32 %v2777_v20, %v2649_v9 }
 0x4df   : > { %v2116_v2 = vpop.f32.mrf.mxu0  ;;  %v2456_v24 = vpop.f32.mrf.mxu1 }
 0x4e0   : > { %2965 = vst [vmem:[#allocation2 + $0xa0] sm:$0xff] %v2837_v48  ;;  %v2582_v15 = vmax.f32 %v2114_v6, %v2116_v2  ;;  %3033 = vst [vmem:[#allocation2 + $0xb8] sm:$0xff] %v2905_v28  ;;  %v2650_v19 = vmax.f32 %v2454_v21, %v2456_v24  ;;  %v2716_v48 = vld [vmem:[#allocation2 + $0x240] sm:$0xff] }
 0x4e1   : > { %v2120_v14 = vpop.f32.mrf.mxu0  ;;  %v2460_v61 = vpop.f32.mrf.mxu1  ;;  %v2784_v2 = vld [vmem:[#allocation2 + $0x360] sm:$0xff] }
 0x4e2   : > { %v2838_v45 = vmax.f32 %v2710_v23, %v2582_v15  ;;  %v2906_v29 = vmax.f32 %v2778_v8, %v2650_v19 }
 0x4e3   : > { %v2122_v25 = vpop.f32.mrf.mxu0  ;;  %v2462_v26 = vpop.f32.mrf.mxu1 }
 0x4e4   : > { %2966 = vst [vmem:[#allocation2 + $0x2c0] sm:$0xff] %v2838_v45  ;;  %v2583_v59 = vmax.f32 %v2120_v14, %v2122_v25  ;;  %3034 = vst [vmem:[#allocation2 + $0x38] sm:$0xff] %v2906_v29  ;;  %v2651_v44 = vmax.f32 %v2460_v61, %v2462_v26  ;;  %v2717_v45 = vld [vmem:[#allocation2 + $0x90] sm:$0xff]  ;;  %v2785_v25 = vld [vmem:[#allocation2 + $0x228] sm:$0xff] }
 0x4e5   : > { %v2124_v43 = vpop.f32.mrf.mxu0  ;;  %v2464_v49 = vpop.f32.mrf.mxu1 }
 0x4e6   : > { %v2839_v62 = vmax.f32 %v2711_v22, %v2583_v59  ;;  %v2907_v40 = vmax.f32 %v2779_v52, %v2651_v44 }
 0x4e7   : > { %v2126_v42 = vpop.f32.mrf.mxu0  ;;  %v2466_v60 = vpop.f32.mrf.mxu1 }
 0x4e8   : > { %2967 = vst [vmem:[#allocation2 + $0xb0] sm:$0xff] %v2839_v62  ;;  %v2584_v63 = vmax.f32 %v2124_v43, %v2126_v42  ;;  %3035 = vst [vmem:[#allocation2 + $0x78] sm:$0xff] %v2907_v40  ;;  %v2652_v39 = vmax.f32 %v2464_v49, %v2466_v60  ;;  %v2718_v62 = vld [vmem:[#allocation2 + $0x3a0] sm:$0xff]  ;;  %v2786_v42 = vld [vmem:[#allocation2 + $0x348] sm:$0xff] }
 0x4e9   : > { %v2130_v41 = vpop.f32.mrf.mxu0  ;;  %v2470_v36 = vpop.f32.mrf.mxu1 }
 0x4ea   : > { %v2840_v46 = vmax.f32 %v2712_v50, %v2584_v63  ;;  %v2908_v53 = vmax.f32 %v2780_v38, %v2652_v39 }
 0x4eb   : > { %v2132_v47 = vpop.f32.mrf.mxu0  ;;  %v2472_v55 = vpop.f32.mrf.mxu1 }
 0x4ec   : > { %2968 = vst [vmem:[#allocation2 + $0x1e0] sm:$0xff] %v2840_v46  ;;  %v2585_v27 = vmax.f32 %v2130_v41, %v2132_v47  ;;  %3036 = vst [vmem:[#allocation2 + $0x308] sm:$0xff] %v2908_v53  ;;  %v2653_v1 = vmax.f32 %v2470_v36, %v2472_v55  ;;  %v2719_v46 = vld [vmem:[#allocation2 + $0x208] sm:$0xff] }
 0x4ed   : > { %v2134_v35 = vpop.f32.mrf.mxu0  ;;  %v2474_v33 = vpop.f32.mrf.mxu1  ;;  %v2787_v47 = vld [vmem:[#allocation2 + $0x148] sm:$0xff] }
 0x4ee   : > { %v2841_v56 = vmax.f32 %v2713_v54, %v2585_v27  ;;  %v2909_v58 = vmax.f32 %v2781_v37, %v2653_v1 }
 0x4ef   : > { %v2136_v0 = vpop.f32.mrf.mxu0  ;;  %v2476_v31 = vpop.f32.mrf.mxu1 }
 0x4f0   : > { %2969 = vst [vmem:[#allocation2 + $0x1f0] sm:$0xff] %v2841_v56  ;;  %v2586_v4 = vmax.f32 %v2134_v35, %v2136_v0  ;;  %3037 = vst [vmem:[#allocation2 + $0x370] sm:$0xff] %v2909_v58  ;;  %v2654_v32 = vmax.f32 %v2474_v33, %v2476_v31  ;;  %v2720_v56 = vld [vmem:[#allocation2 + $0xd0] sm:$0xff]  ;;  %v2788_v0 = vld [vmem:[#allocation2 + $0xf8] sm:$0xff] }
 0x4f1   : > { %v2140_v57 = vpop.f32.mrf.mxu0  ;;  %v2480_v11 = vpop.f32.mrf.mxu1 }
 0x4f2   : > { %v2842_v18 = vmax.f32 %v2714_v34, %v2586_v4  ;;  %v2910_v5 = vmax.f32 %v2782_v13, %v2654_v32 }
 0x4f3   : > { %v2142_v3 = vpop.f32.mrf.mxu0  ;;  %v2482_v30 = vpop.f32.mrf.mxu1 }
 0x4f4   : > { %2970 = vst [vmem:[#allocation2 + $0x10] sm:$0xff] %v2842_v18  ;;  %v2587_v10 = vmax.f32 %v2140_v57, %v2142_v3  ;;  %3038 = vst [vmem:[#allocation2 + $0xc8] sm:$0xff] %v2910_v5  ;;  %v2655_v16 = vmax.f32 %v2480_v11, %v2482_v30  ;;  %v2721_v18 = vld [vmem:[#allocation2 + $0x88] sm:$0xff] }
 0x4f5   : > { %v2144_v20 = vpop.f32.mrf.mxu0  ;;  %v2484_v12 = vpop.f32.mrf.mxu1  ;;  %v2789_v3 = vld [vmem:[#allocation2 + $0x68] sm:$0xff] }
 0x4f6   : > { %v2843_v9 = vmax.f32 %v2715_v17, %v2587_v10  ;;  %v2911_v6 = vmax.f32 %v2783_v7, %v2655_v16 }
 0x4f7   : > { %v2146_v21 = vpop.f32.mrf.mxu0  ;;  %v2486_v28 = vpop.f32.mrf.mxu1 }
 0x4f8   : > { %2971 = vst [vmem:[#allocation2 + $0x230] sm:$0xff] %v2843_v9  ;;  %v2588_v23 = vmax.f32 %v2144_v20, %v2146_v21  ;;  %3039 = vst [vmem:[#allocation2 + $0x278] sm:$0xff] %v2911_v6  ;;  %v2656_v24 = vmax.f32 %v2484_v12, %v2486_v28  ;;  %v2722_v9 = vld [vmem:[#allocation2 + $0x2f0] sm:$0xff]  ;;  %v2790_v21 = vld [vmem:[#allocation2] sm:$0xff] }
 0x4f9   : > { %v2150_v8 = vpop.f32.mrf.mxu0  ;;  %v2490_v15 = vpop.f32.mrf.mxu1 }
 0x4fa   : > { %v2844_v19 = vmax.f32 %v2716_v48, %v2588_v23  ;;  %v2912_v14 = vmax.f32 %v2784_v2, %v2656_v24 }
 0x4fb   : > { %v2152_v61 = vpop.f32.mrf.mxu0  ;;  %v2492_v29 = vpop.f32.mrf.mxu1 }
 0x4fc   : > { %2972 = vst [vmem:[#allocation2 + $0x240] sm:$0xff] %v2844_v19  ;;  %v2589_v22 = vmax.f32 %v2150_v8, %v2152_v61  ;;  %3040 = vst [vmem:[#allocation2 + $0x360] sm:$0xff] %v2912_v14  ;;  %v2657_v26 = vmax.f32 %v2490_v15, %v2492_v29  ;;  %v2723_v19 = vld [vmem:[#allocation2 + $0x358] sm:$0xff] }
 0x4fd   : > { %v2154_v52 = vpop.f32.mrf.mxu0  ;;  %v2494_v59 = vpop.f32.mrf.mxu1  ;;  %v2791_v61 = vld [vmem:[#allocation2 + $0x298] sm:$0xff] }
 0x4fe   : > { %v2845_v44 = vmax.f32 %v2717_v45, %v2589_v22  ;;  %v2913_v43 = vmax.f32 %v2785_v25, %v2657_v26 }
 0x4ff   : > { %v2156_v49 = vpop.f32.mrf.mxu0  ;;  %v2496_v40 = vpop.f32.mrf.mxu1 }
 0x500   : > { %2973 = vst [vmem:[#allocation2 + $0x90] sm:$0xff] %v2845_v44  ;;  %v2590_v50 = vmax.f32 %v2154_v52, %v2156_v49  ;;  %3041 = vst [vmem:[#allocation2 + $0x228] sm:$0xff] %v2913_v43  ;;  %v2658_v60 = vmax.f32 %v2494_v59, %v2496_v40  ;;  %v2724_v44 = vld [vmem:[#allocation2 + $0x268] sm:$0xff]  ;;  %v2792_v49 = vld [vmem:[#allocation2 + $0x270] sm:$0xff] }
 0x501   : > { %v2160_v38 = vpop.f32.mrf.mxu0  ;;  %v2500_v63 = vpop.f32.mrf.mxu1 }
 0x502   : > { %v2846_v39 = vmax.f32 %v2718_v62, %v2590_v50  ;;  %v2914_v41 = vmax.f32 %v2786_v42, %v2658_v60 }
 0x503   : > { %v2162_v36 = vpop.f32.mrf.mxu0  ;;  %v2502_v53 = vpop.f32.mrf.mxu1 }
 0x504   : > { %2974 = vst [vmem:[#allocation2 + $0x3a0] sm:$0xff] %v2846_v39  ;;  %v2591_v54 = vmax.f32 %v2160_v38, %v2162_v36  ;;  %3042 = vst [vmem:[#allocation2 + $0x348] sm:$0xff] %v2914_v41  ;;  %v2659_v55 = vmax.f32 %v2500_v63, %v2502_v53  ;;  %v2725_v39 = vld [vmem:[#allocation2 + $0x350] sm:$0xff] }
 0x505   : > { %v2164_v37 = vpop.f32.mrf.mxu0  ;;  %v2504_v27 = vpop.f32.mrf.mxu1  ;;  %v2793_v36 = vld [vmem:[#allocation2 + $0x310] sm:$0xff] }
 0x506   : > { %v2847_v1 = vmax.f32 %v2719_v46, %v2591_v54  ;;  %v2915_v35 = vmax.f32 %v2787_v47, %v2659_v55 }
 0x507   : > { %v2166_v33 = vpop.f32.mrf.mxu0  ;;  %v2506_v58 = vpop.f32.mrf.mxu1 }
 0x508   : > { %2975 = vst [vmem:[#allocation2 + $0x208] sm:$0xff] %v2847_v1  ;;  %v2592_v34 = vmax.f32 %v2164_v37, %v2166_v33  ;;  %3043 = vst [vmem:[#allocation2 + $0x148] sm:$0xff] %v2915_v35  ;;  %v2660_v31 = vmax.f32 %v2504_v27, %v2506_v58  ;;  %v2726_v1 = vld [vmem:[#allocation2 + $0x188] sm:$0xff]  ;;  %v2794_v33 = vld [vmem:[#allocation2 + $0x190] sm:$0xff] }
 0x509   : > { %v2170_v13 = vpop.f32.mrf.mxu0  ;;  %v2510_v4 = vpop.f32.mrf.mxu1 }
 0x50a   : > { %v2848_v32 = vmax.f32 %v2720_v56, %v2592_v34  ;;  %v2916_v57 = vmax.f32 %v2788_v0, %v2660_v31 }
 0x50b   : > { %v2172_v11 = vpop.f32.mrf.mxu0  ;;  %v2512_v5 = vpop.f32.mrf.mxu1 }
 0x50c   : > { %2976 = vst [vmem:[#allocation2 + $0xd0] sm:$0xff] %v2848_v32  ;;  %v2593_v17 = vmax.f32 %v2170_v13, %v2172_v11  ;;  %3044 = vst [vmem:[#allocation2 + $0xf8] sm:$0xff] %v2916_v57  ;;  %v2661_v30 = vmax.f32 %v2510_v4, %v2512_v5  ;;  %v2727_v4 = vld [vmem:[#allocation2 + $0x1d8] sm:$0xff]  ;;  %v2728_v5 = vld [vmem:[#allocation2 + $0x30] sm:$0xff] }
 0x50d   : > { %v2174_v7 = vpop.f32.mrf.mxu0  ;;  %v2514_v10 = vpop.f32.mrf.mxu1 }
 0x50e   : > { %v2849_v16 = vmax.f32 %v2721_v18, %v2593_v17  ;;  %v2917_v20 = vmax.f32 %v2789_v3, %v2661_v30 }
 0x50f   : > { %v2176_v12 = vpop.f32.mrf.mxu0  ;;  %v2516_v6 = vpop.f32.mrf.mxu1 }
 0x510   : > { %2977 = vst [vmem:[#allocation2 + $0x88] sm:$0xff] %v2849_v16  ;;  %v2594_v48 = vmax.f32 %v2174_v7, %v2176_v12  ;;  %3045 = vst [vmem:[#allocation2 + $0x68] sm:$0xff] %v2917_v20  ;;  %v2662_v28 = vmax.f32 %v2514_v10, %v2516_v6  ;;  %v2729_v10 = vld [vmem:[#allocation2 + $0x140] sm:$0xff]  ;;  %v2730_v6 = vld [vmem:[#allocation2 + $0x2a8] sm:$0xff] }
 0x511   : > { %v2180_v2 = vpop.f32.mrf.mxu0  ;;  %v2520_v23 = vpop.f32.mrf.mxu1 }
 0x512   : > { %v2850_v24 = vmax.f32 %v2722_v9, %v2594_v48  ;;  %v2918_v8 = vmax.f32 %v2790_v21, %v2662_v28 }
 0x513   : > { %v2182_v15 = vpop.f32.mrf.mxu0  ;;  %v2522_v14 = vpop.f32.mrf.mxu1 }
 0x514   : > { %2978 = vst [vmem:[#allocation2 + $0x2f0] sm:$0xff] %v2850_v24  ;;  %v2595_v45 = vmax.f32 %v2180_v2, %v2182_v15  ;;  %3046 = vst [vmem:[#allocation2] sm:$0xff] %v2918_v8  ;;  %v2663_v29 = vmax.f32 %v2520_v23, %v2522_v14  ;;  %v2731_v23 = vld [vmem:[#allocation2 + $0x130] sm:$0xff]  ;;  %v2732_v14 = vld [vmem:[#allocation2 + $0x200] sm:$0xff] }
 0x515   : > { %v2184_v25 = vpop.f32.mrf.mxu0  ;;  %v2524_v22 = vpop.f32.mrf.mxu1 }
 0x516   : > { %v2851_v26 = vmax.f32 %v2723_v19, %v2595_v45  ;;  %v2919_v52 = vmax.f32 %v2791_v61, %v2663_v29 }
 0x517   : > { %v2186_v59 = vpop.f32.mrf.mxu0  ;;  %v2526_v43 = vpop.f32.mrf.mxu1 }
 0x518   : > { %2979 = vst [vmem:[#allocation2 + $0x358] sm:$0xff] %v2851_v26  ;;  %v2596_v62 = vmax.f32 %v2184_v25, %v2186_v59  ;;  %3047 = vst [vmem:[#allocation2 + $0x298] sm:$0xff] %v2919_v52  ;;  %v2664_v40 = vmax.f32 %v2524_v22, %v2526_v43  ;;  %v2733_v22 = vld [vmem:[#allocation2 + $0x318] sm:$0xff]  ;;  %v2734_v43 = vld [vmem:[#allocation2 + $0x220] sm:$0xff] }
 0x519   : > { %v2190_v42 = vpop.f32.mrf.mxu0  ;;  %v2530_v50 = vpop.f32.mrf.mxu1 }
 0x51a   : > { %v2852_v60 = vmax.f32 %v2724_v44, %v2596_v62  ;;  %v2920_v38 = vmax.f32 %v2792_v49, %v2664_v40 }
 0x51b   : > { %v2192_v63 = vpop.f32.mrf.mxu0  ;;  %v2532_v41 = vpop.f32.mrf.mxu1 }
 0x51c   : > { %2980 = vst [vmem:[#allocation2 + $0x268] sm:$0xff] %v2852_v60  ;;  %v2597_v46 = vmax.f32 %v2190_v42, %v2192_v63  ;;  %3048 = vst [vmem:[#allocation2 + $0x270] sm:$0xff] %v2920_v38  ;;  %v2665_v53 = vmax.f32 %v2530_v50, %v2532_v41 }
 0x51d   : > { %v2194_v47 = vpop.f32.mrf.mxu0  ;;  %v2534_v54 = vpop.f32.mrf.mxu1 }
 0x51e   : > { %v2853_v55 = vmax.f32 %v2725_v39, %v2597_v46  ;;  %v2921_v37 = vmax.f32 %v2793_v36, %v2665_v53 }
 0x51f   : > { %v2196_v27 = vpop.f32.mrf.mxu0  ;;  %v2536_v35 = vpop.f32.mrf.mxu1 }
 0x520   : > { %2981 = vst [vmem:[#allocation2 + $0x350] sm:$0xff] %v2853_v55  ;;  %v2598_v56 = vmax.f32 %v2194_v47, %v2196_v27  ;;  %3049 = vst [vmem:[#allocation2 + $0x310] sm:$0xff] %v2921_v37  ;;  %v2666_v58 = vmax.f32 %v2534_v54, %v2536_v35 }
 0x521   : > { %v2200_v0 = vpop.f32.mrf.mxu0 }
 0x522   : > { %v2854_v34 = vmax.f32 %v2726_v1, %v2598_v56  ;;  %v2922_v31 = vmax.f32 %v2794_v33, %v2666_v58 }
 0x523   : > { %v2202_v13 = vpop.f32.mrf.mxu0 }
 0x524   : > { %2982 = vst [vmem:[#allocation2 + $0x188] sm:$0xff] %v2854_v34  ;;  %v2599_v32 = vmax.f32 %v2200_v0, %v2202_v13  ;;  %3050 = vst [vmem:[#allocation2 + $0x190] sm:$0xff] %v2922_v31 }
 0x525   : > { %v2204_v57 = vpop.f32.mrf.mxu0 }
 0x526   : > { %v2855_v11 = vmax.f32 %v2727_v4, %v2599_v32 }
 0x527   : > { %v2206_v18 = vpop.f32.mrf.mxu0 }
 0x528   : > { %2983 = vst [vmem:[#allocation2 + $0x1d8] sm:$0xff] %v2855_v11  ;;  %v2600_v3 = vmax.f32 %v2204_v57, %v2206_v18 }
 0x529   : > { %v2210_v17 = vpop.f32.mrf.mxu0 }
 0x52a   : > { %v2856_v30 = vmax.f32 %v2728_v5, %v2600_v3 }
 0x52b   : > { %v2212_v7 = vpop.f32.mrf.mxu0 }
 0x52c   : > { %2984 = vst [vmem:[#allocation2 + $0x30] sm:$0xff] %v2856_v30  ;;  %v2601_v16 = vmax.f32 %v2210_v17, %v2212_v7 }
 0x52d   : > { %v2214_v20 = vpop.f32.mrf.mxu0 }
 0x52e   : > { %v2857_v12 = vmax.f32 %v2729_v10, %v2601_v16 }
 0x52f   : > { %v2216_v9 = vpop.f32.mrf.mxu0 }
 0x530   : > { %2985 = vst [vmem:[#allocation2 + $0x140] sm:$0xff] %v2857_v12  ;;  %v2602_v21 = vmax.f32 %v2214_v20, %v2216_v9 }
 0x531   : > { %v2220_v48 = vpop.f32.mrf.mxu0 }
 0x532   : > { %v2858_v28 = vmax.f32 %v2730_v6, %v2602_v21 }
 0x533   : > { %v2222_v2 = vpop.f32.mrf.mxu0 }
 0x534   : > { %2986 = vst [vmem:[#allocation2 + $0x2a8] sm:$0xff] %v2858_v28  ;;  %v2603_v24 = vmax.f32 %v2220_v48, %v2222_v2 }
 0x535   : > { %v2224_v8 = vpop.f32.mrf.mxu0 }
 0x536   : > { %v2859_v15 = vmax.f32 %v2731_v23, %v2603_v24 }
 0x537   : > { %v2226_v19 = vpop.f32.mrf.mxu0 }
 0x538   : > { %2987 = vst [vmem:[#allocation2 + $0x130] sm:$0xff] %v2859_v15  ;;  %v2604_v61 = vmax.f32 %v2224_v8, %v2226_v19 }
 0x539   : > { %v2230_v45 = vpop.f32.mrf.mxu0 }
 0x53a   : > { %v2860_v29 = vmax.f32 %v2732_v14, %v2604_v61 }
 0x53b   : > { %v2232_v25 = vpop.f32.mrf.mxu0 }
 0x53c   : > { %2988 = vst [vmem:[#allocation2 + $0x200] sm:$0xff] %v2860_v29  ;;  %v2605_v26 = vmax.f32 %v2230_v45, %v2232_v25 }
 0x53d   : > { %v2234_v52 = vpop.f32.mrf.mxu0 }
 0x53e   : > { %v2861_v59 = vmax.f32 %v2733_v22, %v2605_v26 }
 0x53f   : > { %v2236_v44 = vpop.f32.mrf.mxu0 }
 0x540   : > { %2989 = vst [vmem:[#allocation2 + $0x318] sm:$0xff] %v2861_v59  ;;  %v2606_v49 = vmax.f32 %v2234_v52, %v2236_v44  ;;  %3054 = sbr.rel (%p3860_p5) target bundleno = 1752 (0x6d8), region = 68 }
 0x542   : > { %v2862_v62 = vmax.f32 %v2734_v43, %v2606_v49 }
 0x544   : > { %2990 = vst [vmem:[#allocation2 + $0x220] sm:$0xff] %v2862_v62 }
 0x545   : > { %v3071_v40 = vld [vmem:[#allocation2 + $0x2e0] sm:$0xff]  ;;  %v3055_v42 = vld [vmem:[#allocation2 + $0x2b0] sm:$0xff]  ;;  %v3072_v50 = vld [vmem:[#allocation2 + $0x388] sm:$0xff] }
 0x546   : > { %3215 = vxpose.xlu1.b32.start [1/16] %v3071_v40, 128  ;;  %3183 = vxpose.xlu0.b32.start [1/16] %v3055_v42, 128  ;;  %v3056_v60 = vld [vmem:[#allocation2 + $0x3b0] sm:$0xff]  ;;  %v3073_v38 = vld [vmem:[#allocation2 + $0x338] sm:$0xff]  ;;  %v3074_v39 = vld [vmem:[#allocation2 + $0x340] sm:$0xff] }
 0x547   : > { %v3057_v63 = vld [vmem:[#allocation2 + $0xd8] sm:$0xff]  ;;  %v3075_v36 = vld [vmem:[#allocation2 + $0x80] sm:$0xff]  ;;  %v3059_v46 = vld [vmem:[#allocation2 + $0x50] sm:$0xff] }
 0x548   : > { %v3058_v41 = vld [vmem:[#allocation2 + $0x18] sm:$0xff]  ;;  %v3076_v53 = vld [vmem:[#allocation2 + $0x1a8] sm:$0xff]  ;;  %v3061_v55 = vld [vmem:[#allocation2 + $0x330] sm:$0xff] }
 0x549   : > { %v3060_v47 = vld [vmem:[#allocation2 + $0x368] sm:$0xff]  ;;  %v3077_v54 = vld [vmem:[#allocation2 + $0x1b8] sm:$0xff]  ;;  %v3063_v35 = vld [vmem:[#allocation2 + $0x380] sm:$0xff] }
 0x54a   : > { %3216 = vxpose.xlu1.b32.cont [2/16] %v3072_v50, 128  ;;  %3184 = vxpose.xlu0.b32.cont [2/16] %v3056_v60, 128  ;;  %v3078_v37 = vld [vmem:[#allocation2 + $0x168] sm:$0xff]  ;;  %v3080_v33 = vld [vmem:[#allocation2 + $0x2f8] sm:$0xff]  ;;  %v3064_v56 = vld [vmem:[#allocation2 + $0x110] sm:$0xff] }
 0x54b   : > { %v3062_v27 = vld [vmem:[#allocation2 + $0x48] sm:$0xff]  ;;  %v3081_v58 = vld [vmem:[#allocation2 + $0x290] sm:$0xff]  ;;  %v3065_v0 = vld [vmem:[#allocation2 + $0x118] sm:$0xff] }
 0x54c   : > { %v3079_v1 = vld [vmem:[#allocation2 + $0x3e8] sm:$0xff]  ;;  %v3066_v31 = vld [vmem:[#allocation2 + $0x98] sm:$0xff]  ;;  %v3067_v4 = vld [vmem:[#allocation2 + $0x320] sm:$0xff] }
 0x54d   : > { %v3082_v34 = vld [vmem:[#allocation2 + $0x28] sm:$0xff]  ;;  %v3083_v13 = vld [vmem:[#allocation2 + $0x138] sm:$0xff]  ;;  %v3084_v32 = vld [vmem:[#allocation2 + $0xc0] sm:$0xff] }
 0x54e   : > { %3217 = vxpose.xlu1.b32.cont [3/16] %v3073_v38, 128  ;;  %3185 = vxpose.xlu0.b32.cont [3/16] %v3057_v63, 128  ;;  %v3068_v57 = vld [vmem:[#allocation2 + $0x150] sm:$0xff]  ;;  %v3085_v11 = vld [vmem:[#allocation2 + $0x1c0] sm:$0xff]  ;;  %v3069_v18 = vld [vmem:[#allocation2 + $0x108] sm:$0xff] }
 0x54f   : > { %v3086_v5 = vld [vmem:[#allocation2 + $0x280] sm:$0xff]  ;;  %v3103_v17 = vld [vmem:[#allocation2 + $0x230] sm:$0xff]  ;;  %v3089_v20 = vld [vmem:[#allocation2 + $0x158] sm:$0xff] }
 0x550   : > { %v3070_v3 = vld [vmem:[#allocation2 + $0x60] sm:$0xff]  ;;  %v3105_v16 = vld [vmem:[#allocation2 + $0x90] sm:$0xff]  ;;  %v3107_v6 = vld [vmem:[#allocation2 + $0x208] sm:$0xff] }
 0x551   : > { %v3087_v30 = vld [vmem:[#allocation2 + $0x100] sm:$0xff]  ;;  %v3091_v21 = vld [vmem:[#allocation2 + $0x218] sm:$0xff]  ;;  %v3108_v48 = vld [vmem:[#allocation2 + $0xd0] sm:$0xff] }
 0x552   : > { %3218 = vxpose.xlu1.b32.cont [4/16] %v3074_v39, 128  ;;  %3186 = vxpose.xlu0.b32.cont [4/16] %v3058_v41, 128  ;;  %v3104_v7 = vld [vmem:[#allocation2 + $0x240] sm:$0xff]  ;;  %v3092_v28 = vld [vmem:[#allocation2 + $0x3f8] sm:$0xff]  ;;  %v3109_v2 = vld [vmem:[#allocation2 + $0x88] sm:$0xff] }
 0x553   : > { %v3088_v10 = vld [vmem:[#allocation2 + $0x3c0] sm:$0xff]  ;;  %v3093_v23 = vld [vmem:[#allocation2 + $0x8] sm:$0xff]  ;;  %v3110_v24 = vld [vmem:[#allocation2 + $0x2f0] sm:$0xff] }
 0x554   : > { %v3106_v12 = vld [vmem:[#allocation2 + $0x3a0] sm:$0xff]  ;;  %v3094_v8 = vld [vmem:[#allocation2 + $0x128] sm:$0xff]  ;;  %v3111_v15 = vld [vmem:[#allocation2 + $0x358] sm:$0xff] }
 0x555   : > { %v3090_v9 = vld [vmem:[#allocation2 + $0x3e0] sm:$0xff]  ;;  %v3112_v14 = vld [vmem:[#allocation2 + $0x268] sm:$0xff]  ;;  %v3096_v61 = vld [vmem:[#allocation2 + $0x3f0] sm:$0xff] }
 0x556   : > { %3219 = vxpose.xlu1.b32.cont [5/16] %v3075_v36, 128  ;;  %3187 = vxpose.xlu0.b32.cont [5/16] %v3059_v46, 128  ;;  %v3095_v19 = vld [vmem:[#allocation2 + $0x2a0] sm:$0xff]  ;;  %v3113_v45 = vld [vmem:[#allocation2 + $0x350] sm:$0xff]  ;;  %v3114_v25 = vld [vmem:[#allocation2 + $0x188] sm:$0xff] }
 0x557   : > { %v3097_v29 = vld [vmem:[#allocation2 + $0xa0] sm:$0xff]  ;;  %v3115_v26 = vld [vmem:[#allocation2 + $0x1d8] sm:$0xff]  ;;  %v3099_v52 = vld [vmem:[#allocation2 + $0xb0] sm:$0xff] }
 0x558   : > { %v3098_v22 = vld [vmem:[#allocation2 + $0x2c0] sm:$0xff]  ;;  %v3116_v59 = vld [vmem:[#allocation2 + $0x30] sm:$0xff]  ;;  %v3118_v62 = vld [vmem:[#allocation2 + $0x2a8] sm:$0xff] }
 0x559   : > { %v3100_v44 = vld [vmem:[#allocation2 + $0x1e0] sm:$0xff]  ;;  %v3101_v49 = vld [vmem:[#allocation2 + $0x1f0] sm:$0xff]  ;;  %v3135_v60 = vld [vmem:[#allocation2 + $0x288] sm:$0xff] }
 0x55a   : > { %3220 = vxpose.xlu1.b32.cont [6/16] %v3076_v53, 128  ;;  %3188 = vxpose.xlu0.b32.cont [6/16] %v3060_v47, 128  ;;  %v3117_v43 = vld [vmem:[#allocation2 + $0x140] sm:$0xff]  ;;  %v3102_v40 = vld [vmem:[#allocation2 + $0x10] sm:$0xff]  ;;  %v3136_v46 = vld [vmem:[#allocation2 + $0x3a8] sm:$0xff] }
 0x55b   : > { %v3119_v38 = vld [vmem:[#allocation2 + $0x130] sm:$0xff]  ;;  %v3120_v53 = vld [vmem:[#allocation2 + $0x200] sm:$0xff] }
 0x55e   : > { %3221 = vxpose.xlu1.b32.cont [7/16] %v3077_v54, 128  ;;  %3189 = vxpose.xlu0.b32.cont [7/16] %v3061_v55, 128 }
 0x562   : > { %3222 = vxpose.xlu1.b32.cont [8/16] %v3078_v37, 128  ;;  %3190 = vxpose.xlu0.b32.cont [8/16] %v3062_v27, 128  ;;  %v3137_v27 = vld [vmem:[#allocation2 + $0x3c8] sm:$0xff] }
 0x566   : > { %3223 = vxpose.xlu1.b32.cont [9/16] %v3079_v1, 128  ;;  %3191 = vxpose.xlu0.b32.cont [9/16] %v3063_v35, 128  ;;  %v3121_v1 = vld [vmem:[#allocation2 + $0x318] sm:$0xff] }
 0x56a   : > { %3224 = vxpose.xlu1.b32.cont [10/16] %v3080_v33, 128  ;;  %3192 = vxpose.xlu0.b32.cont [10/16] %v3064_v56, 128 }
 0x56e   : > { %3225 = vxpose.xlu1.b32.cont [11/16] %v3081_v58, 128  ;;  %3193 = vxpose.xlu0.b32.cont [11/16] %v3065_v0, 128  ;;  %v3138_v0 = vld [vmem:[#allocation2 + $0x160] sm:$0xff] }
 0x572   : > { %3226 = vxpose.xlu1.b32.cont [12/16] %v3082_v34, 128  ;;  %3194 = vxpose.xlu0.b32.cont [12/16] %v3066_v31, 128  ;;  %v3122_v34 = vld [vmem:[#allocation2 + $0x220] sm:$0xff] }
 0x576   : > { %3227 = vxpose.xlu1.b32.cont [13/16] %v3083_v13, 128  ;;  %3195 = vxpose.xlu0.b32.cont [13/16] %v3067_v4, 128 }
 0x57a   : > { %3228 = vxpose.xlu1.b32.cont [14/16] %v3084_v32, 128  ;;  %3196 = vxpose.xlu0.b32.cont [14/16] %v3068_v57, 128  ;;  %v3139_v57 = vld [vmem:[#allocation2 + $0x2c8] sm:$0xff] }
 0x57e   : > { %3229 = vxpose.xlu1.b32.cont [15/16] %v3085_v11, 128  ;;  %3197 = vxpose.xlu0.b32.cont [15/16] %v3069_v18, 128  ;;  %v3123_v11 = vld [vmem:[#allocation2 + $0x70] sm:$0xff] }
 0x582   : > { %3230 = vxpose.xlu1.b32.end [16/16] %v3086_v5, 128  ;;  %3198 = vxpose.xlu0.b32.end [16/16] %v3070_v3, 128 }
 0x586   : > { %3279 = vxpose.xlu1.b32.start [1/16] %v3103_v17, 128  ;;  %3247 = vxpose.xlu0.b32.start [1/16] %v3087_v30, 128  ;;  %v3140_v30 = vld [vmem:[#allocation2 + $0x210] sm:$0xff] }
 0x58a   : > { %3280 = vxpose.xlu1.b32.cont [2/16] %v3104_v7, 128  ;;  %3248 = vxpose.xlu0.b32.cont [2/16] %v3088_v10, 128  ;;  %v3124_v7 = vld [vmem:[#allocation2 + $0x300] sm:$0xff] }
 0x58e   : > { %3281 = vxpose.xlu1.b32.cont [3/16] %v3105_v16, 128  ;;  %3249 = vxpose.xlu0.b32.cont [3/16] %v3089_v20, 128 }
 0x592   : > { %3282 = vxpose.xlu1.b32.cont [4/16] %v3106_v12, 128  ;;  %3250 = vxpose.xlu0.b32.cont [4/16] %v3090_v9, 128  ;;  %v3141_v9 = vld [vmem:[#allocation2 + $0x3d8] sm:$0xff] }
 0x596   : > { %3283 = vxpose.xlu1.b32.cont [5/16] %v3107_v6, 128  ;;  %3251 = vxpose.xlu0.b32.cont [5/16] %v3091_v21, 128  ;;  %v3125_v6 = vld [vmem:[#allocation2 + $0xe0] sm:$0xff] }
 0x59a   : > { %3284 = vxpose.xlu1.b32.cont [6/16] %v3108_v48, 128  ;;  %3252 = vxpose.xlu0.b32.cont [6/16] %v3092_v28, 128 }
 0x59e   : > { %3285 = vxpose.xlu1.b32.cont [7/16] %v3109_v2, 128  ;;  %3253 = vxpose.xlu0.b32.cont [7/16] %v3093_v23, 128  ;;  %v3142_v23 = vld [vmem:[#allocation2 + $0x1e8] sm:$0xff] }
 0x5a2   : > { %3286 = vxpose.xlu1.b32.cont [8/16] %v3110_v24, 128  ;;  %3254 = vxpose.xlu0.b32.cont [8/16] %v3094_v8, 128  ;;  %v3126_v24 = vld [vmem:[#allocation2 + $0x178] sm:$0xff] }
 0x5a6   : > { %3287 = vxpose.xlu1.b32.cont [9/16] %v3111_v15, 128  ;;  %3255 = vxpose.xlu0.b32.cont [9/16] %v3095_v19, 128 }
 0x5aa   : > { %3288 = vxpose.xlu1.b32.cont [10/16] %v3112_v14, 128  ;;  %3256 = vxpose.xlu0.b32.cont [10/16] %v3096_v61, 128  ;;  %v3143_v61 = vld [vmem:[#allocation2 + $0x1b0] sm:$0xff] }
 0x5ae   : > { %3289 = vxpose.xlu1.b32.cont [11/16] %v3113_v45, 128  ;;  %3257 = vxpose.xlu0.b32.cont [11/16] %v3097_v29, 128  ;;  %v3127_v45 = vld [vmem:[#allocation2 + $0x328] sm:$0xff] }
 0x5b2   : > { %3290 = vxpose.xlu1.b32.cont [12/16] %v3114_v25, 128  ;;  %3258 = vxpose.xlu0.b32.cont [12/16] %v3098_v22, 128 }
 0x5b6   : > { %3291 = vxpose.xlu1.b32.cont [13/16] %v3115_v26, 128  ;;  %3259 = vxpose.xlu0.b32.cont [13/16] %v3099_v52, 128  ;;  %v3144_v52 = vld [vmem:[#allocation2 + $0x1c8] sm:$0xff] }
 0x5ba   : > { %3292 = vxpose.xlu1.b32.cont [14/16] %v3116_v59, 128  ;;  %3260 = vxpose.xlu0.b32.cont [14/16] %v3100_v44, 128  ;;  %v3128_v59 = vld [vmem:[#allocation2 + $0x260] sm:$0xff] }
 0x5be   : > { %3293 = vxpose.xlu1.b32.cont [15/16] %v3117_v43, 128  ;;  %3261 = vxpose.xlu0.b32.cont [15/16] %v3101_v49, 128 }
 0x5c2   : > { %3294 = vxpose.xlu1.b32.end [16/16] %v3118_v62, 128  ;;  %v3231_v42 = vpop.trf.xlu1  ;;  %3262 = vxpose.xlu0.b32.end [16/16] %v3102_v40, 128  ;;  %v3199_v50 = vpop.trf.xlu0  ;;  %v3145_v40 = vld [vmem:[#allocation2 + $0x2d0] sm:$0xff] }
 0x5c6   : > { %3343 = vxpose.xlu1.b32.start [1/16] %v3135_v60, 128  ;;  %v3232_v63 = vpop.trf.xlu1  ;;  %3311 = vxpose.xlu0.b32.start [1/16] %v3119_v38, 128  ;;  %v3200_v39 = vpop.trf.xlu0 }
 0x5c7   : > { %v3460_v41 = vmax.f32 %v3231_v42, %v3232_v63  ;;  %v3439_v36 = vmax.f32 %v3199_v50, %v3200_v39  ;;  %v3129_v42 = vld [vmem:[#allocation2 + $0x3b8] sm:$0xff]  ;;  %v3146_v39 = vld [vmem:[#allocation2 + $0x1d0] sm:$0xff] }
 0x5ca   : > { %3344 = vxpose.xlu1.b32.cont [2/16] %v3136_v46, 128  ;;  %v3233_v47 = vpop.trf.xlu1  ;;  %3312 = vxpose.xlu0.b32.cont [2/16] %v3120_v53, 128  ;;  %v3201_v54 = vpop.trf.xlu0 }
 0x5cb   : > { %v3461_v55 = vmax.f32 %v3460_v41, %v3233_v47  ;;  %v3440_v37 = vmax.f32 %v3439_v36, %v3201_v54  ;;  %v3130_v41 = vld [vmem:[#allocation2 + $0x2b8] sm:$0xff] }
 0x5cc   : > { %v3147_v54 = vld [vmem:[#allocation2 + $0x58] sm:$0xff] }
 0x5ce   : > { %3345 = vxpose.xlu1.b32.cont [3/16] %v3137_v27, 128  ;;  %v3234_v35 = vpop.trf.xlu1  ;;  %3313 = vxpose.xlu0.b32.cont [3/16] %v3121_v1, 128  ;;  %v3202_v33 = vpop.trf.xlu0 }
 0x5cf   : > { %v3462_v56 = vmax.f32 %v3461_v55, %v3234_v35  ;;  %v3441_v58 = vmax.f32 %v3440_v37, %v3202_v33  ;;  %v3131_v55 = vld [vmem:[#allocation2 + $0x248] sm:$0xff]  ;;  %v3148_v33 = vld [vmem:[#allocation2 + $0x120] sm:$0xff] }
 0x5d2   : > { %3346 = vxpose.xlu1.b32.cont [4/16] %v3138_v0, 128  ;;  %v3235_v31 = vpop.trf.xlu1  ;;  %3314 = vxpose.xlu0.b32.cont [4/16] %v3122_v34, 128  ;;  %v3203_v13 = vpop.trf.xlu0 }
 0x5d3   : > { %v3463_v4 = vmax.f32 %v3462_v56, %v3235_v31  ;;  %v3442_v32 = vmax.f32 %v3441_v58, %v3203_v13  ;;  %v3132_v56 = vld [vmem:[#allocation2 + $0x40] sm:$0xff]  ;;  %v3149_v13 = vld [vmem:[#allocation2 + $0x198] sm:$0xff] }
 0x5d6   : > { %3347 = vxpose.xlu1.b32.cont [5/16] %v3139_v57, 128  ;;  %v3236_v18 = vpop.trf.xlu1  ;;  %3315 = vxpose.xlu0.b32.cont [5/16] %v3123_v11, 128  ;;  %v3204_v5 = vpop.trf.xlu0 }
 0x5d7   : > { %v3464_v3 = vmax.f32 %v3463_v4, %v3236_v18  ;;  %v3443_v17 = vmax.f32 %v3442_v32, %v3204_v5  ;;  %v3133_v4 = vld [vmem:[#allocation2 + $0x20] sm:$0xff]  ;;  %v3150_v5 = vld [vmem:[#allocation2 + $0x2e8] sm:$0xff] }
 0x5da   : > { %3348 = vxpose.xlu1.b32.cont [6/16] %v3140_v30, 128  ;;  %v3237_v10 = vpop.trf.xlu1  ;;  %3316 = vxpose.xlu0.b32.cont [6/16] %v3124_v7, 128  ;;  %v3205_v16 = vpop.trf.xlu0 }
 0x5db   : > { %v3465_v20 = vmax.f32 %v3464_v3, %v3237_v10  ;;  %v3444_v12 = vmax.f32 %v3443_v17, %v3205_v16  ;;  %v3134_v3 = vld [vmem:[#allocation2 + $0xe8] sm:$0xff] }
 0x5de   : > { %3349 = vxpose.xlu1.b32.cont [7/16] %v3141_v9, 128  ;;  %v3238_v21 = vpop.trf.xlu1  ;;  %3317 = vxpose.xlu0.b32.cont [7/16] %v3125_v6, 128  ;;  %v3206_v48 = vpop.trf.xlu0  ;;  %v3151_v9 = vld [vmem:[#allocation2 + $0x1f8] sm:$0xff] }
 0x5df   : > { %v3466_v28 = vmax.f32 %v3465_v20, %v3238_v21  ;;  %v3445_v2 = vmax.f32 %v3444_v12, %v3206_v48  ;;  %v3167_v12 = vld [vmem:[#allocation2 + $0x78] sm:$0xff] }
 0x5e2   : > { %3350 = vxpose.xlu1.b32.cont [8/16] %v3142_v23, 128  ;;  %v3239_v8 = vpop.trf.xlu1  ;;  %3318 = vxpose.xlu0.b32.cont [8/16] %v3126_v24, 128  ;;  %v3207_v15 = vpop.trf.xlu0 }
 0x5e3   : > { %v3467_v19 = vmax.f32 %v3466_v28, %v3239_v8  ;;  %v3446_v14 = vmax.f32 %v3445_v2, %v3207_v15  ;;  %v3168_v15 = vld [vmem:[#allocation2 + $0x308] sm:$0xff] }
 0x5e6   : > { %3351 = vxpose.xlu1.b32.cont [9/16] %v3143_v61, 128  ;;  %v3240_v29 = vpop.trf.xlu1  ;;  %3319 = vxpose.xlu0.b32.cont [9/16] %v3127_v45, 128  ;;  %v3208_v25 = vpop.trf.xlu0 }
 0x5e7   : > { %v3468_v22 = vmax.f32 %v3467_v19, %v3240_v29  ;;  %v3447_v26 = vmax.f32 %v3446_v14, %v3208_v25  ;;  %v3152_v19 = vld [vmem:[#allocation2 + $0x238] sm:$0xff] }
 0x5ea   : > { %3352 = vxpose.xlu1.b32.cont [10/16] %v3144_v52, 128  ;;  %v3241_v44 = vpop.trf.xlu1  ;;  %3320 = vxpose.xlu0.b32.cont [10/16] %v3128_v59, 128  ;;  %v3209_v43 = vpop.trf.xlu0  ;;  %v3169_v59 = vld [vmem:[#allocation2 + $0x370] sm:$0xff] }
 0x5eb   : > { %v3469_v49 = vmax.f32 %v3468_v22, %v3241_v44  ;;  %v3448_v62 = vmax.f32 %v3447_v26, %v3209_v43  ;;  %v3153_v44 = vld [vmem:[#allocation2 + $0x398] sm:$0xff] }
 0x5ee   : > { %3353 = vxpose.xlu1.b32.cont [11/16] %v3145_v40, 128  ;;  %v3242_v50 = vpop.trf.xlu1  ;;  %3321 = vxpose.xlu0.b32.cont [11/16] %v3129_v42, 128  ;;  %v3210_v60 = vpop.trf.xlu0 }
 0x5ef   : > { %v3470_v38 = vmax.f32 %v3469_v49, %v3242_v50  ;;  %v3449_v63 = vmax.f32 %v3448_v62, %v3210_v60  ;;  %v3170_v50 = vld [vmem:[#allocation2 + $0xc8] sm:$0xff]  ;;  %v3154_v60 = vld [vmem:[#allocation2 + $0x390] sm:$0xff] }
 0x5f2   : > { %3354 = vxpose.xlu1.b32.cont [12/16] %v3146_v39, 128  ;;  %v3243_v36 = vpop.trf.xlu1  ;;  %3322 = vxpose.xlu0.b32.cont [12/16] %v3130_v41, 128  ;;  %v3211_v46 = vpop.trf.xlu0 }
 0x5f3   : > { %v3471_v53 = vmax.f32 %v3470_v38, %v3243_v36  ;;  %v3450_v47 = vmax.f32 %v3449_v63, %v3211_v46  ;;  %v3171_v36 = vld [vmem:[#allocation2 + $0x278] sm:$0xff]  ;;  %v3155_v46 = vld [vmem:[#allocation2 + $0x1a0] sm:$0xff] }
 0x5f6   : > { %3355 = vxpose.xlu1.b32.cont [13/16] %v3147_v54, 128  ;;  %v3244_v37 = vpop.trf.xlu1  ;;  %3323 = vxpose.xlu0.b32.cont [13/16] %v3131_v55, 128  ;;  %v3212_v27 = vpop.trf.xlu0 }
 0x5f7   : > { %v3472_v1 = vmax.f32 %v3471_v53, %v3244_v37  ;;  %v3451_v35 = vmax.f32 %v3450_v47, %v3212_v27  ;;  %v3172_v37 = vld [vmem:[#allocation2 + $0x360] sm:$0xff]  ;;  %v3156_v27 = vld [vmem:[#allocation2 + $0xa8] sm:$0xff] }
 0x5fa   : > { %3356 = vxpose.xlu1.b32.cont [14/16] %v3148_v33, 128  ;;  %v3245_v58 = vpop.trf.xlu1  ;;  %3324 = vxpose.xlu0.b32.cont [14/16] %v3132_v56, 128  ;;  %v3213_v0 = vpop.trf.xlu0 }
 0x5fb   : > { %v3473_v34 = vmax.f32 %v3472_v1, %v3245_v58  ;;  %v3452_v31 = vmax.f32 %v3451_v35, %v3213_v0  ;;  %v3173_v58 = vld [vmem:[#allocation2 + $0x228] sm:$0xff]  ;;  %v3157_v0 = vld [vmem:[#allocation2 + $0x258] sm:$0xff] }
 0x5fe   : > { %3357 = vxpose.xlu1.b32.cont [15/16] %v3149_v13, 128  ;;  %v3246_v32 = vpop.trf.xlu1  ;;  %3325 = vxpose.xlu0.b32.cont [15/16] %v3133_v4, 128  ;;  %v3214_v57 = vpop.trf.xlu0 }
 0x5ff   : > { %v3474_v11 = vmax.f32 %v3473_v34, %v3246_v32  ;;  %v3453_v18 = vmax.f32 %v3452_v31, %v3214_v57  ;;  %v3174_v32 = vld [vmem:[#allocation2 + $0x348] sm:$0xff]  ;;  %v3158_v57 = vld [vmem:[#allocation2 + $0x2d8] sm:$0xff] }
 0x601   : > { %v3475_v17 = vrot.slane %v3474_v11, 4  ;;  %v3454_v30 = vrot.slane %v3453_v18, 4 }
 0x602   : > { %3358 = vxpose.xlu1.b32.end [16/16] %v3150_v5, 128  ;;  %v3295_v7 = vpop.trf.xlu1  ;;  %3326 = vxpose.xlu0.b32.end [16/16] %v3134_v3, 128  ;;  %v3263_v10 = vpop.trf.xlu0 }
 0x603   : > { %v3476_v16 = vmax.f32 %v3474_v11, %v3475_v17  ;;  %v3455_v20 = vmax.f32 %v3453_v18, %v3454_v30  ;;  %v3175_v17 = vld [vmem:[#allocation2 + $0x148] sm:$0xff]  ;;  %v3159_v30 = vld [vmem:[#allocation2 + $0xf0] sm:$0xff] }
 0x605   : > { %v3477_v6 = vrot.slane %v3476_v16, 2  ;;  %v3456_v21 = vrot.slane %v3455_v20, 2 }
 0x606   : > { %3407 = vxpose.xlu1.b32.start [1/16] %v3167_v12, 128  ;;  %v3296_v48 = vpop.trf.xlu1  ;;  %3375 = vxpose.xlu0.b32.start [1/16] %v3151_v9, 128  ;;  %v3264_v28 = vpop.trf.xlu0  ;;  %v3176_v12 = vld [vmem:[#allocation2 + $0xf8] sm:$0xff]  ;;  %v3160_v9 = vld [vmem:[#allocation2 + $0x180] sm:$0xff] }
 0x607   : > { %v3478_v2 = vmax.f32 %v3476_v16, %v3477_v6  ;;  %v3457_v23 = vmax.f32 %v3455_v20, %v3456_v21  ;;  %v3502_v24 = vmax.f32 %v3295_v7, %v3296_v48  ;;  %v3481_v8 = vmax.f32 %v3263_v10, %v3264_v28 }
 0x609   : > { %v3479_v14 = vrot.slane %v3478_v2, 1  ;;  %v3458_v61 = vrot.slane %v3457_v23, 1 }
 0x60a   : > { %3408 = vxpose.xlu1.b32.cont [2/16] %v3168_v15, 128  ;;  %v3297_v45 = vpop.trf.xlu1  ;;  %3376 = vxpose.xlu0.b32.cont [2/16] %v3152_v19, 128  ;;  %v3265_v29 = vpop.trf.xlu0 }
 0x60b   : > { %v4841_v25 = vmax.f32 %v3478_v2, %v3479_v14  ;;  %v4843_v22 = vmax.f32 %v3457_v23, %v3458_v61  ;;  %v3503_v26 = vmax.f32 %v3502_v24, %v3297_v45  ;;  %v3482_v52 = vmax.f32 %v3481_v8, %v3265_v29  ;;  %v3177_v2 = vld [vmem:[#allocation2 + $0x68] sm:$0xff]  ;;  %v3161_v23 = vld [vmem:[#allocation2 + $0x170] sm:$0xff]  ;;  %v3178_v14 = vld [vmem:[#allocation2] sm:$0xff] }
 0x60c   : > { %v3162_v61 = vld [vmem:[#allocation2 + $0x3d0] sm:$0xff] }
 0x60d   : > { %v3615_v43 = vcombine.low %v4843_v22, %v4841_v25 }
 0x60e   : > { %3409 = vxpose.xlu1.b32.cont [3/16] %v3169_v59, 128  ;;  %v3298_v49 = vpop.trf.xlu1  ;;  %3377 = vxpose.xlu0.b32.cont [3/16] %v3153_v44, 128  ;;  %v3266_v62 = vpop.trf.xlu0  ;;  %v3179_v59 = vld [vmem:[#allocation2 + $0x298] sm:$0xff]  ;;  %v3163_v44 = vld [vmem:[#allocation2 + $0x250] sm:$0xff] }
 0x60f   : > { %v3504_v40 = vmax.f32 %v3503_v26, %v3298_v49  ;;  %v3483_v42 = vmax.f32 %v3482_v52, %v3266_v62 }
 0x612   : > { %3410 = vxpose.xlu1.b32.cont [4/16] %v3170_v50, 128  ;;  %v3299_v38 = vpop.trf.xlu1  ;;  %3378 = vxpose.xlu0.b32.cont [4/16] %v3154_v60, 128  ;;  %v3267_v63 = vpop.trf.xlu0  ;;  %v3180_v50 = vld [vmem:[#allocation2 + $0x270] sm:$0xff]  ;;  %v3164_v60 = vld [vmem:[#allocation2 + $0x378] sm:$0xff] }
 0x613   : > { %v3505_v39 = vmax.f32 %v3504_v40, %v3299_v38  ;;  %v3484_v41 = vmax.f32 %v3483_v42, %v3267_v63 }
 0x616   : > { %3411 = vxpose.xlu1.b32.cont [5/16] %v3171_v36, 128  ;;  %v3300_v53 = vpop.trf.xlu1  ;;  %3379 = vxpose.xlu0.b32.cont [5/16] %v3155_v46, 128  ;;  %v3268_v47 = vpop.trf.xlu0  ;;  %v3181_v36 = vld [vmem:[#allocation2 + $0x310] sm:$0xff]  ;;  %v3165_v46 = vld [vmem:[#allocation2 + $0xb8] sm:$0xff] }
 0x617   : > { %v3506_v54 = vmax.f32 %v3505_v39, %v3300_v53  ;;  %v3485_v55 = vmax.f32 %v3484_v41, %v3268_v47 }
 0x61a   : > { %3412 = vxpose.xlu1.b32.cont [6/16] %v3172_v37, 128  ;;  %v3301_v1 = vpop.trf.xlu1  ;;  %3380 = vxpose.xlu0.b32.cont [6/16] %v3156_v27, 128  ;;  %v3269_v35 = vpop.trf.xlu0  ;;  %v3182_v37 = vld [vmem:[#allocation2 + $0x190] sm:$0xff]  ;;  %v3166_v27 = vld [vmem:[#allocation2 + $0x38] sm:$0xff] }
 0x61b   : > { %v3507_v33 = vmax.f32 %v3506_v54, %v3301_v1  ;;  %v3486_v56 = vmax.f32 %v3485_v55, %v3269_v35 }
 0x61e   : > { %3413 = vxpose.xlu1.b32.cont [7/16] %v3173_v58, 128  ;;  %v3302_v34 = vpop.trf.xlu1  ;;  %3381 = vxpose.xlu0.b32.cont [7/16] %v3157_v0, 128  ;;  %v3270_v31 = vpop.trf.xlu0 }
 0x61f   : > { %v3508_v13 = vmax.f32 %v3507_v33, %v3302_v34  ;;  %v3487_v4 = vmax.f32 %v3486_v56, %v3270_v31  ;;  %v4147_v33 = vmov 1966171168  }
 0x620   : > { %v3620_v56 = vunpack.c.l.s4 %v4147_v33 }
 0x622   : > { %3414 = vxpose.xlu1.b32.cont [8/16] %v3174_v32, 128  ;;  %v3303_v11 = vpop.trf.xlu1  ;;  %3382 = vxpose.xlu0.b32.cont [8/16] %v3158_v57, 128  ;;  %v3271_v18 = vpop.trf.xlu0  ;;  %v3621_v32 = vunpack.c.0.s8 %v3620_v56 }
 0x623   : > { %v3509_v5 = vmax.f32 %v3508_v13, %v3303_v11  ;;  %v3488_v3 = vmax.f32 %v3487_v4, %v3271_v18 }
 0x626   : > { %3415 = vxpose.xlu1.b32.cont [9/16] %v3175_v17, 128  ;;  %v3304_v7 = vpop.trf.xlu1  ;;  %3383 = vxpose.xlu0.b32.cont [9/16] %v3159_v30, 128  ;;  %v3272_v10 = vpop.trf.xlu0 }
 0x627   : > { %v3510_v16 = vmax.f32 %v3509_v5, %v3304_v7  ;;  %v3489_v20 = vmax.f32 %v3488_v3, %v3272_v10  ;;  %v4848_v10 = vsub.s32 %v3621_v32, %v4555_v51 }
 0x62a   : > { %3416 = vxpose.xlu1.b32.cont [10/16] %v3176_v12, 128  ;;  %v3305_v6 = vpop.trf.xlu1  ;;  %3384 = vxpose.xlu0.b32.cont [10/16] %v3160_v9, 128  ;;  %v3273_v21 = vpop.trf.xlu0 }
 0x62b   : > { %v3511_v48 = vmax.f32 %v3510_v16, %v3305_v6  ;;  %v3490_v28 = vmax.f32 %v3489_v20, %v3273_v21 }
 0x62e   : > { %3417 = vxpose.xlu1.b32.cont [11/16] %v3177_v2, 128  ;;  %v3306_v24 = vpop.trf.xlu1  ;;  %3385 = vxpose.xlu0.b32.cont [11/16] %v3161_v23, 128  ;;  %v3274_v8 = vpop.trf.xlu0  ;;  %v4854_v23 = vrot.slane %v3615_v43, %v4848_v10 }
 0x62f   : > { %v3512_v15 = vmax.f32 %v3511_v48, %v3306_v24  ;;  %v3491_v19 = vmax.f32 %v3490_v28, %v3274_v8 }
 0x632   : > { %3418 = vxpose.xlu1.b32.cont [12/16] %v3178_v14, 128  ;;  %v3307_v45 = vpop.trf.xlu1  ;;  %3386 = vxpose.xlu0.b32.cont [12/16] %v3162_v61, 128  ;;  %v3275_v29 = vpop.trf.xlu0 }
 0x633   : > { %v3513_v26 = vmax.f32 %v3512_v15, %v3307_v45  ;;  %v3492_v52 = vmax.f32 %v3491_v19, %v3275_v29 }
 0x636   : > { %3419 = vxpose.xlu1.b32.cont [13/16] %v3179_v59, 128  ;;  %v3308_v49 = vpop.trf.xlu1  ;;  %3387 = vxpose.xlu0.b32.cont [13/16] %v3163_v44, 128  ;;  %v3276_v62 = vpop.trf.xlu0 }
 0x637   : > { %v3514_v40 = vmax.f32 %v3513_v26, %v3308_v49  ;;  %v3493_v42 = vmax.f32 %v3492_v52, %v3276_v62 }
 0x63a   : > { %3420 = vxpose.xlu1.b32.cont [14/16] %v3180_v50, 128  ;;  %v3309_v38 = vpop.trf.xlu1  ;;  %3388 = vxpose.xlu0.b32.cont [14/16] %v3164_v60, 128  ;;  %v3277_v63 = vpop.trf.xlu0 }
 0x63b   : > { %v3515_v39 = vmax.f32 %v3514_v40, %v3309_v38  ;;  %v3494_v41 = vmax.f32 %v3493_v42, %v3277_v63 }
 0x63e   : > { %3421 = vxpose.xlu1.b32.cont [15/16] %v3181_v36, 128  ;;  %v3310_v53 = vpop.trf.xlu1  ;;  %3389 = vxpose.xlu0.b32.cont [15/16] %v3165_v46, 128  ;;  %v3278_v47 = vpop.trf.xlu0 }
 0x63f   : > { %v3516_v54 = vmax.f32 %v3515_v39, %v3310_v53  ;;  %v3495_v55 = vmax.f32 %v3494_v41, %v3278_v47 }
 0x641   : > { %v3517_v1 = vrot.slane %v3516_v54, 4  ;;  %v3496_v35 = vrot.slane %v3495_v55, 4 }
 0x642   : > { %3422 = vxpose.xlu1.b32.end [16/16] %v3182_v37, 128  ;;  %v3359_v58 = vpop.trf.xlu1  ;;  %3390 = vxpose.xlu0.b32.end [16/16] %v3166_v27, 128  ;;  %v3327_v0 = vpop.trf.xlu0 }
 0x643   : > { %v3518_v34 = vmax.f32 %v3516_v54, %v3517_v1  ;;  %v3497_v31 = vmax.f32 %v3495_v55, %v3496_v35 }
 0x645   : > { %v3519_v13 = vrot.slane %v3518_v34, 2  ;;  %v3498_v4 = vrot.slane %v3497_v31, 2 }
 0x646   : > { %v3360_v57 = vpop.trf.xlu1  ;;  %v3328_v11 = vpop.trf.xlu0 }
 0x647   : > { %v3520_v18 = vmax.f32 %v3518_v34, %v3519_v13  ;;  %v3499_v5 = vmax.f32 %v3497_v31, %v3498_v4  ;;  %v3544_v3 = vmax.f32 %v3359_v58, %v3360_v57  ;;  %v3523_v17 = vmax.f32 %v3327_v0, %v3328_v11 }
 0x649   : > { %v3521_v30 = vrot.slane %v3520_v18, 1  ;;  %v3500_v7 = vrot.slane %v3499_v5, 1 }
 0x64a   : > { %v3361_v16 = vpop.trf.xlu1  ;;  %v3329_v20 = vpop.trf.xlu0 }
 0x64b   : > { %v3522_v12 = vmax.f32 %v3520_v18, %v3521_v30  ;;  %v3501_v9 = vmax.f32 %v3499_v5, %v3500_v7  ;;  %v3545_v6 = vmax.f32 %v3544_v3, %v3361_v16  ;;  %v3524_v21 = vmax.f32 %v3523_v17, %v3329_v20 }
 0x64d   : > { %v3616_v48 = vcombine.low %v3501_v9, %v3522_v12 }
 0x64e   : > { %v3362_v28 = vpop.trf.xlu1  ;;  %v3330_v2 = vpop.trf.xlu0 }
 0x64f   : > { %v4857_v24 = vrot.slane %v3616_v48, %v4848_v10  ;;  %v3546_v51 = vmax.f32 %v3545_v6, %v3362_v28  ;;  %v3525_v8 = vmax.f32 %v3524_v21, %v3330_v2 }
 0x651   : > { %v3647_v15 = vcombine.low %v4854_v23, %v4857_v24 }
 0x652   : > { %v3363_v19 = vpop.trf.xlu1  ;;  %v3331_v14 = vpop.trf.xlu0 }
 0x653   : > { %v3547_v61 = vmax.f32 %v3546_v51, %v3363_v19  ;;  %v3526_v45 = vmax.f32 %v3525_v8, %v3331_v14 }
 0x656   : > { %v3364_v29 = vpop.trf.xlu1  ;;  %v3332_v26 = vpop.trf.xlu0 }
 0x657   : > { %v3548_v52 = vmax.f32 %v3547_v61, %v3364_v29  ;;  %v3527_v59 = vmax.f32 %v3526_v45, %v3332_v26 }
 0x65a   : > { %v3365_v44 = vpop.trf.xlu1  ;;  %v3333_v25 = vpop.trf.xlu0 }
 0x65b   : > { %v3549_v22 = vmax.f32 %v3548_v52, %v3365_v44  ;;  %v3528_v43 = vmax.f32 %v3527_v59, %v3333_v25 }
 0x65e   : > { %v3366_v49 = vpop.trf.xlu1  ;;  %v3334_v62 = vpop.trf.xlu0 }
 0x65f   : > { %v3550_v40 = vmax.f32 %v3549_v22, %v3366_v49  ;;  %v3529_v42 = vmax.f32 %v3528_v43, %v3334_v62 }
 0x662   : > { %v3367_v50 = vpop.trf.xlu1  ;;  %v3335_v60 = vpop.trf.xlu0 }
 0x663   : > { %v3551_v38 = vmax.f32 %v3550_v40, %v3367_v50  ;;  %v3530_v63 = vmax.f32 %v3529_v42, %v3335_v60 }
 0x666   : > { %v3368_v39 = vpop.trf.xlu1  ;;  %v3336_v41 = vpop.trf.xlu0 }
 0x667   : > { %v3552_v36 = vmax.f32 %v3551_v38, %v3368_v39  ;;  %v3531_v46 = vmax.f32 %v3530_v63, %v3336_v41 }
 0x66a   : > { %v3369_v53 = vpop.trf.xlu1  ;;  %v3337_v47 = vpop.trf.xlu0 }
 0x66b   : > { %v3553_v54 = vmax.f32 %v3552_v36, %v3369_v53  ;;  %v3532_v55 = vmax.f32 %v3531_v46, %v3337_v47 }
 0x66e   : > { %v3370_v37 = vpop.trf.xlu1  ;;  %v3338_v27 = vpop.trf.xlu0 }
 0x66f   : > { %v3554_v1 = vmax.f32 %v3553_v54, %v3370_v37  ;;  %v3533_v35 = vmax.f32 %v3532_v55, %v3338_v27 }
 0x672   : > { %v3371_v33 = vpop.trf.xlu1  ;;  %v3339_v56 = vpop.trf.xlu0 }
 0x673   : > { %v3555_v58 = vmax.f32 %v3554_v1, %v3371_v33  ;;  %v3534_v0 = vmax.f32 %v3533_v35, %v3339_v56 }
 0x676   : > { %v3372_v34 = vpop.trf.xlu1  ;;  %v3340_v31 = vpop.trf.xlu0 }
 0x677   : > { %v3556_v13 = vmax.f32 %v3555_v58, %v3372_v34  ;;  %v3535_v4 = vmax.f32 %v3534_v0, %v3340_v31 }
 0x67a   : > { %v3373_v32 = vpop.trf.xlu1  ;;  %v3341_v57 = vpop.trf.xlu0 }
 0x67b   : > { %v3557_v11 = vmax.f32 %v3556_v13, %v3373_v32  ;;  %v3536_v18 = vmax.f32 %v3535_v4, %v3341_v57 }
 0x67e   : > { %v3374_v5 = vpop.trf.xlu1  ;;  %v3342_v3 = vpop.trf.xlu0 }
 0x67f   : > { %v3558_v17 = vmax.f32 %v3557_v11, %v3374_v5  ;;  %v3537_v30 = vmax.f32 %v3536_v18, %v3342_v3 }
 0x681   : > { %v3559_v7 = vrot.slane %v3558_v17, 4  ;;  %v3538_v16 = vrot.slane %v3537_v30, 4 }
 0x682   : > { %v3423_v20 = vpop.trf.xlu1  ;;  %v3391_v12 = vpop.trf.xlu0 }
 0x683   : > { %v3560_v9 = vmax.f32 %v3558_v17, %v3559_v7  ;;  %v3539_v6 = vmax.f32 %v3537_v30, %v3538_v16 }
 0x685   : > { %v3561_v21 = vrot.slane %v3560_v9, 2  ;;  %v3540_v48 = vrot.slane %v3539_v6, 2 }
 0x686   : > { %v3424_v28 = vpop.trf.xlu1  ;;  %v3392_v2 = vpop.trf.xlu0 }
 0x687   : > { %v3562_v51 = vmax.f32 %v3560_v9, %v3561_v21  ;;  %v3541_v8 = vmax.f32 %v3539_v6, %v3540_v48  ;;  %v3586_v63 = vmax.f32 %v3423_v20, %v3424_v28  ;;  %v3565_v39 = vmax.f32 %v3391_v12, %v3392_v2 }
 0x689   : > { %v3563_v19 = vrot.slane %v3562_v51, 1  ;;  %v3542_v14 = vrot.slane %v3541_v8, 1 }
 0x68a   : > { %v3425_v61 = vpop.trf.xlu1  ;;  %v3393_v45 = vpop.trf.xlu0 }
 0x68b   : > { %v4861_v29 = vmax.f32 %v3562_v51, %v3563_v19  ;;  %v4863_v26 = vmax.f32 %v3541_v8, %v3542_v14  ;;  %v3587_v41 = vmax.f32 %v3586_v63, %v3425_v61  ;;  %v3566_v36 = vmax.f32 %v3565_v39, %v3393_v45 }
 0x68d   : > { %v3617_v52 = vcombine.low %v4863_v26, %v4861_v29 }
 0x68e   : > { %v3426_v59 = vpop.trf.xlu1  ;;  %v3394_v44 = vpop.trf.xlu0 }
 0x68f   : > { %v3588_v47 = vmax.f32 %v3587_v41, %v3426_v59  ;;  %v3567_v54 = vmax.f32 %v3566_v36, %v3394_v44  ;;  %v3639_v63 = vrot.slane %v3617_v52, %v4848_v10  ;;  %v3655_v36 = vrot.slane %v3647_v15, %v4848_v10 }
 0x692   : > { %v3427_v25 = vpop.trf.xlu1  ;;  %v3395_v22 = vpop.trf.xlu0 }
 0x693   : > { %v3589_v55 = vmax.f32 %v3588_v47, %v3427_v25  ;;  %v3568_v37 = vmax.f32 %v3567_v54, %v3395_v22 }
 0x696   : > { %v3428_v43 = vpop.trf.xlu1  ;;  %v3396_v49 = vpop.trf.xlu0 }
 0x697   : > { %v3590_v35 = vmax.f32 %v3589_v55, %v3428_v43  ;;  %v3569_v33 = vmax.f32 %v3568_v37, %v3396_v49 }
 0x69a   : > { %v3429_v62 = vpop.trf.xlu1  ;;  %v3397_v40 = vpop.trf.xlu0 }
 0x69b   : > { %v3591_v56 = vmax.f32 %v3590_v35, %v3429_v62  ;;  %v3570_v58 = vmax.f32 %v3569_v33, %v3397_v40 }
 0x69e   : > { %v3430_v42 = vpop.trf.xlu1  ;;  %v3398_v50 = vpop.trf.xlu0 }
 0x69f   : > { %v3592_v31 = vmax.f32 %v3591_v56, %v3430_v42  ;;  %v3571_v13 = vmax.f32 %v3570_v58, %v3398_v50 }
 0x6a2   : > { %v3431_v60 = vpop.trf.xlu1  ;;  %v3399_v38 = vpop.trf.xlu0 }
 0x6a3   : > { %v3593_v4 = vmax.f32 %v3592_v31, %v3431_v60  ;;  %v3572_v32 = vmax.f32 %v3571_v13, %v3399_v38 }
 0x6a6   : > { %v3432_v46 = vpop.trf.xlu1  ;;  %v3400_v53 = vpop.trf.xlu0 }
 0x6a7   : > { %v3594_v18 = vmax.f32 %v3593_v4, %v3432_v46  ;;  %v3573_v5 = vmax.f32 %v3572_v32, %v3400_v53 }
 0x6aa   : > { %v3433_v27 = vpop.trf.xlu1  ;;  %v3401_v1 = vpop.trf.xlu0 }
 0x6ab   : > { %v3595_v3 = vmax.f32 %v3594_v18, %v3433_v27  ;;  %v3574_v17 = vmax.f32 %v3573_v5, %v3401_v1 }
 0x6ae   : > { %v3434_v0 = vpop.trf.xlu1  ;;  %v3402_v34 = vpop.trf.xlu0 }
 0x6af   : > { %v3596_v16 = vmax.f32 %v3595_v3, %v3434_v0  ;;  %v3575_v20 = vmax.f32 %v3574_v17, %v3402_v34 }
 0x6b2   : > { %v3435_v57 = vpop.trf.xlu1  ;;  %v3403_v11 = vpop.trf.xlu0 }
 0x6b3   : > { %v3597_v12 = vmax.f32 %v3596_v16, %v3435_v57  ;;  %v3576_v9 = vmax.f32 %v3575_v20, %v3403_v11 }
 0x6b6   : > { %v3436_v30 = vpop.trf.xlu1  ;;  %v3404_v7 = vpop.trf.xlu0 }
 0x6b7   : > { %v3598_v48 = vmax.f32 %v3597_v12, %v3436_v30  ;;  %v3577_v28 = vmax.f32 %v3576_v9, %v3404_v7 }
 0x6ba   : > { %v3437_v6 = vpop.trf.xlu1  ;;  %v3405_v21 = vpop.trf.xlu0 }
 0x6bb   : > { %v3599_v2 = vmax.f32 %v3598_v48, %v3437_v6  ;;  %v3578_v51 = vmax.f32 %v3577_v28, %v3405_v21 }
 0x6be   : > { %v3438_v8 = vpop.trf.xlu1  ;;  %v3406_v19 = vpop.trf.xlu0 }
 0x6bf   : > { %v3600_v14 = vmax.f32 %v3599_v2, %v3438_v8  ;;  %v3579_v61 = vmax.f32 %v3578_v51, %v3406_v19 }
 0x6c1   : > { %v3601_v45 = vrot.slane %v3600_v14, 4  ;;  %v3580_v59 = vrot.slane %v3579_v61, 4 }
 0x6c3   : > { %v3602_v44 = vmax.f32 %v3600_v14, %v3601_v45  ;;  %v3581_v25 = vmax.f32 %v3579_v61, %v3580_v59 }
 0x6c5   : > { %v3603_v22 = vrot.slane %v3602_v44, 2  ;;  %v3582_v43 = vrot.slane %v3581_v25, 2 }
 0x6c7   : > { %v3604_v49 = vmax.f32 %v3602_v44, %v3603_v22  ;;  %v3583_v62 = vmax.f32 %v3581_v25, %v3582_v43 }
 0x6c9   : > { %v3605_v40 = vrot.slane %v3604_v49, 1  ;;  %v3584_v42 = vrot.slane %v3583_v62, 1 }
 0x6cb   : > { %v3606_v50 = vmax.f32 %v3604_v49, %v3605_v40  ;;  %v3585_v60 = vmax.f32 %v3583_v62, %v3584_v42 }
 0x6cd   : > { %v3618_v38 = vcombine.low %v3585_v60, %v3606_v50 }
 0x6cf   : > { %v3646_v39 = vrot.slane %v3618_v38, %v4848_v10 }
 0x6d1   : > { %v3648_v41 = vcombine.low %v3639_v63, %v3646_v39 }
 0x6d3   : > { %v3662_v46 = vrot.slane %v3648_v41, %v4848_v10 }
 0x6d5   : > { %v3663_v53 = vcombine.low %v3655_v36, %v3662_v46 }
 0x6d7   : > { %3665 = vst [vmem:[%s4278_s19] sm:$0xff] %v3663_v53 }
 0x6d8 PF: > { %s20_s9 = sadd.s32 1, %s4137_s9   ;;  %s4905_s27 = smov %s4129_s29 }
 0x6d9   : > { %p17_p13 = scmp.ge.s32.totalorder %s20_s9, 12   ;;  %s4906_s28 = smov %s4133_s30 }
 0x6da   : > { %s4907_s29 = smov %s4910_s11  ;;  %s4908_s30 = smov %s4914_s12 }
 0x6db   :  { %19 = sbr.rel (!%p17_p13) target bundleno = 4 (0x4), region = 99 }
 0x6e0   :  { %3685 = vsyncpa [#allocation4], 1 }
 0x6e1   :  { %3687 = vsyncpa [#allocation4 + $0x1], 1 }
 0x6e2   :  { %3688 = vsyncpa [#allocation6], 1 }

</bundles_post_ra>
